<compile_context>
chip_gen: v7x
topology: tpu7x:2x2x1
jax: 0.10.0
libtpu: 0.0.40
codegen_flags: <defaults>
</compile_context>

<pallas_src>
import math
import itertools
import numpy as np

import jax
import jax.numpy as jnp
from jax.experimental import pallas as pl
from jax.experimental.pallas import tpu as pltpu


# ----------------------------------------------------------------------------
# Reference helper (verbatim semantics from the PyTorch file)
# ----------------------------------------------------------------------------
def encode_sequence_1mer(sequences, max_seq):
    k = 1
    overlap = False
    all_kmer = [''.join(p) for p in itertools.product(['A', 'T', 'C', 'G', '-'], repeat=k)]
    kmer_dict = {all_kmer[i]: i for i in range(len(all_kmer))}
    encoded_sequences = []
    max_length = max_seq - k + 1 if overlap else max_seq // k
    for seq in sequences:
        encoded_seq = []
        start_site = len(seq) // 2 - max_length // 2
        for i in range(start_site, start_site + max_length, k):
            encoded_seq.append(kmer_dict.get(seq[i:i + k], 0))
        encoded_sequences.append(encoded_seq + [0] * (max_length - len(encoded_seq)))
    return np.array(encoded_sequences)


def _round_up(x, m):
    return (x + m - 1) // m * m


# ----------------------------------------------------------------------------
# Pallas kernels
# ----------------------------------------------------------------------------
def _matmul_bias_act_kernel(act):
    def kernel(a_ref, w_ref, b_ref, o_ref):
        acc = jnp.dot(a_ref[...], w_ref[...], preferred_element_type=jnp.float32)
        acc = acc + b_ref[...]
        if act == "relu":
            acc = jnp.maximum(acc, 0.0)
        elif act == "sigmoid":
            acc = 1.0 / (1.0 + jnp.exp(-acc))
        o_ref[...] = acc
    return kernel


def pallas_linear(a, w, b, act="none", block_m=256):
    """(M,K) @ (K,N) + b with bf16 operands / f32 accumulation, tiled over M."""
    M, K = a.shape
    N = w.shape[1]
    bm = min(block_m, _round_up(M, 8))
    Mp = _round_up(M, bm)
    if Mp != M:
        a = jnp.pad(a, ((0, Mp - M), (0, 0)))
    out = pl.pallas_call(
        _matmul_bias_act_kernel(act),
        out_shape=jax.ShapeDtypeStruct((Mp, N), jnp.float32),
        grid=(Mp // bm,),
        in_specs=[
            pl.BlockSpec((bm, K), lambda i: (i, 0)),
            pl.BlockSpec((K, N), lambda i: (0, 0)),
            pl.BlockSpec((1, N), lambda i: (0, 0)),
        ],
        out_specs=pl.BlockSpec((bm, N), lambda i: (i, 0)),
        compiler_params=pltpu.CompilerParams(dimension_semantics=("parallel",)),
    )(a.astype(jnp.bfloat16), w.astype(jnp.bfloat16),
      b.reshape(1, N).astype(jnp.float32))
    return out[:M]


def _linear_add_ln_kernel(eps):
    def kernel(a_ref, w_ref, b_ref, res_ref, g_ref, beta_ref, o_ref):
        y = jnp.dot(a_ref[...], w_ref[...], preferred_element_type=jnp.float32)
        x = res_ref[...] + y + b_ref[...]
        mu = jnp.mean(x, axis=-1, keepdims=True)
        var = jnp.mean((x - mu) ** 2, axis=-1, keepdims=True)
        o_ref[...] = (x - mu) * jax.lax.rsqrt(var + eps) * g_ref[...] + beta_ref[...]
    return kernel


def pallas_linear_add_ln(a, w, b, res, g, beta, eps=1e-5, block_m=256):
    """LayerNorm(res + a @ w + b) fused in a single kernel, tiled over M."""
    M, K = a.shape
    N = w.shape[1]
    bm = min(block_m, _round_up(M, 8))
    Mp = _round_up(M, bm)
    if Mp != M:
        a = jnp.pad(a, ((0, Mp - M), (0, 0)))
        res = jnp.pad(res, ((0, Mp - M), (0, 0)))
    out = pl.pallas_call(
        _linear_add_ln_kernel(eps),
        out_shape=jax.ShapeDtypeStruct((Mp, N), jnp.float32),
        grid=(Mp // bm,),
        in_specs=[
            pl.BlockSpec((bm, K), lambda i: (i, 0)),
            pl.BlockSpec((K, N), lambda i: (0, 0)),
            pl.BlockSpec((1, N), lambda i: (0, 0)),
            pl.BlockSpec((bm, N), lambda i: (i, 0)),
            pl.BlockSpec((1, N), lambda i: (0, 0)),
            pl.BlockSpec((1, N), lambda i: (0, 0)),
        ],
        out_specs=pl.BlockSpec((bm, N), lambda i: (i, 0)),
        compiler_params=pltpu.CompilerParams(dimension_semantics=("parallel",)),
    )(a.astype(jnp.bfloat16), w.astype(jnp.bfloat16),
      b.reshape(1, N).astype(jnp.float32), res.astype(jnp.float32),
      g.reshape(1, N).astype(jnp.float32), beta.reshape(1, N).astype(jnp.float32))
    return out[:M]


def _mha_kernel(scale, n_head, dh):
    def kernel(q_ref, k_ref, v_ref, o_ref):
        q = q_ref[0]                       # (L, D) bf16, lane-dense
        k = k_ref[0]
        v = v_ref[0]
        outs = []
        for h in range(n_head):            # static unroll; all work stays in VMEM
            sl = slice(h * dh, (h + 1) * dh)
            qh, kh, vh = q[:, sl], k[:, sl], v[:, sl]
            s = jax.lax.dot_general(qh, kh, (((1,), (1,)), ((), ())),
                                    preferred_element_type=jnp.float32) * scale
            s = s - jnp.max(s, axis=-1, keepdims=True)
            p = jnp.exp(s)
            p = p / jnp.sum(p, axis=-1, keepdims=True)
            outs.append(jnp.dot(p.astype(vh.dtype), vh,
                                preferred_element_type=jnp.float32))
        o_ref[0] = jnp.concatenate(outs, axis=-1)   # lane-dense (L, D) store
    return kernel


def pallas_mha(q, k, v, n_head):
    """q,k,v: (B, L, D).  All heads handled in one grid step per batch."""
    B, L, D = q.shape
    dh = D // n_head
    scale = 1.0 / math.sqrt(dh)
    return pl.pallas_call(
        _mha_kernel(scale, n_head, dh),
        out_shape=jax.ShapeDtypeStruct((B, L, D), jnp.float32),
        grid=(B,),
        in_specs=[pl.BlockSpec((1, L, D), lambda i: (i, 0, 0)) for _ in range(3)],
        out_specs=pl.BlockSpec((1, L, D), lambda i: (i, 0, 0)),
        compiler_params=pltpu.CompilerParams(dimension_semantics=("parallel",)),
    )(q.astype(jnp.bfloat16), k.astype(jnp.bfloat16), v.astype(jnp.bfloat16))


def _head_kernel(eps):
    def kernel(x_ref, w1, b1, g1, be1, w2, b2, g2, be2,
               w3, b3, g3, be3, w4, b4, o_ref):
        def ln_lrelu(x, g, be):
            mu = jnp.mean(x, axis=-1, keepdims=True)
            var = jnp.mean((x - mu) ** 2, axis=-1, keepdims=True)
            y = (x - mu) * jax.lax.rsqrt(var + eps) * g[...] + be[...]
            return jnp.where(y > 0, y, 0.01 * y)

        h = x_ref[...]
        h = ln_lrelu(jnp.dot(h, w1[...], preferred_element_type=jnp.float32) + b1[...], g1, be1)
        h = ln_lrelu(jnp.dot(h, w2[...], preferred_element_type=jnp.float32) + b2[...], g2, be2)
        h = ln_lrelu(jnp.dot(h, w3[...], preferred_element_type=jnp.float32) + b3[...], g3, be3)
        z = jnp.dot(h, w4[...], preferred_element_type=jnp.float32) + b4[...]
        o_ref[...] = 1.0 / (1.0 + jnp.exp(-z))
    return kernel


def pallas_head(x, p, eps=1e-5):
    """Whole classifier block (fc1..fc4 + LN/LeakyReLU + sigmoid) in one kernel."""
    B, D = x.shape
    operands = [x.astype(jnp.float32)]
    specs = [pl.BlockSpec((B, D), lambda i: (0, 0))]
    flat = [p["fc1_w"], p["fc1_b"].reshape(1, -1), p["blk_ln1_g"].reshape(1, -1), p["blk_ln1_b"].reshape(1, -1),
            p["fc2_w"], p["fc2_b"].reshape(1, -1), p["blk_ln2_g"].reshape(1, -1), p["blk_ln2_b"].reshape(1, -1),
            p["fc3_w"], p["fc3_b"].reshape(1, -1), p["blk_ln3_g"].reshape(1, -1), p["blk_ln3_b"].reshape(1, -1),
            p["fc4_w"], p["fc4_b"].reshape(1, -1)]
    for t in flat:
        t = t.astype(jnp.float32)
        operands.append(t)
        specs.append(pl.BlockSpec(t.shape, lambda i: (0, 0)))
    out = pl.pallas_call(
        _head_kernel(eps),
        out_shape=jax.ShapeDtypeStruct((B, 1), jnp.float32),
        grid=(1,),
        in_specs=specs,
        out_specs=pl.BlockSpec((B, 1), lambda i: (0, 0)),
    )(*operands)
    return out[:, 0]


# ----------------------------------------------------------------------------
# JAX glue (layout plumbing; heavy compute lives in the kernels above)
# ----------------------------------------------------------------------------
def im2col_1d(x, k, stride, pad):
    """x: (B, C, L) -> patches (B*Lout, C*k), Lout."""
    B, C, L = x.shape
    xp = jnp.pad(x, ((0, 0), (0, 0), (pad, pad)))
    Lout = (L + 2 * pad - k) // stride + 1
    idx = jnp.arange(Lout)[:, None] * stride + jnp.arange(k)[None, :]
    patches = xp[:, :, idx]                                   # (B, C, Lout, k)
    patches = jnp.transpose(patches, (0, 2, 1, 3)).reshape(B * Lout, C * k)
    return patches, Lout


def maxpool1d(x, k, s, pad=0, ceil_mode=False):
    """x: (B, C, L) -> (B, C, Lout). PyTorch MaxPool1d semantics (-inf padding,
    ceil_mode drops windows starting entirely in right padding)."""
    B, C, L = x.shape
    Lp = L + 2 * pad
    if ceil_mode:
        Lout = -(-(Lp - k) // s) + 1
        if (Lout - 1) * s >= L + pad:     # window starts entirely in padding
            Lout -= 1
    else:
        Lout = (Lp - k) // s + 1
    extra = max(0, (Lout - 1) * s + k - Lp)
    xp = jnp.pad(x, ((0, 0), (0, 0), (pad, pad + extra)), constant_values=-jnp.inf)
    idx = jnp.arange(Lout)[:, None] * s + jnp.arange(k)[None, :]
    return jnp.max(xp[:, :, idx], axis=-1)


def enac_encode(tokens, window=5):
    # TODO(synk): ENAC_Encoder is undefined in the reference; standard sliding-window
    # nucleotide composition (window=5, same length) is used instead.
    B, L = tokens.shape
    oh = (tokens[..., None] == jnp.arange(4)[None, None, :]).astype(jnp.float32)  # (B,L,4)
    pad = window // 2
    ohp = jnp.pad(oh, ((0, 0), (pad, pad), (0, 0)))
    idx = jnp.arange(L)[:, None] + jnp.arange(window)[None, :]
    comp = ohp[:, idx, :].mean(axis=2)                         # (B, L, 4)
    return jnp.transpose(comp, (0, 2, 1))                      # (B, 4, L)


def adaptive_avg_pool_matrix(L, T):
    """Exact PyTorch AdaptiveAvgPool1d as an (L, T) averaging matrix."""
    m = np.zeros((L, T), np.float32)
    for t in range(T):
        s = (t * L) // T
        e = -(-((t + 1) * L) // T)
        m[s:e, t] = 1.0 / (e - s)
    return jnp.asarray(m)


def multi_channel_attention(p, x_fuse, target_len):
    # TODO(synk): MultiChannelAttention is undefined in the reference; implemented as
    # channel attention (SE-style) + 1x1 projection to hidden_dim + adaptive avg pool
    # so the fuse-path sequence length matches the conv-path length before fusion.
    # Tiny-K matmuls (12x12, 12x256) stay in plain jnp so XLA fuses them.
    B, C, L = x_fuse.shape
    s = jnp.mean(x_fuse, axis=-1)                              # (B, C)
    a = jax.nn.sigmoid(s @ p["mca_ca_w"] + p["mca_ca_b"])      # (B, C)
    xs = x_fuse * a[:, :, None]
    y = jnp.einsum('bcl,cd->bdl', xs, p["mca_proj_w"]) + p["mca_proj_b"][None, :, None]
    pool = adaptive_avg_pool_matrix(L, target_len)
    return jnp.einsum('bdl,lt->bdt', y, pool)                  # (B, hidden, target_len)


def bilstm_layer(x, layer):
    """Bi-directional LSTM layer: fused fwd/bwd input projections in Pallas,
    both directions advanced in a single lax.scan (recurrent step is tiny and
    sequential, kept in plain JAX)."""
    B, L, In = x.shape
    H = layer["w_hh_f"].shape[0]
    w_ih = jnp.concatenate([layer["w_ih_f"], layer["w_ih_b"]], axis=1)   # (In, 8H)
    b = jnp.concatenate([layer["b_f"], layer["b_b"]], axis=0)            # (8H,)
    pre = pallas_linear(x.reshape(B * L, In), w_ih, b).reshape(B, L, 8 * H)
    pre_f = jnp.transpose(pre[:, :, :4 * H], (1, 0, 2))                  # (L, B, 4H)
    pre_b = jnp.transpose(pre[:, ::-1, 4 * H:], (1, 0, 2))               # (L, B, 4H)
    w_hh_f, w_hh_b = layer["w_hh_f"], layer["w_hh_b"]

    def cell(g, h, c, w_hh):
        gates = g + jnp.dot(h, w_hh)
        i, f, gg, o = jnp.split(gates, 4, axis=-1)
        i = jax.nn.sigmoid(i)
        f = jax.nn.sigmoid(f)
        gg = jnp.tanh(gg)
        o = jax.nn.sigmoid(o)
        c = f * c + i * gg
        h = o * jnp.tanh(c)
        return h, c

    def step(carry, inp):
        hf, cf, hb, cb = carry
        gf, gb = inp
        hf, cf = cell(gf, hf, cf, w_hh_f)
        hb, cb = cell(gb, hb, cb, w_hh_b)
        return (hf, cf, hb, cb), (hf, hb)

    z = jnp.zeros((B, H), jnp.float32)
    _, (hs_f, hs_b) = jax.lax.scan(step, (z, z, z, z), (pre_f, pre_b))
    hs_f = jnp.transpose(hs_f, (1, 0, 2))
    hs_b = jnp.transpose(hs_b, (1, 0, 2))[:, ::-1, :]
    return jnp.concatenate([hs_f, hs_b], axis=-1)


def bilstm(lstm_p, x):
    out = x
    for layer in lstm_p:
        out = bilstm_layer(out, layer)
    return out


def encoder_layer(x, lp, n_head=8):
    # TODO(synk): EncoderLayer is undefined in the reference; standard post-LN
    # transformer encoder layer (MHA + FFN), dropout = identity (eval).
    B, L, D = x.shape
    xf = x.reshape(B * L, D)
    qkv = pallas_linear(xf, lp["wqkv"], lp["bqkv"])            # fused QKV (M, 3D)
    q = qkv[:, :D].reshape(B, L, D)
    k = qkv[:, D:2 * D].reshape(B, L, D)
    v = qkv[:, 2 * D:].reshape(B, L, D)
    o = pallas_mha(q, k, v, n_head).reshape(B * L, D)
    # output projection + residual + LayerNorm fused
    x1 = pallas_linear_add_ln(o, lp["wo"], lp["bo"], xf, lp["ln1_g"], lp["ln1_b"])
    ff = pallas_linear(x1, lp["w1"], lp["b1"], act="relu")
    # second FFN matmul + residual + LayerNorm fused
    x2 = pallas_linear_add_ln(ff, lp["w2"], lp["b2"], x1, lp["ln2_g"], lp["ln2_b"])
    return x2.reshape(B, L, D), None


# ----------------------------------------------------------------------------
# Model forward
# ----------------------------------------------------------------------------
def forward(p, hidden_states, tokens):
    B, L, E = hidden_states.shape
    D = p["conv1_w"].shape[1]                                  # hidden_dim

    # ---- main path: conv stack over (surrogate) BERT embeddings ----
    x = jnp.transpose(hidden_states, (0, 2, 1))                # (B, 768, L) NCL
    patches, L1 = im2col_1d(x, k=3, stride=1, pad=1)
    x = pallas_linear(patches, p["conv1_w"], p["conv1_b"], act="relu")
    x = x.reshape(B, L1, D).transpose(0, 2, 1)                 # (B, D, L1)
    patches, L2 = im2col_1d(x, k=7, stride=3, pad=2)
    x = pallas_linear(patches, p["conv2_w"], p["conv2_b"], act="relu")
    x = x.reshape(B, L2, D).transpose(0, 2, 1)                 # (B, D, L2)
    x = maxpool1d(x, 2, 2)                                     # (B, D, L3)
    L3 = x.shape[-1]
    x = jnp.transpose(x, (0, 2, 1))                            # (B, L3, D)

    # ---- fuse path: hand-crafted nucleotide encodings ----
    # TODO(synk): Binary/NCP/EIIP encoders are undefined in the reference; standard
    # one-hot / NCP / EIIP lookup tables are used.
    onehot = p["tbl_binary"][tokens].transpose(0, 2, 1)        # (B, 4, L)
    eiip = p["tbl_eiip"][tokens].transpose(0, 2, 1)            # (B, 1, L)
    ncp = p["tbl_ncp"][tokens].transpose(0, 2, 1)              # (B, 3, L)
    enac = enac_encode(tokens)                                 # (B, 4, L)
    x_fuse = jnp.concatenate([onehot, eiip, ncp, enac], axis=1)  # (B, 12, L)
    x_fuse = multi_channel_attention(p, x_fuse, L3)            # (B, D, L3)
    x_fuse = jnp.transpose(x_fuse, (0, 2, 1))                  # (B, L3, D)

    # ---- bi-LSTMs ----
    x_fuse = bilstm(p["bilstm_fuse"], x_fuse)
    x = bilstm(p["bilstm"], x)

    # ---- transformer encoder stacks ----
    for lp in p["layers"]:
        x, _ = encoder_layer(x, lp)
    for lp in p["fuse_layers"]:
        x_fuse, _ = encoder_layer(x_fuse, lp)

    # ---- fusion + pooling + classifier head ----
    x_final = x * 0.9 + x_fuse * 0.1                           # (B, L3, D)
    x_final = maxpool1d(jnp.transpose(x_final, (0, 2, 1)), 2, 2, pad=1, ceil_mode=True)
    x_final = jnp.transpose(x_final, (0, 2, 1))                # (B, Lp, D)
    x_final = x_final[:, x_final.shape[1] // 2, :]             # (B, D)

    return pallas_head(x_final, p)                             # (B,)


# ----------------------------------------------------------------------------
# Deterministic parameter init (shapes per MCAMEFBERT.__init__)
# ----------------------------------------------------------------------------
def init_params(key, emb_dim=768, hidden=256, n_layers=6):
    keys = iter(jax.random.split(key, 2048))

    def lin(kin, kout):
        w = jax.random.normal(next(keys), (kin, kout), jnp.float32) / math.sqrt(kin)
        return w, jnp.zeros((kout,), jnp.float32)

    p = {}
    p["conv1_w"], p["conv1_b"] = lin(emb_dim * 3, hidden)      # Conv1d(768,256,k=3)
    p["conv2_w"], p["conv2_b"] = lin(hidden * 7, hidden)       # Conv1d(256,256,k=7)

    # encoding tables, row order = A, T, C, G, '-'
    p["tbl_binary"] = jnp.array([[1, 0, 0, 0], [0, 1, 0, 0], [0, 0, 1, 0],
                                 [0, 0, 0, 1], [0, 0, 0, 0]], jnp.float32)
    p["tbl_eiip"] = jnp.array([[0.1260], [0.1335], [0.1340], [0.0806], [0.0]], jnp.float32)
    p["tbl_ncp"] = jnp.array([[1, 1, 1], [0, 0, 1], [0, 1, 0],
                              [1, 0, 0], [0, 0, 0]], jnp.float32)

    p["mca_ca_w"], p["mca_ca_b"] = lin(12, 12)
    p["mca_proj_w"], p["mca_proj_b"] = lin(12, hidden)

    def lstm_params():
        H = hidden // 2
        layers = []
        for _ in range(3):
            layer = {}
            for d in ("f", "b"):
                layer[f"w_ih_{d}"], _ = lin(hidden, 4 * H)
                layer[f"w_hh_{d}"], _ = lin(H, 4 * H)
                layer[f"b_{d}"] = jnp.zeros((4 * H,), jnp.float32)
            layers.append(layer)
        return layers

    p["bilstm"] = lstm_params()
    p["bilstm_fuse"] = lstm_params()

    def enc_layer():
        lp = {}
        wq, bq = lin(hidden, hidden)
        wk, bk = lin(hidden, hidden)
        wv, bv = lin(hidden, hidden)
        lp["wqkv"] = jnp.concatenate([wq, wk, wv], axis=1)     # fused QKV weight
        lp["bqkv"] = jnp.concatenate([bq, bk, bv], axis=0)
        lp["wo"], lp["bo"] = lin(hidden, hidden)
        lp["w1"], lp["b1"] = lin(hidden, hidden)
        lp["w2"], lp["b2"] = lin(hidden, hidden)
        lp["ln1_g"] = jnp.ones((hidden,), jnp.float32)
        lp["ln1_b"] = jnp.zeros((hidden,), jnp.float32)
        lp["ln2_g"] = jnp.ones((hidden,), jnp.float32)
        lp["ln2_b"] = jnp.zeros((hidden,), jnp.float32)
        return lp

    p["layers"] = [enc_layer() for _ in range(n_layers)]
    p["fuse_layers"] = [enc_layer() for _ in range(n_layers)]

    p["fc1_w"], p["fc1_b"] = lin(hidden, 128)
    p["blk_ln1_g"], p["blk_ln1_b"] = jnp.ones((128,), jnp.float32), jnp.zeros((128,), jnp.float32)
    p["fc2_w"], p["fc2_b"] = lin(128, 64)
    p["blk_ln2_g"], p["blk_ln2_b"] = jnp.ones((64,), jnp.float32), jnp.zeros((64,), jnp.float32)
    p["fc3_w"], p["fc3_b"] = lin(64, 32)
    p["blk_ln3_g"], p["blk_ln3_b"] = jnp.ones((32,), jnp.float32), jnp.zeros((32,), jnp.float32)
    p["fc4_w"], p["fc4_b"] = lin(32, 1)
    return p


# ----------------------------------------------------------------------------
if __name__ == "__main__":
    B = 2
    SEQ = 24          # params['seq_len']
    EMB = 768
    HID = 256

    key = jax.random.PRNGKey(0)
    k_tok, k_emb, k_pos, k_par = jax.random.split(key, 4)

    # deterministic synthetic DNA text
    tok = jax.random.randint(k_tok, (B, SEQ), 0, 4)
    bases = "ATCG"
    text = ["".join(bases[int(t)] for t in row) for row in np.array(tok)]

    encoded = encode_sequence_1mer(text, SEQ)                  # (B, SEQ) ints
    tokens = jnp.asarray(encoded, jnp.int32)

    # TODO(synk): pretrained DNABERT-2 encoder + tokenizer replaced by a deterministic
    # embedding-table surrogate producing hidden_states of the same shape (B, SEQ, 768).
    emb_table = jax.random.normal(k_emb, (5, EMB), jnp.float32) * 0.1
    pos_table = jax.random.normal(k_pos, (SEQ, EMB), jnp.float32) * 0.1
    hidden_states = emb_table[tokens] + pos_table[None]

    params = init_params(k_par, EMB, HID, n_layers=6)

    fwd = jax.jit(forward)
    out = fwd(params, hidden_states, tokens)
    out = jax.block_until_ready(out)

    assert out.shape == (B,), out.shape
    assert bool(jnp.all(jnp.isfinite(out)))
    assert bool(jnp.all((out >= 0.0) & (out <= 1.0)))
    print("KERNEL_OK")
</pallas_src>

<mosaic_0001>
module attributes {stable_mosaic.version = 11 : i64} {
  func.func @kernel(%arg0: i32, %arg1: memref<48x2304xbf16, #tpu.memory_space<vmem>>, %arg2: memref<2304x256xbf16, #tpu.memory_space<vmem>>, %arg3: memref<1x256xf32, #tpu.memory_space<vmem>>, %arg4: memref<48x256xf32, #tpu.memory_space<vmem>>) attributes {dimension_semantics = [#tpu.dimension_semantics<parallel>], iteration_bounds = array<i64: 1>, scalar_prefetch = 0 : i64, scratch_operands = 0 : i64, tpu.core_type = #tpu.core_type<tc>, window_params = [{transform_indices = @transform_0, window_bounds = array<i64: 48, 2304>}, {pipeline_mode = #tpu.pipeline_mode<synchronous>, transform_indices = @transform_1, window_bounds = array<i64: 2304, 256>}, {pipeline_mode = #tpu.pipeline_mode<synchronous>, transform_indices = @transform_2, window_bounds = array<i64: 1, 256>}, {transform_indices = @transform_3, window_bounds = array<i64: 48, 256>}]} {
    %c0 = arith.constant 0 : index
    %c0_0 = arith.constant 0 : index
    %0 = vector.load %arg1[%c0, %c0_0] : memref<48x2304xbf16, #tpu.memory_space<vmem>>, vector<48x2304xbf16>
    %c0_1 = arith.constant 0 : index
    %c0_2 = arith.constant 0 : index
    %1 = vector.load %arg2[%c0_1, %c0_2] : memref<2304x256xbf16, #tpu.memory_space<vmem>>, vector<2304x256xbf16>
    %cst = arith.constant dense<0.000000e+00> : vector<48x256xf32>
    %2 = tpu.matmul %0, %1, %cst {dimension_numbers = #tpu.dot_dimension_numbers<[1], [0], [0], [1], [0, 0, 1, 1], [], []>} : vector<48x2304xbf16>, vector<2304x256xbf16>, vector<48x256xf32> -> vector<48x256xf32>
    %c0_3 = arith.constant 0 : index
    %c0_4 = arith.constant 0 : index
    %3 = vector.load %arg3[%c0_3, %c0_4] : memref<1x256xf32, #tpu.memory_space<vmem>>, vector<1x256xf32>
    %4 = vector.broadcast %3 : vector<1x256xf32> to vector<48x256xf32>
    %5 = arith.addf %2, %4 : vector<48x256xf32>
    %cst_5 = arith.constant 0.000000e+00 : f32
    %6 = vector.broadcast %cst_5 : f32 to vector<48x256xf32>
    %7 = arith.maximumf %5, %6 : vector<48x256xf32>
    %c0_6 = arith.constant 0 : index
    %c0_7 = arith.constant 0 : index
    %8 = vector.load %arg4[%c0_6, %c0_7] : memref<48x256xf32, #tpu.memory_space<vmem>>, vector<48x256xf32>
    tpu.vector_store %arg4[%c0_6, %c0_7], %7 {strides = array<i32>} : memref<48x256xf32, #tpu.memory_space<vmem>>, vector<48x256xf32>,
    return
  }
  func.func @transform_0(%arg0: i32) -> (i32, i32) {
    %c0_i32 = arith.constant 0 : i32
    %c0_i32_0 = arith.constant 0 : i32
    return %arg0, %c0_i32 : i32, i32
  }
  func.func @transform_1(%arg0: i32) -> (i32, i32) {
    %c0_i32 = arith.constant 0 : i32
    %c0_i32_0 = arith.constant 0 : i32
    %c0_i32_1 = arith.constant 0 : i32
    return %c0_i32, %c0_i32_0 : i32, i32
  }
  func.func @transform_2(%arg0: i32) -> (i32, i32) {
    %c0_i32 = arith.constant 0 : i32
    %c0_i32_0 = arith.constant 0 : i32
    %c0_i32_1 = arith.constant 0 : i32
    return %c0_i32, %c0_i32_0 : i32, i32
  }
  func.func @transform_3(%arg0: i32) -> (i32, i32) {
    %c0_i32 = arith.constant 0 : i32
    %c0_i32_0 = arith.constant 0 : i32
    return %arg0, %c0_i32 : i32, i32
  }
}

module attributes {stable_mosaic.version = 11 : i64} {
  func.func @kernel(%arg0: i32, %arg1: memref<16x1792xbf16, #tpu.memory_space<vmem>>, %arg2: memref<1792x256xbf16, #tpu.memory_space<vmem>>, %arg3: memref<1x256xf32, #tpu.memory_space<vmem>>, %arg4: memref<16x256xf32, #tpu.memory_space<vmem>>) attributes {dimension_semantics = [#tpu.dimension_semantics<parallel>], iteration_bounds = array<i64: 1>, scalar_prefetch = 0 : i64, scratch_operands = 0 : i64, tpu.core_type = #tpu.core_type<tc>, window_params = [{transform_indices = @transform_0, window_bounds = array<i64: 16, 1792>}, {pipeline_mode = #tpu.pipeline_mode<synchronous>, transform_indices = @transform_1, window_bounds = array<i64: 1792, 256>}, {pipeline_mode = #tpu.pipeline_mode<synchronous>, transform_indices = @transform_2, window_bounds = array<i64: 1, 256>}, {transform_indices = @transform_3, window_bounds = array<i64: 16, 256>}]} {
    %c0 = arith.constant 0 : index
    %c0_0 = arith.constant 0 : index
    %0 = vector.load %arg1[%c0, %c0_0] : memref<16x1792xbf16, #tpu.memory_space<vmem>>, vector<16x1792xbf16>
    %c0_1 = arith.constant 0 : index
    %c0_2 = arith.constant 0 : index
    %1 = vector.load %arg2[%c0_1, %c0_2] : memref<1792x256xbf16, #tpu.memory_space<vmem>>, vector<1792x256xbf16>
    %cst = arith.constant dense<0.000000e+00> : vector<16x256xf32>
    %2 = tpu.matmul %0, %1, %cst {dimension_numbers = #tpu.dot_dimension_numbers<[1], [0], [0], [1], [0, 0, 1, 1], [], []>} : vector<16x1792xbf16>, vector<1792x256xbf16>, vector<16x256xf32> -> vector<16x256xf32>
    %c0_3 = arith.constant 0 : index
    %c0_4 = arith.constant 0 : index
    %3 = vector.load %arg3[%c0_3, %c0_4] : memref<1x256xf32, #tpu.memory_space<vmem>>, vector<1x256xf32>
    %4 = vector.broadcast %3 : vector<1x256xf32> to vector<16x256xf32>
    %5 = arith.addf %2, %4 : vector<16x256xf32>
    %cst_5 = arith.constant 0.000000e+00 : f32
    %6 = vector.broadcast %cst_5 : f32 to vector<16x256xf32>
    %7 = arith.maximumf %5, %6 : vector<16x256xf32>
    %c0_6 = arith.constant 0 : index
    %c0_7 = arith.constant 0 : index
    %8 = vector.load %arg4[%c0_6, %c0_7] : memref<16x256xf32, #tpu.memory_space<vmem>>, vector<16x256xf32>
    tpu.vector_store %arg4[%c0_6, %c0_7], %7 {strides = array<i32>} : memref<16x256xf32, #tpu.memory_space<vmem>>, vector<16x256xf32>,
    return
  }
  func.func @transform_0(%arg0: i32) -> (i32, i32) {
    %c0_i32 = arith.constant 0 : i32
    %c0_i32_0 = arith.constant 0 : i32
    return %arg0, %c0_i32 : i32, i32
  }
  func.func @transform_1(%arg0: i32) -> (i32, i32) {
    %c0_i32 = arith.constant 0 : i32
    %c0_i32_0 = arith.constant 0 : i32
    %c0_i32_1 = arith.constant 0 : i32
    return %c0_i32, %c0_i32_0 : i32, i32
  }
  func.func @transform_2(%arg0: i32) -> (i32, i32) {
    %c0_i32 = arith.constant 0 : i32
    %c0_i32_0 = arith.constant 0 : i32
    %c0_i32_1 = arith.constant 0 : i32
    return %c0_i32, %c0_i32_0 : i32, i32
  }
  func.func @transform_3(%arg0: i32) -> (i32, i32) {
    %c0_i32 = arith.constant 0 : i32
    %c0_i32_0 = arith.constant 0 : i32
    return %arg0, %c0_i32 : i32, i32
  }
}

module attributes {stable_mosaic.version = 11 : i64} {
  func.func @kernel(%arg0: i32, %arg1: memref<8x256xbf16, #tpu.memory_space<vmem>>, %arg2: memref<256x1024xbf16, #tpu.memory_space<vmem>>, %arg3: memref<1x1024xf32, #tpu.memory_space<vmem>>, %arg4: memref<8x1024xf32, #tpu.memory_space<vmem>>) attributes {dimension_semantics = [#tpu.dimension_semantics<parallel>], iteration_bounds = array<i64: 1>, scalar_prefetch = 0 : i64, scratch_operands = 0 : i64, tpu.core_type = #tpu.core_type<tc>, window_params = [{transform_indices = @transform_0, window_bounds = array<i64: 8, 256>}, {pipeline_mode = #tpu.pipeline_mode<synchronous>, transform_indices = @transform_1, window_bounds = array<i64: 256, 1024>}, {pipeline_mode = #tpu.pipeline_mode<synchronous>, transform_indices = @transform_2, window_bounds = array<i64: 1, 1024>}, {transform_indices = @transform_3, window_bounds = array<i64: 8, 1024>}]} {
    %c0 = arith.constant 0 : index
    %c0_0 = arith.constant 0 : index
    %0 = vector.load %arg1[%c0, %c0_0] : memref<8x256xbf16, #tpu.memory_space<vmem>>, vector<8x256xbf16>
    %c0_1 = arith.constant 0 : index
    %c0_2 = arith.constant 0 : index
    %1 = vector.load %arg2[%c0_1, %c0_2] : memref<256x1024xbf16, #tpu.memory_space<vmem>>, vector<256x1024xbf16>
    %cst = arith.constant dense<0.000000e+00> : vector<8x1024xf32>
    %2 = tpu.matmul %0, %1, %cst {dimension_numbers = #tpu.dot_dimension_numbers<[1], [0], [0], [1], [0, 0, 1, 1], [], []>} : vector<8x256xbf16>, vector<256x1024xbf16>, vector<8x1024xf32> -> vector<8x1024xf32>
    %c0_3 = arith.constant 0 : index
    %c0_4 = arith.constant 0 : index
    %3 = vector.load %arg3[%c0_3, %c0_4] : memref<1x1024xf32, #tpu.memory_space<vmem>>, vector<1x1024xf32>
    %4 = vector.broadcast %3 : vector<1x1024xf32> to vector<8x1024xf32>
    %5 = arith.addf %2, %4 : vector<8x1024xf32>
    %c0_5 = arith.constant 0 : index
    %c0_6 = arith.constant 0 : index
    %6 = vector.load %arg4[%c0_5, %c0_6] : memref<8x1024xf32, #tpu.memory_space<vmem>>, vector<8x1024xf32>
    tpu.vector_store %arg4[%c0_5, %c0_6], %5 {strides = array<i32>} : memref<8x1024xf32, #tpu.memory_space<vmem>>, vector<8x1024xf32>,
    return
  }
  func.func @transform_0(%arg0: i32) -> (i32, i32) {
    %c0_i32 = arith.constant 0 : i32
    %c0_i32_0 = arith.constant 0 : i32
    return %arg0, %c0_i32 : i32, i32
  }
  func.func @transform_1(%arg0: i32) -> (i32, i32) {
    %c0_i32 = arith.constant 0 : i32
    %c0_i32_0 = arith.constant 0 : i32
    %c0_i32_1 = arith.constant 0 : i32
    return %c0_i32, %c0_i32_0 : i32, i32
  }
  func.func @transform_2(%arg0: i32) -> (i32, i32) {
    %c0_i32 = arith.constant 0 : i32
    %c0_i32_0 = arith.constant 0 : i32
    %c0_i32_1 = arith.constant 0 : i32
    return %c0_i32, %c0_i32_0 : i32, i32
  }
  func.func @transform_3(%arg0: i32) -> (i32, i32) {
    %c0_i32 = arith.constant 0 : i32
    %c0_i32_0 = arith.constant 0 : i32
    return %arg0, %c0_i32 : i32, i32
  }
}

module attributes {stable_mosaic.version = 11 : i64} {
  func.func @kernel(%arg0: i32, %arg1: memref<8x256xbf16, #tpu.memory_space<vmem>>, %arg2: memref<256x768xbf16, #tpu.memory_space<vmem>>, %arg3: memref<1x768xf32, #tpu.memory_space<vmem>>, %arg4: memref<8x768xf32, #tpu.memory_space<vmem>>) attributes {dimension_semantics = [#tpu.dimension_semantics<parallel>], iteration_bounds = array<i64: 1>, scalar_prefetch = 0 : i64, scratch_operands = 0 : i64, tpu.core_type = #tpu.core_type<tc>, window_params = [{transform_indices = @transform_0, window_bounds = array<i64: 8, 256>}, {pipeline_mode = #tpu.pipeline_mode<synchronous>, transform_indices = @transform_1, window_bounds = array<i64: 256, 768>}, {pipeline_mode = #tpu.pipeline_mode<synchronous>, transform_indices = @transform_2, window_bounds = array<i64: 1, 768>}, {transform_indices = @transform_3, window_bounds = array<i64: 8, 768>}]} {
    %c0 = arith.constant 0 : index
    %c0_0 = arith.constant 0 : index
    %0 = vector.load %arg1[%c0, %c0_0] : memref<8x256xbf16, #tpu.memory_space<vmem>>, vector<8x256xbf16>
    %c0_1 = arith.constant 0 : index
    %c0_2 = arith.constant 0 : index
    %1 = vector.load %arg2[%c0_1, %c0_2] : memref<256x768xbf16, #tpu.memory_space<vmem>>, vector<256x768xbf16>
    %cst = arith.constant dense<0.000000e+00> : vector<8x768xf32>
    %2 = tpu.matmul %0, %1, %cst {dimension_numbers = #tpu.dot_dimension_numbers<[1], [0], [0], [1], [0, 0, 1, 1], [], []>} : vector<8x256xbf16>, vector<256x768xbf16>, vector<8x768xf32> -> vector<8x768xf32>
    %c0_3 = arith.constant 0 : index
    %c0_4 = arith.constant 0 : index
    %3 = vector.load %arg3[%c0_3, %c0_4] : memref<1x768xf32, #tpu.memory_space<vmem>>, vector<1x768xf32>
    %4 = vector.broadcast %3 : vector<1x768xf32> to vector<8x768xf32>
    %5 = arith.addf %2, %4 : vector<8x768xf32>
    %c0_5 = arith.constant 0 : index
    %c0_6 = arith.constant 0 : index
    %6 = vector.load %arg4[%c0_5, %c0_6] : memref<8x768xf32, #tpu.memory_space<vmem>>, vector<8x768xf32>
    tpu.vector_store %arg4[%c0_5, %c0_6], %5 {strides = array<i32>} : memref<8x768xf32, #tpu.memory_space<vmem>>, vector<8x768xf32>,
    return
  }
  func.func @transform_0(%arg0: i32) -> (i32, i32) {
    %c0_i32 = arith.constant 0 : i32
    %c0_i32_0 = arith.constant 0 : i32
    return %arg0, %c0_i32 : i32, i32
  }
  func.func @transform_1(%arg0: i32) -> (i32, i32) {
    %c0_i32 = arith.constant 0 : i32
    %c0_i32_0 = arith.constant 0 : i32
    %c0_i32_1 = arith.constant 0 : i32
    return %c0_i32, %c0_i32_0 : i32, i32
  }
  func.func @transform_2(%arg0: i32) -> (i32, i32) {
    %c0_i32 = arith.constant 0 : i32
    %c0_i32_0 = arith.constant 0 : i32
    %c0_i32_1 = arith.constant 0 : i32
    return %c0_i32, %c0_i32_0 : i32, i32
  }
  func.func @transform_3(%arg0: i32) -> (i32, i32) {
    %c0_i32 = arith.constant 0 : i32
    %c0_i32_0 = arith.constant 0 : i32
    return %arg0, %c0_i32 : i32, i32
  }
}

module attributes {stable_mosaic.version = 11 : i64} {
  func.func @kernel(%arg0: i32, %arg1: memref<1x4x256xbf16, #tpu.memory_space<vmem>>, %arg2: memref<1x4x256xbf16, #tpu.memory_space<vmem>>, %arg3: memref<1x4x256xbf16, #tpu.memory_space<vmem>>, %arg4: memref<1x4x256xf32, #tpu.memory_space<vmem>>) attributes {dimension_semantics = [#tpu.dimension_semantics<parallel>], iteration_bounds = array<i64: 2>, scalar_prefetch = 0 : i64, scratch_operands = 0 : i64, tpu.core_type = #tpu.core_type<tc>, window_params = [{transform_indices = @transform_0, window_bounds = array<i64: 1, 4, 256>}, {transform_indices = @transform_1, window_bounds = array<i64: 1, 4, 256>}, {transform_indices = @transform_2, window_bounds = array<i64: 1, 4, 256>}, {transform_indices = @transform_3, window_bounds = array<i64: 1, 4, 256>}]} {
    %c0 = arith.constant 0 : index
    %c0_0 = arith.constant 0 : index
    %c0_1 = arith.constant 0 : index
    %0 = vector.load %arg1[%c0, %c0_0, %c0_1] : memref<1x4x256xbf16, #tpu.memory_space<vmem>>, vector<1x4x256xbf16>
    %1 = vector.shape_cast %0 : vector<1x4x256xbf16> to vector<4x256xbf16>
    %c0_2 = arith.constant 0 : index
    %c0_3 = arith.constant 0 : index
    %c0_4 = arith.constant 0 : index
    %2 = vector.load %arg2[%c0_2, %c0_3, %c0_4] : memref<1x4x256xbf16, #tpu.memory_space<vmem>>, vector<1x4x256xbf16>
    %3 = vector.shape_cast %2 : vector<1x4x256xbf16> to vector<4x256xbf16>
    %c0_5 = arith.constant 0 : index
    %c0_6 = arith.constant 0 : index
    %c0_7 = arith.constant 0 : index
    %4 = vector.load %arg3[%c0_5, %c0_6, %c0_7] : memref<1x4x256xbf16, #tpu.memory_space<vmem>>, vector<1x4x256xbf16>
    %5 = vector.shape_cast %4 : vector<1x4x256xbf16> to vector<4x256xbf16>
    %6 = vector.extract_strided_slice %1 {offsets = [0, 0], sizes = [4, 32], strides = [1, 1]} : vector<4x256xbf16> to vector<4x32xbf16>
    %7 = vector.extract_strided_slice %3 {offsets = [0, 0], sizes = [4, 32], strides = [1, 1]} : vector<4x256xbf16> to vector<4x32xbf16>
    %8 = vector.extract_strided_slice %5 {offsets = [0, 0], sizes = [4, 32], strides = [1, 1]} : vector<4x256xbf16> to vector<4x32xbf16>
    %cst = arith.constant dense<0.000000e+00> : vector<4x4xf32>
    %9 = tpu.matmul %6, %7, %cst {dimension_numbers = #tpu.dot_dimension_numbers<[1], [1], [0], [0], [0, 0, 1, 0], [], []>} : vector<4x32xbf16>, vector<4x32xbf16>, vector<4x4xf32> -> vector<4x4xf32>
    %cst_8 = arith.constant 0.176776692 : f32
    %10 = vector.broadcast %cst_8 : f32 to vector<4x4xf32>
    %11 = arith.mulf %9, %10 : vector<4x4xf32>
    %cst_9 = arith.constant dense<0xFF800000> : vector<4xf32>
    %12 = vector.multi_reduction <maximumf>, %11, %cst_9 [1] : vector<4x4xf32> to vector<4xf32>
    %13 = vector.shape_cast %12 : vector<4xf32> to vector<4x1xf32>
    %14 = vector.broadcast %13 : vector<4x1xf32> to vector<4x4xf32>
    %15 = arith.subf %11, %14 : vector<4x4xf32>
    %16 = math.exp %15 : vector<4x4xf32>
    %cst_10 = arith.constant dense<0.000000e+00> : vector<4xf32>
    %17 = vector.multi_reduction <add>, %16, %cst_10 [1] : vector<4x4xf32> to vector<4xf32>
    %18 = vector.shape_cast %17 : vector<4xf32> to vector<4x1xf32>
    %19 = vector.broadcast %18 : vector<4x1xf32> to vector<4x4xf32>
    %20 = arith.divf %16, %19 : vector<4x4xf32>
    %21 = arith.truncf %20 : vector<4x4xf32> to vector<4x4xbf16>
    %cst_11 = arith.constant dense<0.000000e+00> : vector<4x32xf32>
    %22 = tpu.matmul %21, %8, %cst_11 {dimension_numbers = #tpu.dot_dimension_numbers<[1], [0], [0], [1], [0, 0, 1, 1], [], []>} : vector<4x4xbf16>, vector<4x32xbf16>, vector<4x32xf32> -> vector<4x32xf32>
    %23 = vector.extract_strided_slice %1 {offsets = [0, 32], sizes = [4, 32], strides = [1, 1]} : vector<4x256xbf16> to vector<4x32xbf16>
    %24 = vector.extract_strided_slice %3 {offsets = [0, 32], sizes = [4, 32], strides = [1, 1]} : vector<4x256xbf16> to vector<4x32xbf16>
    %25 = vector.extract_strided_slice %5 {offsets = [0, 32], sizes = [4, 32], strides = [1, 1]} : vector<4x256xbf16> to vector<4x32xbf16>
    %cst_12 = arith.constant dense<0.000000e+00> : vector<4x4xf32>
    %26 = tpu.matmul %23, %24, %cst_12 {dimension_numbers = #tpu.dot_dimension_numbers<[1], [1], [0], [0], [0, 0, 1, 0], [], []>} : vector<4x32xbf16>, vector<4x32xbf16>, vector<4x4xf32> -> vector<4x4xf32>
    %cst_13 = arith.constant 0.176776692 : f32
    %27 = vector.broadcast %cst_13 : f32 to vector<4x4xf32>
    %28 = arith.mulf %26, %27 : vector<4x4xf32>
    %cst_14 = arith.constant dense<0xFF800000> : vector<4xf32>
    %29 = vector.multi_reduction <maximumf>, %28, %cst_14 [1] : vector<4x4xf32> to vector<4xf32>
    %30 = vector.shape_cast %29 : vector<4xf32> to vector<4x1xf32>
    %31 = vector.broadcast %30 : vector<4x1xf32> to vector<4x4xf32>
    %32 = arith.subf %28, %31 : vector<4x4xf32>
    %33 = math.exp %32 : vector<4x4xf32>
    %cst_15 = arith.constant dense<0.000000e+00> : vector<4xf32>
    %34 = vector.multi_reduction <add>, %33, %cst_15 [1] : vector<4x4xf32> to vector<4xf32>
    %35 = vector.shape_cast %34 : vector<4xf32> to vector<4x1xf32>
    %36 = vector.broadcast %35 : vector<4x1xf32> to vector<4x4xf32>
    %37 = arith.divf %33, %36 : vector<4x4xf32>
    %38 = arith.truncf %37 : vector<4x4xf32> to vector<4x4xbf16>
    %cst_16 = arith.constant dense<0.000000e+00> : vector<4x32xf32>
    %39 = tpu.matmul %38, %25, %cst_16 {dimension_numbers = #tpu.dot_dimension_numbers<[1], [0], [0], [1], [0, 0, 1, 1], [], []>} : vector<4x4xbf16>, vector<4x32xbf16>, vector<4x32xf32> -> vector<4x32xf32>
    %40 = vector.extract_strided_slice %1 {offsets = [0, 64], sizes = [4, 32], strides = [1, 1]} : vector<4x256xbf16> to vector<4x32xbf16>
    %41 = vector.extract_strided_slice %3 {offsets = [0, 64], sizes = [4, 32], strides = [1, 1]} : vector<4x256xbf16> to vector<4x32xbf16>
    %42 = vector.extract_strided_slice %5 {offsets = [0, 64], sizes = [4, 32], strides = [1, 1]} : vector<4x256xbf16> to vector<4x32xbf16>
    %cst_17 = arith.constant dense<0.000000e+00> : vector<4x4xf32>
    %43 = tpu.matmul %40, %41, %cst_17 {dimension_numbers = #tpu.dot_dimension_numbers<[1], [1], [0], [0], [0, 0, 1, 0], [], []>} : vector<4x32xbf16>, vector<4x32xbf16>, vector<4x4xf32> -> vector<4x4xf32>
    %cst_18 = arith.constant 0.176776692 : f32
    %44 = vector.broadcast %cst_18 : f32 to vector<4x4xf32>
    %45 = arith.mulf %43, %44 : vector<4x4xf32>
    %cst_19 = arith.constant dense<0xFF800000> : vector<4xf32>
    %46 = vector.multi_reduction <maximumf>, %45, %cst_19 [1] : vector<4x4xf32> to vector<4xf32>
    %47 = vector.shape_cast %46 : vector<4xf32> to vector<4x1xf32>
    %48 = vector.broadcast %47 : vector<4x1xf32> to vector<4x4xf32>
    %49 = arith.subf %45, %48 : vector<4x4xf32>
    %50 = math.exp %49 : vector<4x4xf32>
    %cst_20 = arith.constant dense<0.000000e+00> : vector<4xf32>
    %51 = vector.multi_reduction <add>, %50, %cst_20 [1] : vector<4x4xf32> to vector<4xf32>
    %52 = vector.shape_cast %51 : vector<4xf32> to vector<4x1xf32>
    %53 = vector.broadcast %52 : vector<4x1xf32> to vector<4x4xf32>
    %54 = arith.divf %50, %53 : vector<4x4xf32>
    %55 = arith.truncf %54 : vector<4x4xf32> to vector<4x4xbf16>
    %cst_21 = arith.constant dense<0.000000e+00> : vector<4x32xf32>
    %56 = tpu.matmul %55, %42, %cst_21 {dimension_numbers = #tpu.dot_dimension_numbers<[1], [0], [0], [1], [0, 0, 1, 1], [], []>} : vector<4x4xbf16>, vector<4x32xbf16>, vector<4x32xf32> -> vector<4x32xf32>
    %57 = vector.extract_strided_slice %1 {offsets = [0, 96], sizes = [4, 32], strides = [1, 1]} : vector<4x256xbf16> to vector<4x32xbf16>
    %58 = vector.extract_strided_slice %3 {offsets = [0, 96], sizes = [4, 32], strides = [1, 1]} : vector<4x256xbf16> to vector<4x32xbf16>
    %59 = vector.extract_strided_slice %5 {offsets = [0, 96], sizes = [4, 32], strides = [1, 1]} : vector<4x256xbf16> to vector<4x32xbf16>
    %cst_22 = arith.constant dense<0.000000e+00> : vector<4x4xf32>
    %60 = tpu.matmul %57, %58, %cst_22 {dimension_numbers = #tpu.dot_dimension_numbers<[1], [1], [0], [0], [0, 0, 1, 0], [], []>} : vector<4x32xbf16>, vector<4x32xbf16>, vector<4x4xf32> -> vector<4x4xf32>
    %cst_23 = arith.constant 0.176776692 : f32
    %61 = vector.broadcast %cst_23 : f32 to vector<4x4xf32>
    %62 = arith.mulf %60, %61 : vector<4x4xf32>
    %cst_24 = arith.constant dense<0xFF800000> : vector<4xf32>
    %63 = vector.multi_reduction <maximumf>, %62, %cst_24 [1] : vector<4x4xf32> to vector<4xf32>
    %64 = vector.shape_cast %63 : vector<4xf32> to vector<4x1xf32>
    %65 = vector.broadcast %64 : vector<4x1xf32> to vector<4x4xf32>
    %66 = arith.subf %62, %65 : vector<4x4xf32>
    %67 = math.exp %66 : vector<4x4xf32>
    %cst_25 = arith.constant dense<0.000000e+00> : vector<4xf32>
    %68 = vector.multi_reduction <add>, %67, %cst_25 [1] : vector<4x4xf32> to vector<4xf32>
    %69 = vector.shape_cast %68 : vector<4xf32> to vector<4x1xf32>
    %70 = vector.broadcast %69 : vector<4x1xf32> to vector<4x4xf32>
    %71 = arith.divf %67, %70 : vector<4x4xf32>
    %72 = arith.truncf %71 : vector<4x4xf32> to vector<4x4xbf16>
    %cst_26 = arith.constant dense<0.000000e+00> : vector<4x32xf32>
    %73 = tpu.matmul %72, %59, %cst_26 {dimension_numbers = #tpu.dot_dimension_numbers<[1], [0], [0], [1], [0, 0, 1, 1], [], []>} : vector<4x4xbf16>, vector<4x32xbf16>, vector<4x32xf32> -> vector<4x32xf32>
    %74 = vector.extract_strided_slice %1 {offsets = [0, 128], sizes = [4, 32], strides = [1, 1]} : vector<4x256xbf16> to vector<4x32xbf16>
    %75 = vector.extract_strided_slice %3 {offsets = [0, 128], sizes = [4, 32], strides = [1, 1]} : vector<4x256xbf16> to vector<4x32xbf16>
    %76 = vector.extract_strided_slice %5 {offsets = [0, 128], sizes = [4, 32], strides = [1, 1]} : vector<4x256xbf16> to vector<4x32xbf16>
    %cst_27 = arith.constant dense<0.000000e+00> : vector<4x4xf32>
    %77 = tpu.matmul %74, %75, %cst_27 {dimension_numbers = #tpu.dot_dimension_numbers<[1], [1], [0], [0], [0, 0, 1, 0], [], []>} : vector<4x32xbf16>, vector<4x32xbf16>, vector<4x4xf32> -> vector<4x4xf32>
    %cst_28 = arith.constant 0.176776692 : f32
    %78 = vector.broadcast %cst_28 : f32 to vector<4x4xf32>
    %79 = arith.mulf %77, %78 : vector<4x4xf32>
    %cst_29 = arith.constant dense<0xFF800000> : vector<4xf32>
    %80 = vector.multi_reduction <maximumf>, %79, %cst_29 [1] : vector<4x4xf32> to vector<4xf32>
    %81 = vector.shape_cast %80 : vector<4xf32> to vector<4x1xf32>
    %82 = vector.broadcast %81 : vector<4x1xf32> to vector<4x4xf32>
    %83 = arith.subf %79, %82 : vector<4x4xf32>
    %84 = math.exp %83 : vector<4x4xf32>
    %cst_30 = arith.constant dense<0.000000e+00> : vector<4xf32>
    %85 = vector.multi_reduction <add>, %84, %cst_30 [1] : vector<4x4xf32> to vector<4xf32>
    %86 = vector.shape_cast %85 : vector<4xf32> to vector<4x1xf32>
    %87 = vector.broadcast %86 : vector<4x1xf32> to vector<4x4xf32>
    %88 = arith.divf %84, %87 : vector<4x4xf32>
    %89 = arith.truncf %88 : vector<4x4xf32> to vector<4x4xbf16>
    %cst_31 = arith.constant dense<0.000000e+00> : vector<4x32xf32>
    %90 = tpu.matmul %89, %76, %cst_31 {dimension_numbers = #tpu.dot_dimension_numbers<[1], [0], [0], [1], [0, 0, 1, 1], [], []>} : vector<4x4xbf16>, vector<4x32xbf16>, vector<4x32xf32> -> vector<4x32xf32>
    %91 = vector.extract_strided_slice %1 {offsets = [0, 160], sizes = [4, 32], strides = [1, 1]} : vector<4x256xbf16> to vector<4x32xbf16>
    %92 = vector.extract_strided_slice %3 {offsets = [0, 160], sizes = [4, 32], strides = [1, 1]} : vector<4x256xbf16> to vector<4x32xbf16>
    %93 = vector.extract_strided_slice %5 {offsets = [0, 160], sizes = [4, 32], strides = [1, 1]} : vector<4x256xbf16> to vector<4x32xbf16>
    %cst_32 = arith.constant dense<0.000000e+00> : vector<4x4xf32>
    %94 = tpu.matmul %91, %92, %cst_32 {dimension_numbers = #tpu.dot_dimension_numbers<[1], [1], [0], [0], [0, 0, 1, 0], [], []>} : vector<4x32xbf16>, vector<4x32xbf16>, vector<4x4xf32> -> vector<4x4xf32>
    %cst_33 = arith.constant 0.176776692 : f32
    %95 = vector.broadcast %cst_33 : f32 to vector<4x4xf32>
    %96 = arith.mulf %94, %95 : vector<4x4xf32>
    %cst_34 = arith.constant dense<0xFF800000> : vector<4xf32>
    %97 = vector.multi_reduction <maximumf>, %96, %cst_34 [1] : vector<4x4xf32> to vector<4xf32>
    %98 = vector.shape_cast %97 : vector<4xf32> to vector<4x1xf32>
    %99 = vector.broadcast %98 : vector<4x1xf32> to vector<4x4xf32>
    %100 = arith.subf %96, %99 : vector<4x4xf32>
    %101 = math.exp %100 : vector<4x4xf32>
    %cst_35 = arith.constant dense<0.000000e+00> : vector<4xf32>
    %102 = vector.multi_reduction <add>, %101, %cst_35 [1] : vector<4x4xf32> to vector<4xf32>
    %103 = vector.shape_cast %102 : vector<4xf32> to vector<4x1xf32>
    %104 = vector.broadcast %103 : vector<4x1xf32> to vector<4x4xf32>
    %105 = arith.divf %101, %104 : vector<4x4xf32>
    %106 = arith.truncf %105 : vector<4x4xf32> to vector<4x4xbf16>
    %cst_36 = arith.constant dense<0.000000e+00> : vector<4x32xf32>
    %107 = tpu.matmul %106, %93, %cst_36 {dimension_numbers = #tpu.dot_dimension_numbers<[1], [0], [0], [1], [0, 0, 1, 1], [], []>} : vector<4x4xbf16>, vector<4x32xbf16>, vector<4x32xf32> -> vector<4x32xf32>
    %108 = vector.extract_strided_slice %1 {offsets = [0, 192], sizes = [4, 32], strides = [1, 1]} : vector<4x256xbf16> to vector<4x32xbf16>
    %109 = vector.extract_strided_slice %3 {offsets = [0, 192], sizes = [4, 32], strides = [1, 1]} : vector<4x256xbf16> to vector<4x32xbf16>
    %110 = vector.extract_strided_slice %5 {offsets = [0, 192], sizes = [4, 32], strides = [1, 1]} : vector<4x256xbf16> to vector<4x32xbf16>
    %cst_37 = arith.constant dense<0.000000e+00> : vector<4x4xf32>
    %111 = tpu.matmul %108, %109, %cst_37 {dimension_numbers = #tpu.dot_dimension_numbers<[1], [1], [0], [0], [0, 0, 1, 0], [], []>} : vector<4x32xbf16>, vector<4x32xbf16>, vector<4x4xf32> -> vector<4x4xf32>
    %cst_38 = arith.constant 0.176776692 : f32
    %112 = vector.broadcast %cst_38 : f32 to vector<4x4xf32>
    %113 = arith.mulf %111, %112 : vector<4x4xf32>
    %cst_39 = arith.constant dense<0xFF800000> : vector<4xf32>
    %114 = vector.multi_reduction <maximumf>, %113, %cst_39 [1] : vector<4x4xf32> to vector<4xf32>
    %115 = vector.shape_cast %114 : vector<4xf32> to vector<4x1xf32>
    %116 = vector.broadcast %115 : vector<4x1xf32> to vector<4x4xf32>
    %117 = arith.subf %113, %116 : vector<4x4xf32>
    %118 = math.exp %117 : vector<4x4xf32>
    %cst_40 = arith.constant dense<0.000000e+00> : vector<4xf32>
    %119 = vector.multi_reduction <add>, %118, %cst_40 [1] : vector<4x4xf32> to vector<4xf32>
    %120 = vector.shape_cast %119 : vector<4xf32> to vector<4x1xf32>
    %121 = vector.broadcast %120 : vector<4x1xf32> to vector<4x4xf32>
    %122 = arith.divf %118, %121 : vector<4x4xf32>
    %123 = arith.truncf %122 : vector<4x4xf32> to vector<4x4xbf16>
    %cst_41 = arith.constant dense<0.000000e+00> : vector<4x32xf32>
    %124 = tpu.matmul %123, %110, %cst_41 {dimension_numbers = #tpu.dot_dimension_numbers<[1], [0], [0], [1], [0, 0, 1, 1], [], []>} : vector<4x4xbf16>, vector<4x32xbf16>, vector<4x32xf32> -> vector<4x32xf32>
    %125 = vector.extract_strided_slice %1 {offsets = [0, 224], sizes = [4, 32], strides = [1, 1]} : vector<4x256xbf16> to vector<4x32xbf16>
    %126 = vector.extract_strided_slice %3 {offsets = [0, 224], sizes = [4, 32], strides = [1, 1]} : vector<4x256xbf16> to vector<4x32xbf16>
    %127 = vector.extract_strided_slice %5 {offsets = [0, 224], sizes = [4, 32], strides = [1, 1]} : vector<4x256xbf16> to vector<4x32xbf16>
    %cst_42 = arith.constant dense<0.000000e+00> : vector<4x4xf32>
    %128 = tpu.matmul %125, %126, %cst_42 {dimension_numbers = #tpu.dot_dimension_numbers<[1], [1], [0], [0], [0, 0, 1, 0], [], []>} : vector<4x32xbf16>, vector<4x32xbf16>, vector<4x4xf32> -> vector<4x4xf32>
    %cst_43 = arith.constant 0.176776692 : f32
    %129 = vector.broadcast %cst_43 : f32 to vector<4x4xf32>
    %130 = arith.mulf %128, %129 : vector<4x4xf32>
    %cst_44 = arith.constant dense<0xFF800000> : vector<4xf32>
    %131 = vector.multi_reduction <maximumf>, %130, %cst_44 [1] : vector<4x4xf32> to vector<4xf32>
    %132 = vector.shape_cast %131 : vector<4xf32> to vector<4x1xf32>
    %133 = vector.broadcast %132 : vector<4x1xf32> to vector<4x4xf32>
    %134 = arith.subf %130, %133 : vector<4x4xf32>
    %135 = math.exp %134 : vector<4x4xf32>
    %cst_45 = arith.constant dense<0.000000e+00> : vector<4xf32>
    %136 = vector.multi_reduction <add>, %135, %cst_45 [1] : vector<4x4xf32> to vector<4xf32>
    %137 = vector.shape_cast %136 : vector<4xf32> to vector<4x1xf32>
    %138 = vector.broadcast %137 : vector<4x1xf32> to vector<4x4xf32>
    %139 = arith.divf %135, %138 : vector<4x4xf32>
    %140 = arith.truncf %139 : vector<4x4xf32> to vector<4x4xbf16>
    %cst_46 = arith.constant dense<0.000000e+00> : vector<4x32xf32>
    %141 = tpu.matmul %140, %127, %cst_46 {dimension_numbers = #tpu.dot_dimension_numbers<[1], [0], [0], [1], [0, 0, 1, 1], [], []>} : vector<4x4xbf16>, vector<4x32xbf16>, vector<4x32xf32> -> vector<4x32xf32>
    %142 = tpu.concatenate %22, %39, %56, %73, %90, %107, %124, %141 in 1 : vector<4x32xf32>, vector<4x32xf32>, vector<4x32xf32>, vector<4x32xf32>, vector<4x32xf32>, vector<4x32xf32>, vector<4x32xf32>, vector<4x32xf32> -> vector<4x256xf32>
    %c0_47 = arith.constant 0 : index
    %c0_48 = arith.constant 0 : index
    %c0_49 = arith.constant 0 : index
    %143 = vector.load %arg4[%c0_47, %c0_48, %c0_49] : memref<1x4x256xf32, #tpu.memory_space<vmem>>, vector<1x4x256xf32>
    %144 = vector.shape_cast %143 : vector<1x4x256xf32> to vector<4x256xf32>
    %145 = vector.shape_cast %142 : vector<4x256xf32> to vector<1x4x256xf32>
    tpu.vector_store %arg4[%c0_47, %c0_48, %c0_49], %145 {strides = array<i32>} : memref<1x4x256xf32, #tpu.memory_space<vmem>>, vector<1x4x256xf32>,
    return
  }
  func.func @transform_0(%arg0: i32) -> (i32, i32, i32) {
    %c0_i32 = arith.constant 0 : i32
    %c0_i32_0 = arith.constant 0 : i32
    %c0_i32_1 = arith.constant 0 : i32
    return %arg0, %c0_i32, %c0_i32_0 : i32, i32, i32
  }
  func.func @transform_1(%arg0: i32) -> (i32, i32, i32) {
    %c0_i32 = arith.constant 0 : i32
    %c0_i32_0 = arith.constant 0 : i32
    %c0_i32_1 = arith.constant 0 : i32
    return %arg0, %c0_i32, %c0_i32_0 : i32, i32, i32
  }
  func.func @transform_2(%arg0: i32) -> (i32, i32, i32) {
    %c0_i32 = arith.constant 0 : i32
    %c0_i32_0 = arith.constant 0 : i32
    %c0_i32_1 = arith.constant 0 : i32
    return %arg0, %c0_i32, %c0_i32_0 : i32, i32, i32
  }
  func.func @transform_3(%arg0: i32) -> (i32, i32, i32) {
    %c0_i32 = arith.constant 0 : i32
    %c0_i32_0 = arith.constant 0 : i32
    %c0_i32_1 = arith.constant 0 : i32
    return %arg0, %c0_i32, %c0_i32_0 : i32, i32, i32
  }
}

module attributes {stable_mosaic.version = 11 : i64} {
  func.func @kernel(%arg0: i32, %arg1: memref<8x256xbf16, #tpu.memory_space<vmem>>, %arg2: memref<256x256xbf16, #tpu.memory_space<vmem>>, %arg3: memref<1x256xf32, #tpu.memory_space<vmem>>, %arg4: memref<8x256xf32, #tpu.memory_space<vmem>>, %arg5: memref<1x256xf32, #tpu.memory_space<vmem>>, %arg6: memref<1x256xf32, #tpu.memory_space<vmem>>, %arg7: memref<8x256xf32, #tpu.memory_space<vmem>>) attributes {dimension_semantics = [#tpu.dimension_semantics<parallel>], iteration_bounds = array<i64: 1>, scalar_prefetch = 0 : i64, scratch_operands = 0 : i64, tpu.core_type = #tpu.core_type<tc>, window_params = [{transform_indices = @transform_0, window_bounds = array<i64: 8, 256>}, {pipeline_mode = #tpu.pipeline_mode<synchronous>, transform_indices = @transform_1, window_bounds = array<i64: 256, 256>}, {pipeline_mode = #tpu.pipeline_mode<synchronous>, transform_indices = @transform_2, window_bounds = array<i64: 1, 256>}, {transform_indices = @transform_3, window_bounds = array<i64: 8, 256>}, {pipeline_mode = #tpu.pipeline_mode<synchronous>, transform_indices = @transform_4, window_bounds = array<i64: 1, 256>}, {pipeline_mode = #tpu.pipeline_mode<synchronous>, transform_indices = @transform_5, window_bounds = array<i64: 1, 256>}, {transform_indices = @transform_6, window_bounds = array<i64: 8, 256>}]} {
    %c0 = arith.constant 0 : index
    %c0_0 = arith.constant 0 : index
    %0 = vector.load %arg1[%c0, %c0_0] : memref<8x256xbf16, #tpu.memory_space<vmem>>, vector<8x256xbf16>
    %c0_1 = arith.constant 0 : index
    %c0_2 = arith.constant 0 : index
    %1 = vector.load %arg2[%c0_1, %c0_2] : memref<256x256xbf16, #tpu.memory_space<vmem>>, vector<256x256xbf16>
    %cst = arith.constant dense<0.000000e+00> : vector<8x256xf32>
    %2 = tpu.matmul %0, %1, %cst {dimension_numbers = #tpu.dot_dimension_numbers<[1], [0], [0], [1], [0, 0, 1, 1], [], []>} : vector<8x256xbf16>, vector<256x256xbf16>, vector<8x256xf32> -> vector<8x256xf32>
    %c0_3 = arith.constant 0 : index
    %c0_4 = arith.constant 0 : index
    %3 = vector.load %arg4[%c0_3, %c0_4] : memref<8x256xf32, #tpu.memory_space<vmem>>, vector<8x256xf32>
    %4 = arith.addf %3, %2 : vector<8x256xf32>
    %c0_5 = arith.constant 0 : index
    %c0_6 = arith.constant 0 : index
    %5 = vector.load %arg3[%c0_5, %c0_6] : memref<1x256xf32, #tpu.memory_space<vmem>>, vector<1x256xf32>
    %6 = vector.broadcast %5 : vector<1x256xf32> to vector<8x256xf32>
    %7 = arith.addf %4, %6 : vector<8x256xf32>
    %cst_7 = arith.constant dense<0.000000e+00> : vector<8xf32>
    %8 = vector.multi_reduction <add>, %7, %cst_7 [1] : vector<8x256xf32> to vector<8xf32>
    %9 = vector.shape_cast %8 : vector<8xf32> to vector<8x1xf32>
    %cst_8 = arith.constant 2.560000e+02 : f32
    %10 = vector.broadcast %cst_8 : f32 to vector<8x1xf32>
    %11 = arith.divf %9, %10 : vector<8x1xf32>
    %12 = vector.broadcast %11 : vector<8x1xf32> to vector<8x256xf32>
    %13 = arith.subf %7, %12 : vector<8x256xf32>
    %14 = arith.mulf %13, %13 : vector<8x256xf32>
    %cst_9 = arith.constant dense<0.000000e+00> : vector<8xf32>
    %15 = vector.multi_reduction <add>, %14, %cst_9 [1] : vector<8x256xf32> to vector<8xf32>
    %16 = vector.shape_cast %15 : vector<8xf32> to vector<8x1xf32>
    %cst_10 = arith.constant 2.560000e+02 : f32
    %17 = vector.broadcast %cst_10 : f32 to vector<8x1xf32>
    %18 = arith.divf %16, %17 : vector<8x1xf32>
    %19 = vector.broadcast %11 : vector<8x1xf32> to vector<8x256xf32>
    %20 = arith.subf %7, %19 : vector<8x256xf32>
    %cst_11 = arith.constant 9.99999974E-6 : f32
    %21 = vector.broadcast %cst_11 : f32 to vector<8x1xf32>
    %22 = arith.addf %18, %21 : vector<8x1xf32>
    %23 = math.rsqrt %22 : vector<8x1xf32>
    %24 = vector.broadcast %23 : vector<8x1xf32> to vector<8x256xf32>
    %25 = arith.mulf %20, %24 : vector<8x256xf32>
    %c0_12 = arith.constant 0 : index
    %c0_13 = arith.constant 0 : index
    %26 = vector.load %arg5[%c0_12, %c0_13] : memref<1x256xf32, #tpu.memory_space<vmem>>, vector<1x256xf32>
    %27 = vector.broadcast %26 : vector<1x256xf32> to vector<8x256xf32>
    %28 = arith.mulf %25, %27 : vector<8x256xf32>
    %c0_14 = arith.constant 0 : index
    %c0_15 = arith.constant 0 : index
    %29 = vector.load %arg6[%c0_14, %c0_15] : memref<1x256xf32, #tpu.memory_space<vmem>>, vector<1x256xf32>
    %30 = vector.broadcast %29 : vector<1x256xf32> to vector<8x256xf32>
    %31 = arith.addf %28, %30 : vector<8x256xf32>
    %c0_16 = arith.constant 0 : index
    %c0_17 = arith.constant 0 : index
    %32 = vector.load %arg7[%c0_16, %c0_17] : memref<8x256xf32, #tpu.memory_space<vmem>>, vector<8x256xf32>
    tpu.vector_store %arg7[%c0_16, %c0_17], %31 {strides = array<i32>} : memref<8x256xf32, #tpu.memory_space<vmem>>, vector<8x256xf32>,
    return
  }
  func.func @transform_0(%arg0: i32) -> (i32, i32) {
    %c0_i32 = arith.constant 0 : i32
    %c0_i32_0 = arith.constant 0 : i32
    return %arg0, %c0_i32 : i32, i32
  }
  func.func @transform_1(%arg0: i32) -> (i32, i32) {
    %c0_i32 = arith.constant 0 : i32
    %c0_i32_0 = arith.constant 0 : i32
    %c0_i32_1 = arith.constant 0 : i32
    return %c0_i32, %c0_i32_0 : i32, i32
  }
  func.func @transform_2(%arg0: i32) -> (i32, i32) {
    %c0_i32 = arith.constant 0 : i32
    %c0_i32_0 = arith.constant 0 : i32
    %c0_i32_1 = arith.constant 0 : i32
    return %c0_i32, %c0_i32_0 : i32, i32
  }
  func.func @transform_3(%arg0: i32) -> (i32, i32) {
    %c0_i32 = arith.constant 0 : i32
    %c0_i32_0 = arith.constant 0 : i32
    return %arg0, %c0_i32 : i32, i32
  }
  func.func @transform_4(%arg0: i32) -> (i32, i32) {
    %c0_i32 = arith.constant 0 : i32
    %c0_i32_0 = arith.constant 0 : i32
    %c0_i32_1 = arith.constant 0 : i32
    return %c0_i32, %c0_i32_0 : i32, i32
  }
  func.func @transform_5(%arg0: i32) -> (i32, i32) {
    %c0_i32 = arith.constant 0 : i32
    %c0_i32_0 = arith.constant 0 : i32
    %c0_i32_1 = arith.constant 0 : i32
    return %c0_i32, %c0_i32_0 : i32, i32
  }
  func.func @transform_6(%arg0: i32) -> (i32, i32) {
    %c0_i32 = arith.constant 0 : i32
    %c0_i32_0 = arith.constant 0 : i32
    return %arg0, %c0_i32 : i32, i32
  }
}

module attributes {stable_mosaic.version = 11 : i64} {
  func.func @kernel(%arg0: i32, %arg1: memref<8x256xbf16, #tpu.memory_space<vmem>>, %arg2: memref<256x256xbf16, #tpu.memory_space<vmem>>, %arg3: memref<1x256xf32, #tpu.memory_space<vmem>>, %arg4: memref<8x256xf32, #tpu.memory_space<vmem>>) attributes {dimension_semantics = [#tpu.dimension_semantics<parallel>], iteration_bounds = array<i64: 1>, scalar_prefetch = 0 : i64, scratch_operands = 0 : i64, tpu.core_type = #tpu.core_type<tc>, window_params = [{transform_indices = @transform_0, window_bounds = array<i64: 8, 256>}, {pipeline_mode = #tpu.pipeline_mode<synchronous>, transform_indices = @transform_1, window_bounds = array<i64: 256, 256>}, {pipeline_mode = #tpu.pipeline_mode<synchronous>, transform_indices = @transform_2, window_bounds = array<i64: 1, 256>}, {transform_indices = @transform_3, window_bounds = array<i64: 8, 256>}]} {
    %c0 = arith.constant 0 : index
    %c0_0 = arith.constant 0 : index
    %0 = vector.load %arg1[%c0, %c0_0] : memref<8x256xbf16, #tpu.memory_space<vmem>>, vector<8x256xbf16>
    %c0_1 = arith.constant 0 : index
    %c0_2 = arith.constant 0 : index
    %1 = vector.load %arg2[%c0_1, %c0_2] : memref<256x256xbf16, #tpu.memory_space<vmem>>, vector<256x256xbf16>
    %cst = arith.constant dense<0.000000e+00> : vector<8x256xf32>
    %2 = tpu.matmul %0, %1, %cst {dimension_numbers = #tpu.dot_dimension_numbers<[1], [0], [0], [1], [0, 0, 1, 1], [], []>} : vector<8x256xbf16>, vector<256x256xbf16>, vector<8x256xf32> -> vector<8x256xf32>
    %c0_3 = arith.constant 0 : index
    %c0_4 = arith.constant 0 : index
    %3 = vector.load %arg3[%c0_3, %c0_4] : memref<1x256xf32, #tpu.memory_space<vmem>>, vector<1x256xf32>
    %4 = vector.broadcast %3 : vector<1x256xf32> to vector<8x256xf32>
    %5 = arith.addf %2, %4 : vector<8x256xf32>
    %cst_5 = arith.constant 0.000000e+00 : f32
    %6 = vector.broadcast %cst_5 : f32 to vector<8x256xf32>
    %7 = arith.maximumf %5, %6 : vector<8x256xf32>
    %c0_6 = arith.constant 0 : index
    %c0_7 = arith.constant 0 : index
    %8 = vector.load %arg4[%c0_6, %c0_7] : memref<8x256xf32, #tpu.memory_space<vmem>>, vector<8x256xf32>
    tpu.vector_store %arg4[%c0_6, %c0_7], %7 {strides = array<i32>} : memref<8x256xf32, #tpu.memory_space<vmem>>, vector<8x256xf32>,
    return
  }
  func.func @transform_0(%arg0: i32) -> (i32, i32) {
    %c0_i32 = arith.constant 0 : i32
    %c0_i32_0 = arith.constant 0 : i32
    return %arg0, %c0_i32 : i32, i32
  }
  func.func @transform_1(%arg0: i32) -> (i32, i32) {
    %c0_i32 = arith.constant 0 : i32
    %c0_i32_0 = arith.constant 0 : i32
    %c0_i32_1 = arith.constant 0 : i32
    return %c0_i32, %c0_i32_0 : i32, i32
  }
  func.func @transform_2(%arg0: i32) -> (i32, i32) {
    %c0_i32 = arith.constant 0 : i32
    %c0_i32_0 = arith.constant 0 : i32
    %c0_i32_1 = arith.constant 0 : i32
    return %c0_i32, %c0_i32_0 : i32, i32
  }
  func.func @transform_3(%arg0: i32) -> (i32, i32) {
    %c0_i32 = arith.constant 0 : i32
    %c0_i32_0 = arith.constant 0 : i32
    return %arg0, %c0_i32 : i32, i32
  }
}

module attributes {stable_mosaic.version = 11 : i64} {
  func.func @kernel(%arg0: i32, %arg1: memref<2x256xf32, #tpu.memory_space<vmem>>, %arg2: memref<256x128xf32, #tpu.memory_space<vmem>>, %arg3: memref<1x128xf32, #tpu.memory_space<vmem>>, %arg4: memref<1x128xf32, #tpu.memory_space<vmem>>, %arg5: memref<1x128xf32, #tpu.memory_space<vmem>>, %arg6: memref<128x64xf32, #tpu.memory_space<vmem>>, %arg7: memref<1x64xf32, #tpu.memory_space<vmem>>, %arg8: memref<1x64xf32, #tpu.memory_space<vmem>>, %arg9: memref<1x64xf32, #tpu.memory_space<vmem>>, %arg10: memref<64x32xf32, #tpu.memory_space<vmem>>, %arg11: memref<1x32xf32, #tpu.memory_space<vmem>>, %arg12: memref<1x32xf32, #tpu.memory_space<vmem>>, %arg13: memref<1x32xf32, #tpu.memory_space<vmem>>, %arg14: memref<32x1xf32, #tpu.memory_space<vmem>>, %arg15: memref<1x1xf32, #tpu.memory_space<vmem>>, %arg16: memref<2x1xf32, #tpu.memory_space<vmem>>) attributes {dimension_semantics = [#tpu.dimension_semantics<arbitrary>], iteration_bounds = array<i64: 1>, scalar_prefetch = 0 : i64, scratch_operands = 0 : i64, tpu.core_type = #tpu.core_type<tc>, window_params = [{pipeline_mode = #tpu.pipeline_mode<synchronous>, transform_indices = @transform_0, window_bounds = array<i64: 2, 256>}, {pipeline_mode = #tpu.pipeline_mode<synchronous>, transform_indices = @transform_1, window_bounds = array<i64: 256, 128>}, {pipeline_mode = #tpu.pipeline_mode<synchronous>, transform_indices = @transform_2, window_bounds = array<i64: 1, 128>}, {pipeline_mode = #tpu.pipeline_mode<synchronous>, transform_indices = @transform_3, window_bounds = array<i64: 1, 128>}, {pipeline_mode = #tpu.pipeline_mode<synchronous>, transform_indices = @transform_4, window_bounds = array<i64: 1, 128>}, {pipeline_mode = #tpu.pipeline_mode<synchronous>, transform_indices = @transform_5, window_bounds = array<i64: 128, 64>}, {pipeline_mode = #tpu.pipeline_mode<synchronous>, transform_indices = @transform_6, window_bounds = array<i64: 1, 64>}, {pipeline_mode = #tpu.pipeline_mode<synchronous>, transform_indices = @transform_7, window_bounds = array<i64: 1, 64>}, {pipeline_mode = #tpu.pipeline_mode<synchronous>, transform_indices = @transform_8, window_bounds = array<i64: 1, 64>}, {pipeline_mode = #tpu.pipeline_mode<synchronous>, transform_indices = @transform_9, window_bounds = array<i64: 64, 32>}, {pipeline_mode = #tpu.pipeline_mode<synchronous>, transform_indices = @transform_10, window_bounds = array<i64: 1, 32>}, {pipeline_mode = #tpu.pipeline_mode<synchronous>, transform_indices = @transform_11, window_bounds = array<i64: 1, 32>}, {pipeline_mode = #tpu.pipeline_mode<synchronous>, transform_indices = @transform_12, window_bounds = array<i64: 1, 32>}, {pipeline_mode = #tpu.pipeline_mode<synchronous>, transform_indices = @transform_13, window_bounds = array<i64: 32, 1>}, {pipeline_mode = #tpu.pipeline_mode<synchronous>, transform_indices = @transform_14, window_bounds = array<i64: 1, 1>}, {pipeline_mode = #tpu.pipeline_mode<synchronous>, transform_indices = @transform_15, window_bounds = array<i64: 2, 1>}]} {
    %c0 = arith.constant 0 : index
    %c0_0 = arith.constant 0 : index
    %0 = vector.load %arg1[%c0, %c0_0] : memref<2x256xf32, #tpu.memory_space<vmem>>, vector<2x256xf32>
    %c0_1 = arith.constant 0 : index
    %c0_2 = arith.constant 0 : index
    %1 = vector.load %arg2[%c0_1, %c0_2] : memref<256x128xf32, #tpu.memory_space<vmem>>, vector<256x128xf32>
    %cst = arith.constant dense<0.000000e+00> : vector<2x128xf32>
    %2 = tpu.matmul %0, %1, %cst {dimension_numbers = #tpu.dot_dimension_numbers<[1], [0], [0], [1], [0, 0, 1, 1], [], []>} : vector<2x256xf32>, vector<256x128xf32>, vector<2x128xf32> -> vector<2x128xf32>
    %c0_3 = arith.constant 0 : index
    %c0_4 = arith.constant 0 : index
    %3 = vector.load %arg3[%c0_3, %c0_4] : memref<1x128xf32, #tpu.memory_space<vmem>>, vector<1x128xf32>
    %4 = vector.broadcast %3 : vector<1x128xf32> to vector<2x128xf32>
    %5 = arith.addf %2, %4 : vector<2x128xf32>
    %cst_5 = arith.constant dense<0.000000e+00> : vector<2xf32>
    %6 = vector.multi_reduction <add>, %5, %cst_5 [1] : vector<2x128xf32> to vector<2xf32>
    %7 = vector.shape_cast %6 : vector<2xf32> to vector<2x1xf32>
    %cst_6 = arith.constant 1.280000e+02 : f32
    %8 = vector.broadcast %cst_6 : f32 to vector<2x1xf32>
    %9 = arith.divf %7, %8 : vector<2x1xf32>
    %10 = vector.broadcast %9 : vector<2x1xf32> to vector<2x128xf32>
    %11 = arith.subf %5, %10 : vector<2x128xf32>
    %12 = arith.mulf %11, %11 : vector<2x128xf32>
    %cst_7 = arith.constant dense<0.000000e+00> : vector<2xf32>
    %13 = vector.multi_reduction <add>, %12, %cst_7 [1] : vector<2x128xf32> to vector<2xf32>
    %14 = vector.shape_cast %13 : vector<2xf32> to vector<2x1xf32>
    %cst_8 = arith.constant 1.280000e+02 : f32
    %15 = vector.broadcast %cst_8 : f32 to vector<2x1xf32>
    %16 = arith.divf %14, %15 : vector<2x1xf32>
    %17 = vector.broadcast %9 : vector<2x1xf32> to vector<2x128xf32>
    %18 = arith.subf %5, %17 : vector<2x128xf32>
    %cst_9 = arith.constant 9.99999974E-6 : f32
    %19 = vector.broadcast %cst_9 : f32 to vector<2x1xf32>
    %20 = arith.addf %16, %19 : vector<2x1xf32>
    %21 = math.rsqrt %20 : vector<2x1xf32>
    %22 = vector.broadcast %21 : vector<2x1xf32> to vector<2x128xf32>
    %23 = arith.mulf %18, %22 : vector<2x128xf32>
    %c0_10 = arith.constant 0 : index
    %c0_11 = arith.constant 0 : index
    %24 = vector.load %arg4[%c0_10, %c0_11] : memref<1x128xf32, #tpu.memory_space<vmem>>, vector<1x128xf32>
    %25 = vector.broadcast %24 : vector<1x128xf32> to vector<2x128xf32>
    %26 = arith.mulf %23, %25 : vector<2x128xf32>
    %c0_12 = arith.constant 0 : index
    %c0_13 = arith.constant 0 : index
    %27 = vector.load %arg5[%c0_12, %c0_13] : memref<1x128xf32, #tpu.memory_space<vmem>>, vector<1x128xf32>
    %28 = vector.broadcast %27 : vector<1x128xf32> to vector<2x128xf32>
    %29 = arith.addf %26, %28 : vector<2x128xf32>
    %cst_14 = arith.constant 0.000000e+00 : f32
    %30 = vector.broadcast %cst_14 : f32 to vector<2x128xf32>
    %31 = arith.cmpf ogt, %29, %30 : vector<2x128xf32>
    %cst_15 = arith.constant 0.00999999977 : f32
    %32 = vector.broadcast %cst_15 : f32 to vector<2x128xf32>
    %33 = arith.mulf %32, %29 : vector<2x128xf32>
    %34 = arith.select %31, %29, %33 : vector<2x128xi1>, vector<2x128xf32>
    %c0_16 = arith.constant 0 : index
    %c0_17 = arith.constant 0 : index
    %35 = vector.load %arg6[%c0_16, %c0_17] : memref<128x64xf32, #tpu.memory_space<vmem>>, vector<128x64xf32>
    %cst_18 = arith.constant dense<0.000000e+00> : vector<2x64xf32>
    %36 = tpu.matmul %34, %35, %cst_18 {dimension_numbers = #tpu.dot_dimension_numbers<[1], [0], [0], [1], [0, 0, 1, 1], [], []>} : vector<2x128xf32>, vector<128x64xf32>, vector<2x64xf32> -> vector<2x64xf32>
    %c0_19 = arith.constant 0 : index
    %c0_20 = arith.constant 0 : index
    %37 = vector.load %arg7[%c0_19, %c0_20] : memref<1x64xf32, #tpu.memory_space<vmem>>, vector<1x64xf32>
    %38 = vector.broadcast %37 : vector<1x64xf32> to vector<2x64xf32>
    %39 = arith.addf %36, %38 : vector<2x64xf32>
    %cst_21 = arith.constant dense<0.000000e+00> : vector<2xf32>
    %40 = vector.multi_reduction <add>, %39, %cst_21 [1] : vector<2x64xf32> to vector<2xf32>
    %41 = vector.shape_cast %40 : vector<2xf32> to vector<2x1xf32>
    %cst_22 = arith.constant 6.400000e+01 : f32
    %42 = vector.broadcast %cst_22 : f32 to vector<2x1xf32>
    %43 = arith.divf %41, %42 : vector<2x1xf32>
    %44 = vector.broadcast %43 : vector<2x1xf32> to vector<2x64xf32>
    %45 = arith.subf %39, %44 : vector<2x64xf32>
    %46 = arith.mulf %45, %45 : vector<2x64xf32>
    %cst_23 = arith.constant dense<0.000000e+00> : vector<2xf32>
    %47 = vector.multi_reduction <add>, %46, %cst_23 [1] : vector<2x64xf32> to vector<2xf32>
    %48 = vector.shape_cast %47 : vector<2xf32> to vector<2x1xf32>
    %cst_24 = arith.constant 6.400000e+01 : f32
    %49 = vector.broadcast %cst_24 : f32 to vector<2x1xf32>
    %50 = arith.divf %48, %49 : vector<2x1xf32>
    %51 = vector.broadcast %43 : vector<2x1xf32> to vector<2x64xf32>
    %52 = arith.subf %39, %51 : vector<2x64xf32>
    %cst_25 = arith.constant 9.99999974E-6 : f32
    %53 = vector.broadcast %cst_25 : f32 to vector<2x1xf32>
    %54 = arith.addf %50, %53 : vector<2x1xf32>
    %55 = math.rsqrt %54 : vector<2x1xf32>
    %56 = vector.broadcast %55 : vector<2x1xf32> to vector<2x64xf32>
    %57 = arith.mulf %52, %56 : vector<2x64xf32>
    %c0_26 = arith.constant 0 : index
    %c0_27 = arith.constant 0 : index
    %58 = vector.load %arg8[%c0_26, %c0_27] : memref<1x64xf32, #tpu.memory_space<vmem>>, vector<1x64xf32>
    %59 = vector.broadcast %58 : vector<1x64xf32> to vector<2x64xf32>
    %60 = arith.mulf %57, %59 : vector<2x64xf32>
    %c0_28 = arith.constant 0 : index
    %c0_29 = arith.constant 0 : index
    %61 = vector.load %arg9[%c0_28, %c0_29] : memref<1x64xf32, #tpu.memory_space<vmem>>, vector<1x64xf32>
    %62 = vector.broadcast %61 : vector<1x64xf32> to vector<2x64xf32>
    %63 = arith.addf %60, %62 : vector<2x64xf32>
    %cst_30 = arith.constant 0.000000e+00 : f32
    %64 = vector.broadcast %cst_30 : f32 to vector<2x64xf32>
    %65 = arith.cmpf ogt, %63, %64 : vector<2x64xf32>
    %cst_31 = arith.constant 0.00999999977 : f32
    %66 = vector.broadcast %cst_31 : f32 to vector<2x64xf32>
    %67 = arith.mulf %66, %63 : vector<2x64xf32>
    %68 = arith.select %65, %63, %67 : vector<2x64xi1>, vector<2x64xf32>
    %c0_32 = arith.constant 0 : index
    %c0_33 = arith.constant 0 : index
    %69 = vector.load %arg10[%c0_32, %c0_33] : memref<64x32xf32, #tpu.memory_space<vmem>>, vector<64x32xf32>
    %cst_34 = arith.constant dense<0.000000e+00> : vector<2x32xf32>
    %70 = tpu.matmul %68, %69, %cst_34 {dimension_numbers = #tpu.dot_dimension_numbers<[1], [0], [0], [1], [0, 0, 1, 1], [], []>} : vector<2x64xf32>, vector<64x32xf32>, vector<2x32xf32> -> vector<2x32xf32>
    %c0_35 = arith.constant 0 : index
    %c0_36 = arith.constant 0 : index
    %71 = vector.load %arg11[%c0_35, %c0_36] : memref<1x32xf32, #tpu.memory_space<vmem>>, vector<1x32xf32>
    %72 = vector.broadcast %71 : vector<1x32xf32> to vector<2x32xf32>
    %73 = arith.addf %70, %72 : vector<2x32xf32>
    %cst_37 = arith.constant dense<0.000000e+00> : vector<2xf32>
    %74 = vector.multi_reduction <add>, %73, %cst_37 [1] : vector<2x32xf32> to vector<2xf32>
    %75 = vector.shape_cast %74 : vector<2xf32> to vector<2x1xf32>
    %cst_38 = arith.constant 3.200000e+01 : f32
    %76 = vector.broadcast %cst_38 : f32 to vector<2x1xf32>
    %77 = arith.divf %75, %76 : vector<2x1xf32>
    %78 = vector.broadcast %77 : vector<2x1xf32> to vector<2x32xf32>
    %79 = arith.subf %73, %78 : vector<2x32xf32>
    %80 = arith.mulf %79, %79 : vector<2x32xf32>
    %cst_39 = arith.constant dense<0.000000e+00> : vector<2xf32>
    %81 = vector.multi_reduction <add>, %80, %cst_39 [1] : vector<2x32xf32> to vector<2xf32>
    %82 = vector.shape_cast %81 : vector<2xf32> to vector<2x1xf32>
    %cst_40 = arith.constant 3.200000e+01 : f32
    %83 = vector.broadcast %cst_40 : f32 to vector<2x1xf32>
    %84 = arith.divf %82, %83 : vector<2x1xf32>
    %85 = vector.broadcast %77 : vector<2x1xf32> to vector<2x32xf32>
    %86 = arith.subf %73, %85 : vector<2x32xf32>
    %cst_41 = arith.constant 9.99999974E-6 : f32
    %87 = vector.broadcast %cst_41 : f32 to vector<2x1xf32>
    %88 = arith.addf %84, %87 : vector<2x1xf32>
    %89 = math.rsqrt %88 : vector<2x1xf32>
    %90 = vector.broadcast %89 : vector<2x1xf32> to vector<2x32xf32>
    %91 = arith.mulf %86, %90 : vector<2x32xf32>
    %c0_42 = arith.constant 0 : index
    %c0_43 = arith.constant 0 : index
    %92 = vector.load %arg12[%c0_42, %c0_43] : memref<1x32xf32, #tpu.memory_space<vmem>>, vector<1x32xf32>
    %93 = vector.broadcast %92 : vector<1x32xf32> to vector<2x32xf32>
    %94 = arith.mulf %91, %93 : vector<2x32xf32>
    %c0_44 = arith.constant 0 : index
    %c0_45 = arith.constant 0 : index
    %95 = vector.load %arg13[%c0_44, %c0_45] : memref<1x32xf32, #tpu.memory_space<vmem>>, vector<1x32xf32>
    %96 = vector.broadcast %95 : vector<1x32xf32> to vector<2x32xf32>
    %97 = arith.addf %94, %96 : vector<2x32xf32>
    %cst_46 = arith.constant 0.000000e+00 : f32
    %98 = vector.broadcast %cst_46 : f32 to vector<2x32xf32>
    %99 = arith.cmpf ogt, %97, %98 : vector<2x32xf32>
    %cst_47 = arith.constant 0.00999999977 : f32
    %100 = vector.broadcast %cst_47 : f32 to vector<2x32xf32>
    %101 = arith.mulf %100, %97 : vector<2x32xf32>
    %102 = arith.select %99, %97, %101 : vector<2x32xi1>, vector<2x32xf32>
    %c0_48 = arith.constant 0 : index
    %c0_49 = arith.constant 0 : index
    %103 = vector.load %arg14[%c0_48, %c0_49] : memref<32x1xf32, #tpu.memory_space<vmem>>, vector<32x1xf32>
    %cst_50 = arith.constant dense<0.000000e+00> : vector<2x1xf32>
    %104 = tpu.matmul %102, %103, %cst_50 {dimension_numbers = #tpu.dot_dimension_numbers<[1], [0], [0], [1], [0, 0, 1, 1], [], []>} : vector<2x32xf32>, vector<32x1xf32>, vector<2x1xf32> -> vector<2x1xf32>
    %c0_51 = arith.constant 0 : index
    %c0_52 = arith.constant 0 : index
    %105 = vector.load %arg15[%c0_51, %c0_52] : memref<1x1xf32, #tpu.memory_space<vmem>>, vector<1x1xf32>
    %106 = vector.broadcast %105 : vector<1x1xf32> to vector<2x1xf32>
    %107 = arith.addf %104, %106 : vector<2x1xf32>
    %cst_53 = arith.constant 0.000000e+00 : f32
    %108 = vector.broadcast %cst_53 : f32 to vector<2x1xf32>
    %109 = arith.subf %108, %107 : vector<2x1xf32>
    %110 = math.exp %109 : vector<2x1xf32>
    %cst_54 = arith.constant 1.000000e+00 : f32
    %111 = vector.broadcast %cst_54 : f32 to vector<2x1xf32>
    %112 = arith.addf %111, %110 : vector<2x1xf32>
    %cst_55 = arith.constant 1.000000e+00 : f32
    %113 = vector.broadcast %cst_55 : f32 to vector<2x1xf32>
    %114 = arith.divf %113, %112 : vector<2x1xf32>
    %c0_56 = arith.constant 0 : index
    %c0_57 = arith.constant 0 : index
    %115 = vector.load %arg16[%c0_56, %c0_57] : memref<2x1xf32, #tpu.memory_space<vmem>>, vector<2x1xf32>
    tpu.vector_store %arg16[%c0_56, %c0_57], %114 {strides = array<i32>} : memref<2x1xf32, #tpu.memory_space<vmem>>, vector<2x1xf32>,
    return
  }
  func.func @transform_0(%arg0: i32) -> (i32, i32) {
    %c0_i32 = arith.constant 0 : i32
    %c0_i32_0 = arith.constant 0 : i32
    %c0_i32_1 = arith.constant 0 : i32
    return %c0_i32, %c0_i32_0 : i32, i32
  }
  func.func @transform_1(%arg0: i32) -> (i32, i32) {
    %c0_i32 = arith.constant 0 : i32
    %c0_i32_0 = arith.constant 0 : i32
    %c0_i32_1 = arith.constant 0 : i32
    return %c0_i32, %c0_i32_0 : i32, i32
  }
  func.func @transform_2(%arg0: i32) -> (i32, i32) {
    %c0_i32 = arith.constant 0 : i32
    %c0_i32_0 = arith.constant 0 : i32
    %c0_i32_1 = arith.constant 0 : i32
    return %c0_i32, %c0_i32_0 : i32, i32
  }
  func.func @transform_3(%arg0: i32) -> (i32, i32) {
    %c0_i32 = arith.constant 0 : i32
    %c0_i32_0 = arith.constant 0 : i32
    %c0_i32_1 = arith.constant 0 : i32
    return %c0_i32, %c0_i32_0 : i32, i32
  }
  func.func @transform_4(%arg0: i32) -> (i32, i32) {
    %c0_i32 = arith.constant 0 : i32
    %c0_i32_0 = arith.constant 0 : i32
    %c0_i32_1 = arith.constant 0 : i32
    return %c0_i32, %c0_i32_0 : i32, i32
  }
  func.func @transform_5(%arg0: i32) -> (i32, i32) {
    %c0_i32 = arith.constant 0 : i32
    %c0_i32_0 = arith.constant 0 : i32
    %c0_i32_1 = arith.constant 0 : i32
    return %c0_i32, %c0_i32_0 : i32, i32
  }
  func.func @transform_6(%arg0: i32) -> (i32, i32) {
    %c0_i32 = arith.constant 0 : i32
    %c0_i32_0 = arith.constant 0 : i32
    %c0_i32_1 = arith.constant 0 : i32
    return %c0_i32, %c0_i32_0 : i32, i32
  }
  func.func @transform_7(%arg0: i32) -> (i32, i32) {
    %c0_i32 = arith.constant 0 : i32
    %c0_i32_0 = arith.constant 0 : i32
    %c0_i32_1 = arith.constant 0 : i32
    return %c0_i32, %c0_i32_0 : i32, i32
  }
  func.func @transform_8(%arg0: i32) -> (i32, i32) {
    %c0_i32 = arith.constant 0 : i32
    %c0_i32_0 = arith.constant 0 : i32
    %c0_i32_1 = arith.constant 0 : i32
    return %c0_i32, %c0_i32_0 : i32, i32
  }
  func.func @transform_9(%arg0: i32) -> (i32, i32) {
    %c0_i32 = arith.constant 0 : i32
    %c0_i32_0 = arith.constant 0 : i32
    %c0_i32_1 = arith.constant 0 : i32
    return %c0_i32, %c0_i32_0 : i32, i32
  }
  func.func @transform_10(%arg0: i32) -> (i32, i32) {
    %c0_i32 = arith.constant 0 : i32
    %c0_i32_0 = arith.constant 0 : i32
    %c0_i32_1 = arith.constant 0 : i32
    return %c0_i32, %c0_i32_0 : i32, i32
  }
  func.func @transform_11(%arg0: i32) -> (i32, i32) {
    %c0_i32 = arith.constant 0 : i32
    %c0_i32_0 = arith.constant 0 : i32
    %c0_i32_1 = arith.constant 0 : i32
    return %c0_i32, %c0_i32_0 : i32, i32
  }
  func.func @transform_12(%arg0: i32) -> (i32, i32) {
    %c0_i32 = arith.constant 0 : i32
    %c0_i32_0 = arith.constant 0 : i32
    %c0_i32_1 = arith.constant 0 : i32
    return %c0_i32, %c0_i32_0 : i32, i32
  }
  func.func @transform_13(%arg0: i32) -> (i32, i32) {
    %c0_i32 = arith.constant 0 : i32
    %c0_i32_0 = arith.constant 0 : i32
    %c0_i32_1 = arith.constant 0 : i32
    return %c0_i32, %c0_i32_0 : i32, i32
  }
  func.func @transform_14(%arg0: i32) -> (i32, i32) {
    %c0_i32 = arith.constant 0 : i32
    %c0_i32_0 = arith.constant 0 : i32
    %c0_i32_1 = arith.constant 0 : i32
    return %c0_i32, %c0_i32_0 : i32, i32
  }
  func.func @transform_15(%arg0: i32) -> (i32, i32) {
    %c0_i32 = arith.constant 0 : i32
    %c0_i32_0 = arith.constant 0 : i32
    %c0_i32_1 = arith.constant 0 : i32
    return %c0_i32, %c0_i32_0 : i32, i32
  }
}

</mosaic_0001>

<bundles_post_ra>
// kernel: forward.69
= control target key start
LH: loop header
LB: loop body
LE: loop exit
PB: predicated region body
PF: predicated region fallthrough
CT: control target
= control target key end

     0   :  { %s4753_s1 = inlined_call_operand.vmem [shape: bf16[2304,256], index: 1, kind: input, shape index: {}]   ;;  %s4754_s0 = inlined_call_operand.vmem [shape: bf16[48,2304], index: 0, kind: input, shape index: {}]   ;;  %s4755_s2 = inlined_call_operand.vmem [shape: f32[1,256], index: 2, kind: input, shape index: {}]   ;;  %s4756_s3 = inlined_call_operand.vmem [shape: f32[48,256], index: 3, kind: output, shape index: {}]  }
   0x1   :  { %v3155_v0 = vld [vmem:[%s4753_s1 + $0x4] ss:$8 sps:$4 sm:$0xff]   ;;  %v3159_v2 = vld [vmem:[%s4753_s1] ss:$8 sps:$4 sm:$0xff]   ;;  %v3161_v4 = vld [vmem:[%s4753_s1 + $0x14] ss:$8 sps:$4 sm:$0xff]  }
   0x2   :  { %v3157_v1 = vld [vmem:[%s4753_s1 + $0x404] ss:$8 sps:$4 sm:$0xff]   ;;  %2078 = vmatprep.subr.bf16.mxu1 %v3155_v0  ;;  %v3160_v3 = vld [vmem:[%s4753_s1 + $0x400] ss:$8 sps:$4 sm:$0xff]   ;;  %v3163_v5 = vld [vmem:[%s4753_s1 + $0x414] ss:$8 sps:$4 sm:$0xff]  }
   0x3   :  { %2330 = vmatprep.subr.bf16.mxu0 %v3157_v1  ;;  %2079 = vmatpush1.bf16.msra.mxu1 %v3159_v2  ;;  %v3165_v6 = vld [vmem:[%s4753_s1 + $0x10] ss:$8 sps:$4 sm:$0xff]   ;;  %v3167_v8 = vld [vmem:[%s4753_s1 + $0x24] ss:$8 sps:$4 sm:$0xff]   ;;  %v3171_v10 = vld [vmem:[%s4753_s1 + $0x20] ss:$8 sps:$4 sm:$0xff]  }
   0x4   :  { %2331 = vmatpush1.bf16.msra.mxu0 %v3160_v3  ;;  %2080 = vmatprep.subr.bf16.mxu1 %v3161_v4  ;;  %v3166_v7 = vld [vmem:[%s4753_s1 + $0x410] ss:$8 sps:$4 sm:$0xff]   ;;  %v3169_v9 = vld [vmem:[%s4753_s1 + $0x424] ss:$8 sps:$4 sm:$0xff]   ;;  %v3172_v11 = vld [vmem:[%s4753_s1 + $0x420] ss:$8 sps:$4 sm:$0xff]  }
   0x5   :  { %2332 = vmatprep.subr.bf16.mxu0 %v3163_v5  ;;  %v3173_v12 = vld [vmem:[%s4753_s1 + $0x34] ss:$8 sps:$4 sm:$0xff]   ;;  %v3177_v14 = vld [vmem:[%s4753_s1 + $0x30] ss:$8 sps:$4 sm:$0xff]   ;;  %v3179_v16 = vld [vmem:[%s4753_s1 + $0x44] ss:$8 sps:$4 sm:$0xff]  }
   0x6   :  { %v3175_v13 = vld [vmem:[%s4753_s1 + $0x434] ss:$8 sps:$4 sm:$0xff]   ;;  %v3178_v15 = vld [vmem:[%s4753_s1 + $0x430] ss:$8 sps:$4 sm:$0xff]   ;;  %v3181_v17 = vld [vmem:[%s4753_s1 + $0x444] ss:$8 sps:$4 sm:$0xff]  }
   0x7   :  { %2081 = vmatpush1.bf16.msra.mxu1 %v3165_v6  ;;  %v3183_v18 = vld [vmem:[%s4753_s1 + $0x40] ss:$8 sps:$4 sm:$0xff]   ;;  %v3185_v20 = vld [vmem:[%s4753_s1 + $0x54] ss:$8 sps:$4 sm:$0xff]   ;;  %v3189_v22 = vld [vmem:[%s4753_s1 + $0x50] ss:$8 sps:$4 sm:$0xff]  }
   0x8   :  { %2333 = vmatpush1.bf16.msra.mxu0 %v3166_v7  ;;  %2082 = vmatprep.subr.bf16.mxu1 %v3167_v8  ;;  %v3184_v19 = vld [vmem:[%s4753_s1 + $0x440] ss:$8 sps:$4 sm:$0xff]   ;;  %v3187_v21 = vld [vmem:[%s4753_s1 + $0x454] ss:$8 sps:$4 sm:$0xff]   ;;  %v3190_v23 = vld [vmem:[%s4753_s1 + $0x450] ss:$8 sps:$4 sm:$0xff]  }
   0x9   :  { %2334 = vmatprep.subr.bf16.mxu0 %v3169_v9  ;;  %v3191_v24 = vld [vmem:[%s4753_s1 + $0x64] ss:$8 sps:$4 sm:$0xff]   ;;  %v3195_v26 = vld [vmem:[%s4753_s1 + $0x60] ss:$8 sps:$4 sm:$0xff]   ;;  %v3197_v28 = vld [vmem:[%s4753_s1 + $0x74] ss:$8 sps:$4 sm:$0xff]  }
   0xa   :  { %v3193_v25 = vld [vmem:[%s4753_s1 + $0x464] ss:$8 sps:$4 sm:$0xff]   ;;  %v3196_v27 = vld [vmem:[%s4753_s1 + $0x460] ss:$8 sps:$4 sm:$0xff]   ;;  %v3199_v29 = vld [vmem:[%s4753_s1 + $0x474] ss:$8 sps:$4 sm:$0xff]  }
   0xb   :  { %2083 = vmatpush1.bf16.msra.mxu1 %v3171_v10  ;;  %v3201_v30 = vld [vmem:[%s4753_s1 + $0x70] ss:$8 sps:$4 sm:$0xff]   ;;  %v3203_v32 = vld [vmem:[%s4753_s1 + $0x84] ss:$8 sps:$4 sm:$0xff]   ;;  %v3207_v34 = vld [vmem:[%s4753_s1 + $0x80] ss:$8 sps:$4 sm:$0xff]  }
   0xc   :  { %2335 = vmatpush1.bf16.msra.mxu0 %v3172_v11  ;;  %2084 = vmatprep.subr.bf16.mxu1 %v3173_v12  ;;  %v3202_v31 = vld [vmem:[%s4753_s1 + $0x470] ss:$8 sps:$4 sm:$0xff]   ;;  %v3205_v33 = vld [vmem:[%s4753_s1 + $0x484] ss:$8 sps:$4 sm:$0xff]   ;;  %v3208_v35 = vld [vmem:[%s4753_s1 + $0x480] ss:$8 sps:$4 sm:$0xff]  }
   0xd   :  { %2336 = vmatprep.subr.bf16.mxu0 %v3175_v13  ;;  %v3209_v36 = vld [vmem:[%s4753_s1 + $0x94] ss:$8 sps:$4 sm:$0xff]   ;;  %v3213_v38 = vld [vmem:[%s4753_s1 + $0x90] ss:$8 sps:$4 sm:$0xff]   ;;  %v3215_v40 = vld [vmem:[%s4753_s1 + $0xa4] ss:$8 sps:$4 sm:$0xff]  }
   0xe   :  { %v3211_v37 = vld [vmem:[%s4753_s1 + $0x494] ss:$8 sps:$4 sm:$0xff]   ;;  %v3214_v39 = vld [vmem:[%s4753_s1 + $0x490] ss:$8 sps:$4 sm:$0xff]   ;;  %v3217_v41 = vld [vmem:[%s4753_s1 + $0x4a4] ss:$8 sps:$4 sm:$0xff]  }
   0xf   :  { %2085 = vmatpush1.bf16.msra.mxu1 %v3177_v14  ;;  %v3219_v42 = vld [vmem:[%s4753_s1 + $0xa0] ss:$8 sps:$4 sm:$0xff]   ;;  %v3221_v44 = vld [vmem:[%s4753_s1 + $0xb4] ss:$8 sps:$4 sm:$0xff]   ;;  %v3225_v46 = vld [vmem:[%s4753_s1 + $0xb0] ss:$8 sps:$4 sm:$0xff]  }
  0x10   :  { %2337 = vmatpush1.bf16.msra.mxu0 %v3178_v15  ;;  %2086 = vmatprep.subr.bf16.mxu1 %v3179_v16  ;;  %v3220_v43 = vld [vmem:[%s4753_s1 + $0x4a0] ss:$8 sps:$4 sm:$0xff]   ;;  %v3223_v45 = vld [vmem:[%s4753_s1 + $0x4b4] ss:$8 sps:$4 sm:$0xff]   ;;  %v3226_v47 = vld [vmem:[%s4753_s1 + $0x4b0] ss:$8 sps:$4 sm:$0xff]  }
  0x11   :  { %2338 = vmatprep.subr.bf16.mxu0 %v3181_v17  ;;  %v3253_v48 = vld [vmem:[%s4754_s0 + $0x4] ss:$72 sps:$4 sm:$0xff]   ;;  %v3231_v52 = vld [vmem:[%s4753_s1 + $0xc0] ss:$8 sps:$4 sm:$0xff]   ;;  %v3233_v54 = vld [vmem:[%s4753_s1 + $0xd4] ss:$8 sps:$4 sm:$0xff]  }
  0x12   :  { %v3227_v49 = vld [vmem:[%s4753_s1 + $0xc4] ss:$8 sps:$4 sm:$0xff]   ;;  %2110 = vmatprep.mubr.bf16.mxu1 %v3253_v48  ;;  %v3232_v53 = vld [vmem:[%s4753_s1 + $0x4c0] ss:$8 sps:$4 sm:$0xff]   ;;  %v3235_v55 = vld [vmem:[%s4753_s1 + $0x4d4] ss:$8 sps:$4 sm:$0xff]  }
  0x13   :  { %2087 = vmatpush1.bf16.msra.mxu1 %v3183_v18  ;;  %v3229_v50 = vld [vmem:[%s4753_s1 + $0x4c4] ss:$8 sps:$4 sm:$0xff]   ;;  %v3237_v56 = vld [vmem:[%s4753_s1 + $0xd0] ss:$8 sps:$4 sm:$0xff]   ;;  %v3243_v60 = vld [vmem:[%s4753_s1 + $0xe0] ss:$8 sps:$4 sm:$0xff]  }
  0x14   :  { %2339 = vmatpush1.bf16.msra.mxu0 %v3184_v19  ;;  %2088 = vmatprep.subr.bf16.mxu1 %v3185_v20  ;;  %v3259_v51 = vld [vmem:[%s4754_s0 + $0x24] ss:$72 sps:$4 sm:$0xff]   ;;  %v3238_v57 = vld [vmem:[%s4753_s1 + $0x4d0] ss:$8 sps:$4 sm:$0xff]   ;;  %v3244_v61 = vld [vmem:[%s4753_s1 + $0x4e0] ss:$8 sps:$4 sm:$0xff]  }
  0x15   :  { %2340 = vmatprep.subr.bf16.mxu0 %v3187_v21  ;;  %2362 = vmatprep.mubr.bf16.mxu0 %v3259_v51  ;;  %v3239_v58 = vld [vmem:[%s4753_s1 + $0xe4] ss:$8 sps:$4 sm:$0xff]   ;;  %v3245_v62 = vld [vmem:[%s4753_s1 + $0xf4] ss:$8 sps:$4 sm:$0xff]   ;;  %v3249_v0 = vld [vmem:[%s4753_s1 + $0xf0] ss:$8 sps:$4 sm:$0xff]  }
  0x16   :  { %v3241_v59 = vld [vmem:[%s4753_s1 + $0x4e4] ss:$8 sps:$4 sm:$0xff]   ;;  %v3247_v63 = vld [vmem:[%s4753_s1 + $0x4f4] ss:$8 sps:$4 sm:$0xff]   ;;  %v3250_v1 = vld [vmem:[%s4753_s1 + $0x4f0] ss:$8 sps:$4 sm:$0xff]  }
  0x17   :  { %2089 = vmatpush1.bf16.msra.mxu1 %v3189_v22  ;;  %v3256_v2 = vld [vmem:[%s4753_s1 + $0x104] ss:$8 sps:$4 sm:$0xff]   ;;  %v3251_v4 = vld [vmem:[%s4754_s0] ss:$72 sps:$4 sm:$0xff]   ;;  %v3265_v8 = vld [vmem:[%s4753_s1 + $0x114] ss:$8 sps:$4 sm:$0xff]  }
  0x18   :  { %2341 = vmatpush1.bf16.msra.mxu0 %v3190_v23  ;;  %2090 = vmatprep.subr.bf16.mxu1 %v3191_v24  ;;  %v3262_v3 = vld [vmem:[%s4753_s1 + $0x504] ss:$8 sps:$4 sm:$0xff]   ;;  %v3254_v5 = vld [vmem:[%s4753_s1 + $0x100] ss:$8 sps:$4 sm:$0xff]   ;;  %v3268_v9 = vld [vmem:[%s4753_s1 + $0x514] ss:$8 sps:$4 sm:$0xff]  }
  0x19   :  { %2342 = vmatprep.subr.bf16.mxu0 %v3193_v25  ;;  %v3257_v6 = vld [vmem:[%s4754_s0 + $0x20] ss:$72 sps:$4 sm:$0xff]   ;;  %v3263_v10 = vld [vmem:[%s4753_s1 + $0x110] ss:$8 sps:$4 sm:$0xff]   ;;  %v3271_v12 = vld [vmem:[%s4753_s1 + $0x124] ss:$8 sps:$4 sm:$0xff]  }
  0x1a   :  { %v3260_v7 = vld [vmem:[%s4753_s1 + $0x500] ss:$8 sps:$4 sm:$0xff]   ;;  %v3266_v11 = vld [vmem:[%s4753_s1 + $0x510] ss:$8 sps:$4 sm:$0xff]   ;;  %v3274_v13 = vld [vmem:[%s4753_s1 + $0x524] ss:$8 sps:$4 sm:$0xff]  }
  0x1b   :  { %2091 = vmatpush1.bf16.msra.mxu1 %v3195_v26  ;;  %v3269_v14 = vld [vmem:[%s4753_s1 + $0x120] ss:$8 sps:$4 sm:$0xff]   ;;  %v3277_v16 = vld [vmem:[%s4753_s1 + $0x134] ss:$8 sps:$4 sm:$0xff]   ;;  %v3275_v18 = vld [vmem:[%s4753_s1 + $0x130] ss:$8 sps:$4 sm:$0xff]  }
  0x1c   :  { %2343 = vmatpush1.bf16.msra.mxu0 %v3196_v27  ;;  %2092 = vmatprep.subr.bf16.mxu1 %v3197_v28  ;;  %v3272_v15 = vld [vmem:[%s4753_s1 + $0x520] ss:$8 sps:$4 sm:$0xff]   ;;  %v3280_v17 = vld [vmem:[%s4753_s1 + $0x534] ss:$8 sps:$4 sm:$0xff]   ;;  %v3278_v19 = vld [vmem:[%s4753_s1 + $0x530] ss:$8 sps:$4 sm:$0xff]  }
  0x1d   :  { %2344 = vmatprep.subr.bf16.mxu0 %v3199_v29  ;;  %v3283_v20 = vld [vmem:[%s4753_s1 + $0x144] ss:$8 sps:$4 sm:$0xff]   ;;  %v3329_v22 = vld [vmem:[%s4754_s0 + $0x94] ss:$72 sps:$4 sm:$0xff]   ;;  %v3281_v23 = vld [vmem:[%s4753_s1 + $0x140] ss:$8 sps:$4 sm:$0xff]  }
  0x1e   :  { %v3286_v21 = vld [vmem:[%s4753_s1 + $0x544] ss:$8 sps:$4 sm:$0xff]   ;;  %v3284_v24 = vld [vmem:[%s4753_s1 + $0x540] ss:$8 sps:$4 sm:$0xff]   ;;  %v3334_v25 = vld [vmem:[%s4754_s0 + $0xb4] ss:$72 sps:$4 sm:$0xff]  }
  0x1f   :  { %2093 = vmatpush1.bf16.msra.mxu1 %v3201_v30  ;;  %v3289_v26 = vld [vmem:[%s4753_s1 + $0x154] ss:$8 sps:$4 sm:$0xff]   ;;  %v3339_v28 = vld [vmem:[%s4754_s0 + $0x90] ss:$72 sps:$4 sm:$0xff]   ;;  %v3308_v48 = vld [vmem:[%s4753_s1 + $0x580] ss:$8 sps:$4 sm:$0xff]  }
  0x20   :  { %2345 = vmatpush1.bf16.msra.mxu0 %v3202_v31  ;;  %2094 = vmatprep.subr.bf16.mxu1 %v3203_v32  ;;  %v3292_v27 = vld [vmem:[%s4753_s1 + $0x554] ss:$8 sps:$4 sm:$0xff]   ;;  %v3340_v29 = vld [vmem:[%s4754_s0 + $0xb0] ss:$72 sps:$4 sm:$0xff]   ;;  %v3295_v32 = vld [vmem:[%s4753_s1 + $0x164] ss:$8 sps:$4 sm:$0xff]  }
  0x21   :  { %2346 = vmatprep.subr.bf16.mxu0 %v3205_v33  ;;  %v3287_v30 = vld [vmem:[%s4753_s1 + $0x150] ss:$8 sps:$4 sm:$0xff]   ;;  %v3298_v33 = vld [vmem:[%s4753_s1 + $0x564] ss:$8 sps:$4 sm:$0xff]  }
  0x22   :  { %v3290_v31 = vld [vmem:[%s4753_s1 + $0x550] ss:$8 sps:$4 sm:$0xff]   ;;  %v3373_v51 = vld [vmem:[%s4754_s0 + $0x2c] ss:$72 sps:$4 sm:$0xff]  }
  0x23   :  { %2095 = vmatpush1.bf16.msra.mxu1 %v3207_v34  ;;  %v3347_v34 = vld [vmem:[%s4754_s0 + $0x124] ss:$72 sps:$4 sm:$0xff]  }
  0x24   :  { %2347 = vmatpush1.bf16.msra.mxu0 %v3208_v35  ;;  %2096 = vmatprep.subr.bf16.mxu1 %v3209_v36  ;;  %v3293_v35 = vld [vmem:[%s4753_s1 + $0x160] ss:$8 sps:$4 sm:$0xff]  }
  0x25   :  { %2348 = vmatprep.subr.bf16.mxu0 %v3211_v37  ;;  %v3296_v36 = vld [vmem:[%s4753_s1 + $0x560] ss:$8 sps:$4 sm:$0xff]   ;;  %v3352_v37 = vld [vmem:[%s4754_s0 + $0x144] ss:$72 sps:$4 sm:$0xff]  }
  0x27   :  { %2097 = vmatpush1.bf16.msra.mxu1 %v3213_v38  ;;  %v3301_v38 = vld [vmem:[%s4753_s1 + $0x174] ss:$8 sps:$4 sm:$0xff]  }
  0x28   :  { %2349 = vmatpush1.bf16.msra.mxu0 %v3214_v39  ;;  %2098 = vmatprep.subr.bf16.mxu1 %v3215_v40  ;;  %v3304_v39 = vld [vmem:[%s4753_s1 + $0x574] ss:$8 sps:$4 sm:$0xff]   ;;  %v3357_v40 = vld [vmem:[%s4754_s0 + $0x120] ss:$72 sps:$4 sm:$0xff]  }
  0x29   :  { %2350 = vmatprep.subr.bf16.mxu0 %v3217_v41  ;;  %v3358_v41 = vld [vmem:[%s4754_s0 + $0x140] ss:$72 sps:$4 sm:$0xff]  }
  0x2b   :  { %2099 = vmatpush1.bf16.msra.mxu1 %v3219_v42  ;;  %v3299_v42 = vld [vmem:[%s4753_s1 + $0x170] ss:$8 sps:$4 sm:$0xff]  }
  0x2c   :  { %2351 = vmatpush1.bf16.msra.mxu0 %v3220_v43  ;;  %2100 = vmatprep.subr.bf16.mxu1 %v3221_v44  ;;  %v3302_v43 = vld [vmem:[%s4753_s1 + $0x570] ss:$8 sps:$4 sm:$0xff]   ;;  %v3307_v44 = vld [vmem:[%s4753_s1 + $0x184] ss:$8 sps:$4 sm:$0xff]  }
  0x2d   :  { %2352 = vmatprep.subr.bf16.mxu0 %v3223_v45  ;;  %v3310_v45 = vld [vmem:[%s4753_s1 + $0x584] ss:$8 sps:$4 sm:$0xff]  }
  0x2f   :  { %2101 = vmatpush1.bf16.msra.mxu1 %v3225_v46  ;;  %v3305_v46 = vld [vmem:[%s4753_s1 + $0x180] ss:$8 sps:$4 sm:$0xff]  }
  0x30   :  { %2353 = vmatpush1.bf16.msra.mxu0 %v3226_v47  ;;  %2102 = vmatprep.subr.bf16.mxu1 %v3227_v49  ;;  %v3367_v47 = vld [vmem:[%s4754_s0 + $0xc] ss:$72 sps:$4 sm:$0xff]  }
  0x31   :  { %2354 = vmatprep.subr.bf16.mxu0 %v3229_v50  ;;  %v3313_v49 = vld [vmem:[%s4753_s1 + $0x194] ss:$8 sps:$4 sm:$0xff]  }
  0x32   :  { %v3316_v50 = vld [vmem:[%s4753_s1 + $0x594] ss:$8 sps:$4 sm:$0xff]  }
  0x33   :  { %2103 = vmatpush1.bf16.msra.mxu1 %v3231_v52  ;;  %v3311_v52 = vld [vmem:[%s4753_s1 + $0x190] ss:$8 sps:$4 sm:$0xff]  }
  0x34   :  { %2355 = vmatpush1.bf16.msra.mxu0 %v3232_v53  ;;  %2104 = vmatprep.subr.bf16.mxu1 %v3233_v54  ;;  %v3314_v53 = vld [vmem:[%s4753_s1 + $0x590] ss:$8 sps:$4 sm:$0xff]   ;;  %v3319_v54 = vld [vmem:[%s4753_s1 + $0x1a4] ss:$8 sps:$4 sm:$0xff]  }
  0x35   :  { %2356 = vmatprep.subr.bf16.mxu0 %v3235_v55  ;;  %v3322_v55 = vld [vmem:[%s4753_s1 + $0x5a4] ss:$8 sps:$4 sm:$0xff]  }
  0x37   :  { %2105 = vmatpush1.bf16.msra.mxu1 %v3237_v56  ;;  %v3317_v56 = vld [vmem:[%s4753_s1 + $0x1a0] ss:$8 sps:$4 sm:$0xff]  }
  0x38   :  { %2357 = vmatpush1.bf16.msra.mxu0 %v3238_v57  ;;  %2106 = vmatprep.subr.bf16.mxu1 %v3239_v58  ;;  %v3320_v57 = vld [vmem:[%s4753_s1 + $0x5a0] ss:$8 sps:$4 sm:$0xff]   ;;  %v3325_v58 = vld [vmem:[%s4753_s1 + $0x1b4] ss:$8 sps:$4 sm:$0xff]  }
  0x39   :  { %2358 = vmatprep.subr.bf16.mxu0 %v3241_v59  ;;  %v3328_v59 = vld [vmem:[%s4753_s1 + $0x5b4] ss:$8 sps:$4 sm:$0xff]  }
  0x3b   :  { %2107 = vmatpush1.bf16.msra.mxu1 %v3243_v60  ;;  %v3323_v60 = vld [vmem:[%s4753_s1 + $0x1b0] ss:$8 sps:$4 sm:$0xff]  }
  0x3c   :  { %2359 = vmatpush1.bf16.msra.mxu0 %v3244_v61  ;;  %2108 = vmatprep.subr.bf16.mxu1 %v3245_v62  ;;  %v3326_v61 = vld [vmem:[%s4753_s1 + $0x5b0] ss:$8 sps:$4 sm:$0xff]   ;;  %v3333_v62 = vld [vmem:[%s4753_s1 + $0x1c4] ss:$8 sps:$4 sm:$0xff]  }
  0x3d   :  { %2360 = vmatprep.subr.bf16.mxu0 %v3247_v63  ;;  %v3338_v63 = vld [vmem:[%s4753_s1 + $0x5c4] ss:$8 sps:$4 sm:$0xff]  }
  0x3f   :  { %2109 = vmatpush1.bf16.msra.mxu1 %v3249_v0  ;;  %v3331_v0 = vld [vmem:[%s4753_s1 + $0x1c0] ss:$8 sps:$4 sm:$0xff]  }
  0x40   :  { %2361 = vmatpush1.bf16.msra.mxu0 %v3250_v1  ;;  %2141 = vmatprep.subr.bf16.mxu1 %v3256_v2  ;;  %v3336_v1 = vld [vmem:[%s4753_s1 + $0x5c0] ss:$8 sps:$4 sm:$0xff]   ;;  %v3343_v2 = vld [vmem:[%s4753_s1 + $0x1d4] ss:$8 sps:$4 sm:$0xff]  }
  0x41   :  { %2393 = vmatprep.subr.bf16.mxu0 %v3262_v3  ;;  %v3346_v3 = vld [vmem:[%s4753_s1 + $0x5d4] ss:$8 sps:$4 sm:$0xff]  }
  0x42   :  { %2111 = vmatmul.mubr.bf16.vlgmr.msra.gmra.mrb[0].mxu1 %v3251_v4  ;;  %v3341_v4 = vld [vmem:[%s4753_s1 + $0x1d0] ss:$8 sps:$4 sm:$0xff]  }
  0x43   :  { %2363 = vmatmul.mubr.bf16.vlgmr.msra.gmra.mrb[0].mxu0 %v3257_v6  ;;  %2142 = vmatpush1.bf16.msra.mxu1 %v3254_v5  ;;  %v3344_v5 = vld [vmem:[%s4753_s1 + $0x5d0] ss:$8 sps:$4 sm:$0xff]   ;;  %v3351_v6 = vld [vmem:[%s4753_s1 + $0x1e4] ss:$8 sps:$4 sm:$0xff]  }
  0x44   :  { %2394 = vmatpush1.bf16.msra.mxu0 %v3260_v7  ;;  %2143 = vmatprep.subr.bf16.mxu1 %v3265_v8  ;;  %v3356_v7 = vld [vmem:[%s4753_s1 + $0x5e4] ss:$8 sps:$4 sm:$0xff]   ;;  %v3349_v8 = vld [vmem:[%s4753_s1 + $0x1e0] ss:$8 sps:$4 sm:$0xff]  }
  0x45   :  { %2395 = vmatprep.subr.bf16.mxu0 %v3268_v9  ;;  %2120 = vmatprep.mubr.bf16.mxu1 %v3329_v22  ;;  %v3354_v9 = vld [vmem:[%s4753_s1 + $0x5e0] ss:$8 sps:$4 sm:$0xff]   ;;  %v3443_v22 = vld [vmem:[%s4754_s0 + $0x9c] ss:$72 sps:$4 sm:$0xff]  }
  0x46   :  { %2372 = vmatprep.mubr.bf16.mxu0 %v3334_v25  ;;  %v3380_v25 = vld [vmem:[%s4753_s1 + $0x610] ss:$8 sps:$4 sm:$0xff]  }
  0x47   :  { %2144 = vmatpush1.bf16.msra.mxu1 %v3263_v10  ;;  %v3361_v10 = vld [vmem:[%s4753_s1 + $0x1f4] ss:$8 sps:$4 sm:$0xff]  }
  0x48   :  { %2396 = vmatpush1.bf16.msra.mxu0 %v3266_v11  ;;  %2145 = vmatprep.subr.bf16.mxu1 %v3271_v12  ;;  %v3364_v11 = vld [vmem:[%s4753_s1 + $0x5f4] ss:$8 sps:$4 sm:$0xff]   ;;  %v3359_v12 = vld [vmem:[%s4753_s1 + $0x1f0] ss:$8 sps:$4 sm:$0xff]  }
  0x49   :  { %2397 = vmatprep.subr.bf16.mxu0 %v3274_v13  ;;  %v3362_v13 = vld [vmem:[%s4753_s1 + $0x5f0] ss:$8 sps:$4 sm:$0xff]  }
  0x4a   :  { %2121 = vmatmul.mubr.bf16.gmra.mrb[4].mxu1 %v3339_v28  ;;  %v3383_v28 = vld [vmem:[%s4753_s1 + $0x220] ss:$8 sps:$4 sm:$0xff]  }
  0x4b   :  { %2146 = vmatpush1.bf16.msra.mxu1 %v3269_v14  ;;  %2373 = vmatmul.mubr.bf16.gmra.mrb[4].mxu0 %v3340_v29  ;;  %v3370_v14 = vld [vmem:[%s4753_s1 + $0x204] ss:$8 sps:$4 sm:$0xff]   ;;  %v3386_v29 = vld [vmem:[%s4753_s1 + $0x620] ss:$8 sps:$4 sm:$0xff]  }
  0x4c   :  { %2398 = vmatpush1.bf16.msra.mxu0 %v3272_v15  ;;  %2147 = vmatprep.subr.bf16.mxu1 %v3277_v16  ;;  %v3376_v15 = vld [vmem:[%s4753_s1 + $0x604] ss:$8 sps:$4 sm:$0xff]   ;;  %v3365_v16 = vld [vmem:[%s4754_s0 + $0x8] ss:$72 sps:$4 sm:$0xff]  }
  0x4d   :  { %2399 = vmatprep.subr.bf16.mxu0 %v3280_v17  ;;  %2130 = vmatprep.mubr.bf16.mxu1 %v3347_v34  ;;  %v3368_v17 = vld [vmem:[%s4753_s1 + $0x200] ss:$8 sps:$4 sm:$0xff]   ;;  %v3461_v34 = vld [vmem:[%s4754_s0 + $0x12c] ss:$72 sps:$4 sm:$0xff]  }
  0x4e   :  { %2382 = vmatprep.mubr.bf16.mxu0 %v3352_v37  ;;  %v3392_v37 = vld [vmem:[%s4753_s1 + $0x630] ss:$8 sps:$4 sm:$0xff]  }
  0x4f   :  { %2148 = vmatpush1.bf16.msra.mxu1 %v3275_v18  ;;  %v3371_v18 = vld [vmem:[%s4754_s0 + $0x28] ss:$72 sps:$4 sm:$0xff]  }
  0x50   :  { %2400 = vmatpush1.bf16.msra.mxu0 %v3278_v19  ;;  %2149 = vmatprep.subr.bf16.mxu1 %v3283_v20  ;;  %v3374_v19 = vld [vmem:[%s4753_s1 + $0x600] ss:$8 sps:$4 sm:$0xff]   ;;  %v3379_v20 = vld [vmem:[%s4753_s1 + $0x214] ss:$8 sps:$4 sm:$0xff]  }
  0x51   :  { %2401 = vmatprep.subr.bf16.mxu0 %v3286_v21  ;;  %v3382_v21 = vld [vmem:[%s4753_s1 + $0x614] ss:$8 sps:$4 sm:$0xff]  }
  0x52   :  { %2131 = vmatmul.mubr.bf16.gmra.mrb[8].mxu1 %v3357_v40  ;;  %v3395_v40 = vld [vmem:[%s4753_s1 + $0x240] ss:$8 sps:$4 sm:$0xff]  }
  0x53   :  { %2150 = vmatpush1.bf16.msra.mxu1 %v3281_v23  ;;  %2383 = vmatmul.mubr.bf16.gmra.mrb[8].mxu0 %v3358_v41  ;;  %v3448_v23 = vld [vmem:[%s4754_s0 + $0xbc] ss:$72 sps:$4 sm:$0xff]   ;;  %v3398_v41 = vld [vmem:[%s4753_s1 + $0x640] ss:$8 sps:$4 sm:$0xff]  }
  0x54   :  { %2402 = vmatpush1.bf16.msra.mxu0 %v3284_v24  ;;  %2151 = vmatprep.subr.bf16.mxu1 %v3289_v26  ;;  %v3377_v24 = vld [vmem:[%s4753_s1 + $0x210] ss:$8 sps:$4 sm:$0xff]   ;;  %v3385_v26 = vld [vmem:[%s4753_s1 + $0x224] ss:$8 sps:$4 sm:$0xff]  }
  0x55   :  { %2403 = vmatprep.subr.bf16.mxu0 %v3292_v27  ;;  %2173 = vmatprep.mubr.bf16.mxu1 %v3367_v47  ;;  %v3388_v27 = vld [vmem:[%s4753_s1 + $0x624] ss:$8 sps:$4 sm:$0xff]   ;;  %v3481_v47 = vld [vmem:[%s4754_s0 + $0x14] ss:$72 sps:$4 sm:$0xff]  }
  0x56   :  { %2425 = vmatprep.mubr.bf16.mxu0 %v3373_v51  ;;  %v3412_v51 = vld [vmem:[%s4753_s1 + $0x664] ss:$8 sps:$4 sm:$0xff]  }
  0x57   :  { %2152 = vmatpush1.bf16.msra.mxu1 %v3287_v30  ;;  %v3453_v30 = vld [vmem:[%s4754_s0 + $0x98] ss:$72 sps:$4 sm:$0xff]  }
  0x58   :  { %2404 = vmatpush1.bf16.msra.mxu0 %v3290_v31  ;;  %2153 = vmatprep.subr.bf16.mxu1 %v3295_v32  ;;  %v3454_v31 = vld [vmem:[%s4754_s0 + $0xb8] ss:$72 sps:$4 sm:$0xff]   ;;  %v3391_v32 = vld [vmem:[%s4753_s1 + $0x234] ss:$8 sps:$4 sm:$0xff]  }
  0x59   :  { %2405 = vmatprep.subr.bf16.mxu0 %v3298_v33  ;;  %v3394_v33 = vld [vmem:[%s4753_s1 + $0x634] ss:$8 sps:$4 sm:$0xff]  }
  0x5b   :  { %2154 = vmatpush1.bf16.msra.mxu1 %v3293_v35  ;;  %v3466_v35 = vld [vmem:[%s4754_s0 + $0x14c] ss:$72 sps:$4 sm:$0xff]  }
  0x5c   :  { %2406 = vmatpush1.bf16.msra.mxu0 %v3296_v36  ;;  %2155 = vmatprep.subr.bf16.mxu1 %v3301_v38  ;;  %v3389_v36 = vld [vmem:[%s4753_s1 + $0x230] ss:$8 sps:$4 sm:$0xff]   ;;  %v3397_v38 = vld [vmem:[%s4753_s1 + $0x244] ss:$8 sps:$4 sm:$0xff]  }
  0x5d   :  { %2407 = vmatprep.subr.bf16.mxu0 %v3304_v39  ;;  %v3400_v39 = vld [vmem:[%s4753_s1 + $0x644] ss:$8 sps:$4 sm:$0xff]  }
  0x5f   :  { %2156 = vmatpush1.bf16.msra.mxu1 %v3299_v42  ;;  %v3471_v42 = vld [vmem:[%s4754_s0 + $0x128] ss:$72 sps:$4 sm:$0xff]  }
  0x60   :  { %2408 = vmatpush1.bf16.msra.mxu0 %v3302_v43  ;;  %2157 = vmatprep.subr.bf16.mxu1 %v3307_v44  ;;  %v3472_v43 = vld [vmem:[%s4754_s0 + $0x148] ss:$72 sps:$4 sm:$0xff]   ;;  %v3403_v44 = vld [vmem:[%s4753_s1 + $0x254] ss:$8 sps:$4 sm:$0xff]  }
  0x61   :  { %2409 = vmatprep.subr.bf16.mxu0 %v3310_v45  ;;  %v3406_v45 = vld [vmem:[%s4753_s1 + $0x654] ss:$8 sps:$4 sm:$0xff]  }
  0x63   :  { %2158 = vmatpush1.bf16.msra.mxu1 %v3305_v46  ;;  %v3401_v46 = vld [vmem:[%s4753_s1 + $0x250] ss:$8 sps:$4 sm:$0xff]  }
  0x64   :  { %2410 = vmatpush1.bf16.msra.mxu0 %v3308_v48  ;;  %2159 = vmatprep.subr.bf16.mxu1 %v3313_v49  ;;  %v3404_v48 = vld [vmem:[%s4753_s1 + $0x650] ss:$8 sps:$4 sm:$0xff]   ;;  %v3487_v49 = vld [vmem:[%s4754_s0 + $0x34] ss:$72 sps:$4 sm:$0xff]  }
  0x65   :  { %2411 = vmatprep.subr.bf16.mxu0 %v3316_v50  ;;  %v3409_v50 = vld [vmem:[%s4753_s1 + $0x264] ss:$8 sps:$4 sm:$0xff]  }
  0x67   :  { %2160 = vmatpush1.bf16.msra.mxu1 %v3311_v52  ;;  %v3407_v52 = vld [vmem:[%s4753_s1 + $0x260] ss:$8 sps:$4 sm:$0xff]  }
  0x68   :  { %2412 = vmatpush1.bf16.msra.mxu0 %v3314_v53  ;;  %2161 = vmatprep.subr.bf16.mxu1 %v3319_v54  ;;  %v3410_v53 = vld [vmem:[%s4753_s1 + $0x660] ss:$8 sps:$4 sm:$0xff]   ;;  %v3415_v54 = vld [vmem:[%s4753_s1 + $0x274] ss:$8 sps:$4 sm:$0xff]  }
  0x69   :  { %2413 = vmatprep.subr.bf16.mxu0 %v3322_v55  ;;  %v3418_v55 = vld [vmem:[%s4753_s1 + $0x674] ss:$8 sps:$4 sm:$0xff]  }
  0x6b   :  { %2162 = vmatpush1.bf16.msra.mxu1 %v3317_v56  ;;  %v3413_v56 = vld [vmem:[%s4753_s1 + $0x270] ss:$8 sps:$4 sm:$0xff]  }
  0x6c   :  { %2414 = vmatpush1.bf16.msra.mxu0 %v3320_v57  ;;  %2163 = vmatprep.subr.bf16.mxu1 %v3325_v58  ;;  %v3416_v57 = vld [vmem:[%s4753_s1 + $0x670] ss:$8 sps:$4 sm:$0xff]   ;;  %v3421_v58 = vld [vmem:[%s4753_s1 + $0x284] ss:$8 sps:$4 sm:$0xff]  }
  0x6d   :  { %2415 = vmatprep.subr.bf16.mxu0 %v3328_v59  ;;  %v3424_v59 = vld [vmem:[%s4753_s1 + $0x684] ss:$8 sps:$4 sm:$0xff]  }
  0x6f   :  { %2164 = vmatpush1.bf16.msra.mxu1 %v3323_v60  ;;  %v3419_v60 = vld [vmem:[%s4753_s1 + $0x280] ss:$8 sps:$4 sm:$0xff]  }
  0x70   :  { %2416 = vmatpush1.bf16.msra.mxu0 %v3326_v61  ;;  %2165 = vmatprep.subr.bf16.mxu1 %v3333_v62  ;;  %v3422_v61 = vld [vmem:[%s4753_s1 + $0x680] ss:$8 sps:$4 sm:$0xff]   ;;  %v3427_v62 = vld [vmem:[%s4753_s1 + $0x294] ss:$8 sps:$4 sm:$0xff]  }
  0x71   :  { %2417 = vmatprep.subr.bf16.mxu0 %v3338_v63  ;;  %v3430_v63 = vld [vmem:[%s4753_s1 + $0x694] ss:$8 sps:$4 sm:$0xff]  }
  0x73   :  { %2166 = vmatpush1.bf16.msra.mxu1 %v3331_v0  ;;  %v3425_v0 = vld [vmem:[%s4753_s1 + $0x290] ss:$8 sps:$4 sm:$0xff]  }
  0x74   :  { %2418 = vmatpush1.bf16.msra.mxu0 %v3336_v1  ;;  %2167 = vmatprep.subr.bf16.mxu1 %v3343_v2  ;;  %v3428_v1 = vld [vmem:[%s4753_s1 + $0x690] ss:$8 sps:$4 sm:$0xff]   ;;  %v3433_v2 = vld [vmem:[%s4753_s1 + $0x2a4] ss:$8 sps:$4 sm:$0xff]  }
  0x75   :  { %2419 = vmatprep.subr.bf16.mxu0 %v3346_v3  ;;  %v3436_v3 = vld [vmem:[%s4753_s1 + $0x6a4] ss:$8 sps:$4 sm:$0xff]  }
  0x77   :  { %2168 = vmatpush1.bf16.msra.mxu1 %v3341_v4  ;;  %v3431_v4 = vld [vmem:[%s4753_s1 + $0x2a0] ss:$8 sps:$4 sm:$0xff]  }
  0x78   :  { %2420 = vmatpush1.bf16.msra.mxu0 %v3344_v5  ;;  %2169 = vmatprep.subr.bf16.mxu1 %v3351_v6  ;;  %v3434_v5 = vld [vmem:[%s4753_s1 + $0x6a0] ss:$8 sps:$4 sm:$0xff]   ;;  %v3439_v6 = vld [vmem:[%s4753_s1 + $0x2b4] ss:$8 sps:$4 sm:$0xff]  }
  0x79   :  { %2421 = vmatprep.subr.bf16.mxu0 %v3356_v7  ;;  %v3442_v7 = vld [vmem:[%s4753_s1 + $0x6b4] ss:$8 sps:$4 sm:$0xff]  }
  0x7b   :  { %2170 = vmatpush1.bf16.msra.mxu1 %v3349_v8  ;;  %v3437_v8 = vld [vmem:[%s4753_s1 + $0x2b0] ss:$8 sps:$4 sm:$0xff]  }
  0x7c   :  { %2422 = vmatpush1.bf16.msra.mxu0 %v3354_v9  ;;  %2171 = vmatprep.subr.bf16.mxu1 %v3361_v10  ;;  %v3440_v9 = vld [vmem:[%s4753_s1 + $0x6b0] ss:$8 sps:$4 sm:$0xff]   ;;  %v3447_v10 = vld [vmem:[%s4753_s1 + $0x2c4] ss:$8 sps:$4 sm:$0xff]  }
  0x7d   :  { %2423 = vmatprep.subr.bf16.mxu0 %v3364_v11  ;;  %v3452_v11 = vld [vmem:[%s4753_s1 + $0x6c4] ss:$8 sps:$4 sm:$0xff]  }
  0x7f   :  { %2172 = vmatpush1.bf16.msra.mxu1 %v3359_v12  ;;  %v3445_v12 = vld [vmem:[%s4753_s1 + $0x2c0] ss:$8 sps:$4 sm:$0xff]  }
  0x80   :  { %2424 = vmatpush1.bf16.msra.mxu0 %v3362_v13  ;;  %2204 = vmatprep.subr.bf16.mxu1 %v3370_v14  ;;  %v3450_v13 = vld [vmem:[%s4753_s1 + $0x6c0] ss:$8 sps:$4 sm:$0xff]   ;;  %v3457_v14 = vld [vmem:[%s4753_s1 + $0x2d4] ss:$8 sps:$4 sm:$0xff]  }
  0x81   :  { %2456 = vmatprep.subr.bf16.mxu0 %v3376_v15  ;;  %v3460_v15 = vld [vmem:[%s4753_s1 + $0x6d4] ss:$8 sps:$4 sm:$0xff]  }
  0x82   :  { %2174 = vmatmul.mubr.bf16.vlgmr.msra.gmra.mrb[0].mxu1 %v3365_v16  ;;  %v3455_v16 = vld [vmem:[%s4753_s1 + $0x2d0] ss:$8 sps:$4 sm:$0xff]  }
  0x83   :  { %2426 = vmatmul.mubr.bf16.vlgmr.msra.gmra.mrb[0].mxu0 %v3371_v18  ;;  %2205 = vmatpush1.bf16.msra.mxu1 %v3368_v17  ;;  %v3458_v17 = vld [vmem:[%s4753_s1 + $0x6d0] ss:$8 sps:$4 sm:$0xff]   ;;  %v3465_v18 = vld [vmem:[%s4753_s1 + $0x2e4] ss:$8 sps:$4 sm:$0xff]  }
  0x84   :  { %2457 = vmatpush1.bf16.msra.mxu0 %v3374_v19  ;;  %2206 = vmatprep.subr.bf16.mxu1 %v3379_v20  ;;  %v3470_v19 = vld [vmem:[%s4753_s1 + $0x6e4] ss:$8 sps:$4 sm:$0xff]   ;;  %v3463_v20 = vld [vmem:[%s4753_s1 + $0x2e0] ss:$8 sps:$4 sm:$0xff]  }
  0x85   :  { %2458 = vmatprep.subr.bf16.mxu0 %v3382_v21  ;;  %2183 = vmatprep.mubr.bf16.mxu1 %v3443_v22  ;;  %v3468_v21 = vld [vmem:[%s4753_s1 + $0x6e0] ss:$8 sps:$4 sm:$0xff]   ;;  %v3475_v22 = vld [vmem:[%s4753_s1 + $0x2f4] ss:$8 sps:$4 sm:$0xff]  }
  0x86   :  { %2435 = vmatprep.mubr.bf16.mxu0 %v3448_v23  ;;  %v3478_v23 = vld [vmem:[%s4753_s1 + $0x6f4] ss:$8 sps:$4 sm:$0xff]  }
  0x87   :  { %2207 = vmatpush1.bf16.msra.mxu1 %v3377_v24  ;;  %v3473_v24 = vld [vmem:[%s4753_s1 + $0x2f0] ss:$8 sps:$4 sm:$0xff]  }
  0x88   :  { %2459 = vmatpush1.bf16.msra.mxu0 %v3380_v25  ;;  %2208 = vmatprep.subr.bf16.mxu1 %v3385_v26  ;;  %v3476_v25 = vld [vmem:[%s4753_s1 + $0x6f0] ss:$8 sps:$4 sm:$0xff]   ;;  %v3484_v26 = vld [vmem:[%s4753_s1 + $0x304] ss:$8 sps:$4 sm:$0xff]  }
  0x89   :  { %2460 = vmatprep.subr.bf16.mxu0 %v3388_v27  ;;  %v3490_v27 = vld [vmem:[%s4753_s1 + $0x704] ss:$8 sps:$4 sm:$0xff]  }
  0x8a   :  { %2184 = vmatmul.mubr.bf16.gmra.mrb[4].mxu1 %v3453_v30  ;;  %v3485_v30 = vld [vmem:[%s4754_s0 + $0x30] ss:$72 sps:$4 sm:$0xff]  }
  0x8b   :  { %2436 = vmatmul.mubr.bf16.gmra.mrb[4].mxu0 %v3454_v31  ;;  %2209 = vmatpush1.bf16.msra.mxu1 %v3383_v28  ;;  %v3479_v28 = vld [vmem:[%s4754_s0 + $0x10] ss:$72 sps:$4 sm:$0xff]   ;;  %v3488_v31 = vld [vmem:[%s4753_s1 + $0x700] ss:$8 sps:$4 sm:$0xff]  }
  0x8c   :  { %2461 = vmatpush1.bf16.msra.mxu0 %v3386_v29  ;;  %2210 = vmatprep.subr.bf16.mxu1 %v3391_v32  ;;  %v3482_v29 = vld [vmem:[%s4753_s1 + $0x300] ss:$8 sps:$4 sm:$0xff]   ;;  %v3493_v32 = vld [vmem:[%s4753_s1 + $0x314] ss:$8 sps:$4 sm:$0xff]  }
  0x8d   :  { %2462 = vmatprep.subr.bf16.mxu0 %v3394_v33  ;;  %2193 = vmatprep.mubr.bf16.mxu1 %v3461_v34  ;;  %v3496_v33 = vld [vmem:[%s4753_s1 + $0x714] ss:$8 sps:$4 sm:$0xff]   ;;  %v3557_v34 = vld [vmem:[%s4754_s0 + $0xa4] ss:$72 sps:$4 sm:$0xff]  }
  0x8e   :  { %2445 = vmatprep.mubr.bf16.mxu0 %v3466_v35  ;;  %v3559_v35 = vld [vmem:[%s4754_s0 + $0xc4] ss:$72 sps:$4 sm:$0xff]  }
  0x8f   :  { %2211 = vmatpush1.bf16.msra.mxu1 %v3389_v36  ;;  %v3491_v36 = vld [vmem:[%s4753_s1 + $0x310] ss:$8 sps:$4 sm:$0xff]  }
  0x90   :  { %2463 = vmatpush1.bf16.msra.mxu0 %v3392_v37  ;;  %2212 = vmatprep.subr.bf16.mxu1 %v3397_v38  ;;  %v3494_v37 = vld [vmem:[%s4753_s1 + $0x710] ss:$8 sps:$4 sm:$0xff]   ;;  %v3499_v38 = vld [vmem:[%s4753_s1 + $0x324] ss:$8 sps:$4 sm:$0xff]  }
  0x91   :  { %2464 = vmatprep.subr.bf16.mxu0 %v3400_v39  ;;  %v3502_v39 = vld [vmem:[%s4753_s1 + $0x724] ss:$8 sps:$4 sm:$0xff]  }
  0x92   :  { %2194 = vmatmul.mubr.bf16.gmra.mrb[8].mxu1 %v3471_v42  ;;  %v3561_v42 = vld [vmem:[%s4754_s0 + $0xa0] ss:$72 sps:$4 sm:$0xff]  }
  0x93   :  { %2446 = vmatmul.mubr.bf16.gmra.mrb[8].mxu0 %v3472_v43  ;;  %2213 = vmatpush1.bf16.msra.mxu1 %v3395_v40  ;;  %v3497_v40 = vld [vmem:[%s4753_s1 + $0x320] ss:$8 sps:$4 sm:$0xff]  }
  0x94   :  { %2465 = vmatpush1.bf16.msra.mxu0 %v3398_v41  ;;  %2214 = vmatprep.subr.bf16.mxu1 %v3403_v44  ;;  %v3500_v41 = vld [vmem:[%s4753_s1 + $0x720] ss:$8 sps:$4 sm:$0xff]   ;;  %v3505_v44 = vld [vmem:[%s4753_s1 + $0x334] ss:$8 sps:$4 sm:$0xff]  }
  0x95   :  { %2466 = vmatprep.subr.bf16.mxu0 %v3406_v45  ;;  %2236 = vmatprep.mubr.bf16.mxu1 %v3481_v47  ;;  %v3565_v43 = vld [vmem:[%s4754_s0 + $0xc0] ss:$72 sps:$4 sm:$0xff]   ;;  %v3508_v45 = vld [vmem:[%s4753_s1 + $0x734] ss:$8 sps:$4 sm:$0xff]  }
  0x96   :  { %2488 = vmatprep.mubr.bf16.mxu0 %v3487_v49  ;;  %v3577_v47 = vld [vmem:[%s4754_s0 + $0x154] ss:$72 sps:$4 sm:$0xff]   ;;  %v3506_v49 = vld [vmem:[%s4753_s1 + $0x730] ss:$8 sps:$4 sm:$0xff]  }
  0x97   :  { %2215 = vmatpush1.bf16.msra.mxu1 %v3401_v46  ;;  %v3575_v46 = vld [vmem:[%s4754_s0 + $0x134] ss:$72 sps:$4 sm:$0xff]  }
  0x98   :  { %2467 = vmatpush1.bf16.msra.mxu0 %v3404_v48  ;;  %2216 = vmatprep.subr.bf16.mxu1 %v3409_v50  ;;  %v3503_v48 = vld [vmem:[%s4753_s1 + $0x330] ss:$8 sps:$4 sm:$0xff]   ;;  %v3511_v50 = vld [vmem:[%s4753_s1 + $0x344] ss:$8 sps:$4 sm:$0xff]  }
  0x99   :  { %2468 = vmatprep.subr.bf16.mxu0 %v3412_v51  ;;  %v3514_v51 = vld [vmem:[%s4753_s1 + $0x744] ss:$8 sps:$4 sm:$0xff]  }
  0x9b   :  { %2217 = vmatpush1.bf16.msra.mxu1 %v3407_v52  ;;  %v3509_v52 = vld [vmem:[%s4753_s1 + $0x340] ss:$8 sps:$4 sm:$0xff]  }
  0x9c   :  { %2469 = vmatpush1.bf16.msra.mxu0 %v3410_v53  ;;  %2218 = vmatprep.subr.bf16.mxu1 %v3415_v54  ;;  %v3512_v53 = vld [vmem:[%s4753_s1 + $0x740] ss:$8 sps:$4 sm:$0xff]   ;;  %v3579_v54 = vld [vmem:[%s4754_s0 + $0x130] ss:$72 sps:$4 sm:$0xff]  }
  0x9d   :  { %2470 = vmatprep.subr.bf16.mxu0 %v3418_v55  ;;  %v3583_v55 = vld [vmem:[%s4754_s0 + $0x150] ss:$72 sps:$4 sm:$0xff]  }
  0x9f   :  { %2219 = vmatpush1.bf16.msra.mxu1 %v3413_v56  ;;  %v3517_v56 = vld [vmem:[%s4753_s1 + $0x354] ss:$8 sps:$4 sm:$0xff]  }
  0xa0   :  { %2471 = vmatpush1.bf16.msra.mxu0 %v3416_v57  ;;  %2220 = vmatprep.subr.bf16.mxu1 %v3421_v58  ;;  %v3520_v57 = vld [vmem:[%s4753_s1 + $0x754] ss:$8 sps:$4 sm:$0xff]  }
  0xa1   :  { %2472 = vmatprep.subr.bf16.mxu0 %v3424_v59  ;;  %v3595_v58 = vld [vmem:[%s4754_s0 + $0x1c] ss:$72 sps:$4 sm:$0xff]  }
  0xa2   :  { %v3598_v59 = vld [vmem:[%s4754_s0 + $0x3c] ss:$72 sps:$4 sm:$0xff]  }
  0xa3   :  { %2221 = vmatpush1.bf16.msra.mxu1 %v3419_v60  ;;  %v3515_v60 = vld [vmem:[%s4753_s1 + $0x350] ss:$8 sps:$4 sm:$0xff]  }
  0xa4   :  { %2473 = vmatpush1.bf16.msra.mxu0 %v3422_v61  ;;  %2222 = vmatprep.subr.bf16.mxu1 %v3427_v62  ;;  %v3518_v61 = vld [vmem:[%s4753_s1 + $0x750] ss:$8 sps:$4 sm:$0xff]   ;;  %v3523_v62 = vld [vmem:[%s4753_s1 + $0x364] ss:$8 sps:$4 sm:$0xff]  }
  0xa5   :  { %2474 = vmatprep.subr.bf16.mxu0 %v3430_v63  ;;  %v3526_v63 = vld [vmem:[%s4753_s1 + $0x764] ss:$8 sps:$4 sm:$0xff]  }
  0xa7   :  { %2223 = vmatpush1.bf16.msra.mxu1 %v3425_v0  ;;  %v3521_v0 = vld [vmem:[%s4753_s1 + $0x360] ss:$8 sps:$4 sm:$0xff]  }
  0xa8   :  { %2475 = vmatpush1.bf16.msra.mxu0 %v3428_v1  ;;  %2224 = vmatprep.subr.bf16.mxu1 %v3433_v2  ;;  %v3524_v1 = vld [vmem:[%s4753_s1 + $0x760] ss:$8 sps:$4 sm:$0xff]   ;;  %v3529_v2 = vld [vmem:[%s4753_s1 + $0x374] ss:$8 sps:$4 sm:$0xff]  }
  0xa9   :  { %2476 = vmatprep.subr.bf16.mxu0 %v3436_v3  ;;  %v3532_v3 = vld [vmem:[%s4753_s1 + $0x774] ss:$8 sps:$4 sm:$0xff]  }
  0xab   :  { %2225 = vmatpush1.bf16.msra.mxu1 %v3431_v4  ;;  %v3527_v4 = vld [vmem:[%s4753_s1 + $0x370] ss:$8 sps:$4 sm:$0xff]  }
  0xac   :  { %2477 = vmatpush1.bf16.msra.mxu0 %v3434_v5  ;;  %2226 = vmatprep.subr.bf16.mxu1 %v3439_v6  ;;  %v3530_v5 = vld [vmem:[%s4753_s1 + $0x770] ss:$8 sps:$4 sm:$0xff]   ;;  %v3535_v6 = vld [vmem:[%s4753_s1 + $0x384] ss:$8 sps:$4 sm:$0xff]  }
  0xad   :  { %2478 = vmatprep.subr.bf16.mxu0 %v3442_v7  ;;  %v3538_v7 = vld [vmem:[%s4753_s1 + $0x784] ss:$8 sps:$4 sm:$0xff]  }
  0xaf   :  { %2227 = vmatpush1.bf16.msra.mxu1 %v3437_v8  ;;  %v3533_v8 = vld [vmem:[%s4753_s1 + $0x380] ss:$8 sps:$4 sm:$0xff]  }
  0xb0   :  { %2479 = vmatpush1.bf16.msra.mxu0 %v3440_v9  ;;  %2228 = vmatprep.subr.bf16.mxu1 %v3447_v10  ;;  %v3536_v9 = vld [vmem:[%s4753_s1 + $0x780] ss:$8 sps:$4 sm:$0xff]   ;;  %v3541_v10 = vld [vmem:[%s4753_s1 + $0x394] ss:$8 sps:$4 sm:$0xff]  }
  0xb1   :  { %2480 = vmatprep.subr.bf16.mxu0 %v3452_v11  ;;  %v3544_v11 = vld [vmem:[%s4753_s1 + $0x794] ss:$8 sps:$4 sm:$0xff]  }
  0xb3   :  { %2229 = vmatpush1.bf16.msra.mxu1 %v3445_v12  ;;  %v3539_v12 = vld [vmem:[%s4753_s1 + $0x390] ss:$8 sps:$4 sm:$0xff]  }
  0xb4   :  { %2481 = vmatpush1.bf16.msra.mxu0 %v3450_v13  ;;  %2230 = vmatprep.subr.bf16.mxu1 %v3457_v14  ;;  %v3542_v13 = vld [vmem:[%s4753_s1 + $0x790] ss:$8 sps:$4 sm:$0xff]   ;;  %v3547_v14 = vld [vmem:[%s4753_s1 + $0x3a4] ss:$8 sps:$4 sm:$0xff]  }
  0xb5   :  { %2482 = vmatprep.subr.bf16.mxu0 %v3460_v15  ;;  %v3550_v15 = vld [vmem:[%s4753_s1 + $0x7a4] ss:$8 sps:$4 sm:$0xff]  }
  0xb7   :  { %2231 = vmatpush1.bf16.msra.mxu1 %v3455_v16  ;;  %v3545_v16 = vld [vmem:[%s4753_s1 + $0x3a0] ss:$8 sps:$4 sm:$0xff]  }
  0xb8   :  { %2483 = vmatpush1.bf16.msra.mxu0 %v3458_v17  ;;  %2232 = vmatprep.subr.bf16.mxu1 %v3465_v18  ;;  %v3548_v17 = vld [vmem:[%s4753_s1 + $0x7a0] ss:$8 sps:$4 sm:$0xff]   ;;  %v3553_v18 = vld [vmem:[%s4753_s1 + $0x3b4] ss:$8 sps:$4 sm:$0xff]  }
  0xb9   :  { %2484 = vmatprep.subr.bf16.mxu0 %v3470_v19  ;;  %v3556_v19 = vld [vmem:[%s4753_s1 + $0x7b4] ss:$8 sps:$4 sm:$0xff]  }
  0xbb   :  { %2233 = vmatpush1.bf16.msra.mxu1 %v3463_v20  ;;  %v3551_v20 = vld [vmem:[%s4753_s1 + $0x3b0] ss:$8 sps:$4 sm:$0xff]  }
  0xbc   :  { %2485 = vmatpush1.bf16.msra.mxu0 %v3468_v21  ;;  %2234 = vmatprep.subr.bf16.mxu1 %v3475_v22  ;;  %v3554_v21 = vld [vmem:[%s4753_s1 + $0x7b0] ss:$8 sps:$4 sm:$0xff]   ;;  %v3564_v22 = vld [vmem:[%s4753_s1 + $0x3c4] ss:$8 sps:$4 sm:$0xff]  }
  0xbd   :  { %2486 = vmatprep.subr.bf16.mxu0 %v3478_v23  ;;  %v3568_v23 = vld [vmem:[%s4753_s1 + $0x7c4] ss:$8 sps:$4 sm:$0xff]  }
  0xbf   :  { %2235 = vmatpush1.bf16.msra.mxu1 %v3473_v24  ;;  %v3562_v24 = vld [vmem:[%s4753_s1 + $0x3c0] ss:$8 sps:$4 sm:$0xff]  }
  0xc0   :  { %2487 = vmatpush1.bf16.msra.mxu0 %v3476_v25  ;;  %2267 = vmatprep.subr.bf16.mxu1 %v3484_v26  ;;  %v3566_v25 = vld [vmem:[%s4753_s1 + $0x7c0] ss:$8 sps:$4 sm:$0xff]   ;;  %v3571_v26 = vld [vmem:[%s4753_s1 + $0x3d4] ss:$8 sps:$4 sm:$0xff]  }
  0xc1   :  { %2519 = vmatprep.subr.bf16.mxu0 %v3490_v27  ;;  %v3574_v27 = vld [vmem:[%s4753_s1 + $0x7d4] ss:$8 sps:$4 sm:$0xff]  }
  0xc2   :  { %2237 = vmatmul.mubr.bf16.vlgmr.msra.gmra.mrb[0].mxu1 %v3479_v28  ;;  %v3569_v28 = vld [vmem:[%s4753_s1 + $0x3d0] ss:$8 sps:$4 sm:$0xff]  }
  0xc3   :  { %2489 = vmatmul.mubr.bf16.vlgmr.msra.gmra.mrb[0].mxu0 %v3485_v30  ;;  %2268 = vmatpush1.bf16.msra.mxu1 %v3482_v29  ;;  %v3572_v29 = vld [vmem:[%s4753_s1 + $0x7d0] ss:$8 sps:$4 sm:$0xff]   ;;  %v3582_v30 = vld [vmem:[%s4753_s1 + $0x3e4] ss:$8 sps:$4 sm:$0xff]  }
  0xc4   :  { %2520 = vmatpush1.bf16.msra.mxu0 %v3488_v31  ;;  %2269 = vmatprep.subr.bf16.mxu1 %v3493_v32  ;;  %v3586_v31 = vld [vmem:[%s4753_s1 + $0x7e4] ss:$8 sps:$4 sm:$0xff]   ;;  %v3580_v32 = vld [vmem:[%s4753_s1 + $0x3e0] ss:$8 sps:$4 sm:$0xff]  }
  0xc5   :  { %2521 = vmatprep.subr.bf16.mxu0 %v3496_v33  ;;  %2246 = vmatprep.mubr.bf16.mxu1 %v3557_v34  ;;  %v3584_v33 = vld [vmem:[%s4753_s1 + $0x7e0] ss:$8 sps:$4 sm:$0xff]   ;;  %v3589_v34 = vld [vmem:[%s4753_s1 + $0x3f4] ss:$8 sps:$4 sm:$0xff]  }
  0xc6   :  { %2498 = vmatprep.mubr.bf16.mxu0 %v3559_v35  ;;  %v3592_v35 = vld [vmem:[%s4753_s1 + $0x7f4] ss:$8 sps:$4 sm:$0xff]  }
  0xc7   :  { %2270 = vmatpush1.bf16.msra.mxu1 %v3491_v36  ;;  %v3587_v36 = vld [vmem:[%s4753_s1 + $0x3f0] ss:$8 sps:$4 sm:$0xff]  }
  0xc8   :  { %2522 = vmatpush1.bf16.msra.mxu0 %v3494_v37  ;;  %2271 = vmatprep.subr.bf16.mxu1 %v3499_v38  ;;  %v3590_v37 = vld [vmem:[%s4753_s1 + $0x7f0] ss:$8 sps:$4 sm:$0xff]   ;;  %v3601_v38 = vld [vmem:[%s4753_s1 + $0x804] ss:$8 sps:$4 sm:$0xff]  }
  0xc9   :  { %2523 = vmatprep.subr.bf16.mxu0 %v3502_v39  ;;  %v3593_v39 = vld [vmem:[%s4754_s0 + $0x18] ss:$72 sps:$4 sm:$0xff]  }
  0xca   :  { %2247 = vmatmul.mubr.bf16.gmra.mrb[4].mxu1 %v3561_v42  ;;  %v3604_v42 = vld [vmem:[%s4753_s1 + $0x814] ss:$8 sps:$4 sm:$0xff]  }
  0xcb   :  { %2499 = vmatmul.mubr.bf16.gmra.mrb[4].mxu0 %v3565_v43  ;;  %2272 = vmatpush1.bf16.msra.mxu1 %v3497_v40  ;;  %v3596_v40 = vld [vmem:[%s4754_s0 + $0x38] ss:$72 sps:$4 sm:$0xff]   ;;  %v3605_v43 = vld [vmem:[%s4754_s0 + $0xac] ss:$72 sps:$4 sm:$0xff]  }
  0xcc   :  { %2524 = vmatpush1.bf16.msra.mxu0 %v3500_v41  ;;  %2273 = vmatprep.subr.bf16.mxu1 %v3505_v44  ;;  %v3599_v41 = vld [vmem:[%s4753_s1 + $0x800] ss:$8 sps:$4 sm:$0xff]   ;;  %v3607_v44 = vld [vmem:[%s4754_s0 + $0xcc] ss:$72 sps:$4 sm:$0xff]  }
  0xcd   :  { %2525 = vmatprep.subr.bf16.mxu0 %v3508_v45  ;;  %2256 = vmatprep.mubr.bf16.mxu1 %v3575_v46  ;;  %v3602_v45 = vld [vmem:[%s4753_s1 + $0x810] ss:$8 sps:$4 sm:$0xff]   ;;  %v3613_v46 = vld [vmem:[%s4753_s1 + $0x824] ss:$8 sps:$4 sm:$0xff]  }
  0xce   :  { %2508 = vmatprep.mubr.bf16.mxu0 %v3577_v47  ;;  %v3609_v47 = vld [vmem:[%s4754_s0 + $0xa8] ss:$72 sps:$4 sm:$0xff]  }
  0xcf   :  { %2274 = vmatpush1.bf16.msra.mxu1 %v3503_v48  ;;  %v3610_v48 = vld [vmem:[%s4754_s0 + $0xc8] ss:$72 sps:$4 sm:$0xff]  }
  0xd0   :  { %2526 = vmatpush1.bf16.msra.mxu0 %v3506_v49  ;;  %2275 = vmatprep.subr.bf16.mxu1 %v3511_v50  ;;  %v3611_v49 = vld [vmem:[%s4753_s1 + $0x820] ss:$8 sps:$4 sm:$0xff]   ;;  %v3616_v50 = vld [vmem:[%s4753_s1 + $0x834] ss:$8 sps:$4 sm:$0xff]  }
  0xd1   :  { %2527 = vmatprep.subr.bf16.mxu0 %v3514_v51  ;;  %v3617_v51 = vld [vmem:[%s4754_s0 + $0x13c] ss:$72 sps:$4 sm:$0xff]  }
  0xd2   :  { %2257 = vmatmul.mubr.bf16.gmra.mrb[8].mxu1 %v3579_v54  ;;  %v3625_v54 = vld [vmem:[%s4753_s1 + $0x844] ss:$8 sps:$4 sm:$0xff]  }
  0xd3   :  { %2509 = vmatmul.mubr.bf16.gmra.mrb[8].mxu0 %v3583_v55  ;;  %2276 = vmatpush1.bf16.msra.mxu1 %v3509_v52  ;;  %v3619_v52 = vld [vmem:[%s4754_s0 + $0x15c] ss:$72 sps:$4 sm:$0xff]   ;;  %v3621_v55 = vld [vmem:[%s4754_s0 + $0x138] ss:$72 sps:$4 sm:$0xff]  }
  0xd4   :  { %2528 = vmatpush1.bf16.msra.mxu0 %v3512_v53  ;;  %2277 = vmatprep.subr.bf16.mxu1 %v3517_v56  ;;  %v3614_v53 = vld [vmem:[%s4753_s1 + $0x830] ss:$8 sps:$4 sm:$0xff]  }
  0xd5   :  { %2529 = vmatprep.subr.bf16.mxu0 %v3520_v57  ;;  %2299 = vmatprep.mubr.bf16.mxu1 %v3595_v58  ;;  %v3622_v56 = vld [vmem:[%s4754_s0 + $0x158] ss:$72 sps:$4 sm:$0xff]   ;;  %v3628_v58 = vld [vmem:[%s4753_s1 + $0x854] ss:$8 sps:$4 sm:$0xff]  }
  0xd6   :  { %2551 = vmatprep.mubr.bf16.mxu0 %v3598_v59  ;;  %v3623_v57 = vld [vmem:[%s4753_s1 + $0x840] ss:$8 sps:$4 sm:$0xff]   ;;  %v3661_v59 = vld [vmem:[%s4754_s0 + $0x44] ss:$72 sps:$4 sm:$0xff]  }
  0xd7   :  { %2278 = vmatpush1.bf16.msra.mxu1 %v3515_v60  ;;  %v3664_v60 = vld [vmem:[%s4754_s0 + $0xd4] ss:$72 sps:$4 sm:$0xff]  }
  0xd8   :  { %2530 = vmatpush1.bf16.msra.mxu0 %v3518_v61  ;;  %2279 = vmatprep.subr.bf16.mxu1 %v3523_v62  ;;  %v3626_v61 = vld [vmem:[%s4753_s1 + $0x850] ss:$8 sps:$4 sm:$0xff]   ;;  %v3631_v62 = vld [vmem:[%s4753_s1 + $0x864] ss:$8 sps:$4 sm:$0xff]  }
  0xd9   :  { %2531 = vmatprep.subr.bf16.mxu0 %v3526_v63  ;;  %v3629_v63 = vld [vmem:[%s4753_s1 + $0x860] ss:$8 sps:$4 sm:$0xff]  }
  0xdb   :  { %2280 = vmatpush1.bf16.msra.mxu1 %v3521_v0  ;;  %v3634_v0 = vld [vmem:[%s4753_s1 + $0x874] ss:$8 sps:$4 sm:$0xff]  }
  0xdc   :  { %2532 = vmatpush1.bf16.msra.mxu0 %v3524_v1  ;;  %2281 = vmatprep.subr.bf16.mxu1 %v3529_v2  ;;  %v3632_v1 = vld [vmem:[%s4753_s1 + $0x870] ss:$8 sps:$4 sm:$0xff]   ;;  %v3637_v2 = vld [vmem:[%s4753_s1 + $0x884] ss:$8 sps:$4 sm:$0xff]  }
  0xdd   :  { %2533 = vmatprep.subr.bf16.mxu0 %v3532_v3  ;;  %v3635_v3 = vld [vmem:[%s4753_s1 + $0x880] ss:$8 sps:$4 sm:$0xff]  }
  0xdf   :  { %2282 = vmatpush1.bf16.msra.mxu1 %v3527_v4  ;;  %v3640_v4 = vld [vmem:[%s4753_s1 + $0x894] ss:$8 sps:$4 sm:$0xff]  }
  0xe0   :  { %2534 = vmatpush1.bf16.msra.mxu0 %v3530_v5  ;;  %2283 = vmatprep.subr.bf16.mxu1 %v3535_v6  ;;  %v3638_v5 = vld [vmem:[%s4753_s1 + $0x890] ss:$8 sps:$4 sm:$0xff]   ;;  %v3643_v6 = vld [vmem:[%s4753_s1 + $0x8a4] ss:$8 sps:$4 sm:$0xff]  }
  0xe1   :  { %2535 = vmatprep.subr.bf16.mxu0 %v3538_v7  ;;  %v3641_v7 = vld [vmem:[%s4753_s1 + $0x8a0] ss:$8 sps:$4 sm:$0xff]  }
  0xe3   :  { %2284 = vmatpush1.bf16.msra.mxu1 %v3533_v8  ;;  %v3646_v8 = vld [vmem:[%s4753_s1 + $0x8b4] ss:$8 sps:$4 sm:$0xff]  }
  0xe4   :  { %2536 = vmatpush1.bf16.msra.mxu0 %v3536_v9  ;;  %2285 = vmatprep.subr.bf16.mxu1 %v3541_v10  ;;  %v3644_v9 = vld [vmem:[%s4753_s1 + $0x8b0] ss:$8 sps:$4 sm:$0xff]   ;;  %v3649_v10 = vld [vmem:[%s4753_s1 + $0x8c4] ss:$8 sps:$4 sm:$0xff]  }
  0xe5   :  { %2537 = vmatprep.subr.bf16.mxu0 %v3544_v11  ;;  %v3647_v11 = vld [vmem:[%s4753_s1 + $0x8c0] ss:$8 sps:$4 sm:$0xff]  }
  0xe7   :  { %2286 = vmatpush1.bf16.msra.mxu1 %v3539_v12  ;;  %v3652_v12 = vld [vmem:[%s4753_s1 + $0x8d4] ss:$8 sps:$4 sm:$0xff]  }
  0xe8   :  { %2538 = vmatpush1.bf16.msra.mxu0 %v3542_v13  ;;  %2287 = vmatprep.subr.bf16.mxu1 %v3547_v14  ;;  %v3650_v13 = vld [vmem:[%s4753_s1 + $0x8d0] ss:$8 sps:$4 sm:$0xff]   ;;  %v3655_v14 = vld [vmem:[%s4753_s1 + $0x8e4] ss:$8 sps:$4 sm:$0xff]  }
  0xe9   :  { %2539 = vmatprep.subr.bf16.mxu0 %v3550_v15  ;;  %v3653_v15 = vld [vmem:[%s4753_s1 + $0x8e0] ss:$8 sps:$4 sm:$0xff]  }
  0xeb   :  { %2288 = vmatpush1.bf16.msra.mxu1 %v3545_v16  ;;  %v3658_v16 = vld [vmem:[%s4753_s1 + $0x8f4] ss:$8 sps:$4 sm:$0xff]  }
  0xec   :  { %2540 = vmatpush1.bf16.msra.mxu0 %v3548_v17  ;;  %2289 = vmatprep.subr.bf16.mxu1 %v3553_v18  ;;  %v3656_v17 = vld [vmem:[%s4753_s1 + $0x8f0] ss:$8 sps:$4 sm:$0xff]   ;;  %v3659_v18 = vld [vmem:[%s4754_s0 + $0x40] ss:$72 sps:$4 sm:$0xff]  }
  0xed   :  { %2541 = vmatprep.subr.bf16.mxu0 %v3556_v19  ;;  %v3662_v19 = vld [vmem:[%s4754_s0 + $0xd0] ss:$72 sps:$4 sm:$0xff]  }
  0xef   :  { %2290 = vmatpush1.bf16.msra.mxu1 %v3551_v20  ;;  %v3665_v20 = vld [vmem:[%s4754_s0 + $0x164] ss:$72 sps:$4 sm:$0xff]  }
  0xf0   :  { %2542 = vmatpush1.bf16.msra.mxu0 %v3554_v21  ;;  %2291 = vmatprep.subr.bf16.mxu1 %v3564_v22  ;;  %v3667_v21 = vld [vmem:[%s4754_s0 + $0x160] ss:$72 sps:$4 sm:$0xff]   ;;  %v358_v22 = vlaneseq }
  0xf1   :  { %2543 = vmatprep.subr.bf16.mxu0 %v3568_v23 }
  0xf2   :  { %v359_v23 = vshrl.u32 %v358_v22, 7 }
  0xf3   :  { %2292 = vmatpush1.bf16.msra.mxu1 %v3562_v24 }
  0xf4   :  { %2544 = vmatpush1.bf16.msra.mxu0 %v3566_v25  ;;  %2293 = vmatprep.subr.bf16.mxu1 %v3571_v26 }
  0xf5   :  { %2545 = vmatprep.subr.bf16.mxu0 %v3574_v27  ;;  %v360_v27 = vsub.s32 0, %v359_v23 }
  0xf7   :  { %2294 = vmatpush1.bf16.msra.mxu1 %v3569_v28 }
  0xf8   :  { %2546 = vmatpush1.bf16.msra.mxu0 %v3572_v29  ;;  %2295 = vmatprep.subr.bf16.mxu1 %v3582_v30  ;;  %v356_v29 = vld [vmem:[%s4755_s2] sm:$0x3]  ;;  %v364_v30 = vsub.s32 1, %v359_v23 }
  0xf9   :  { %2547 = vmatprep.subr.bf16.mxu0 %v3586_v31  ;;  %v361_v31 = vrot.slane %v356_v29, %v360_v27 }
  0xfb   :  { %2296 = vmatpush1.bf16.msra.mxu1 %v3580_v32  ;;  %v365_v32 = vrot.slane %v356_v29, %v364_v30 }
  0xfc   :  { %2548 = vmatpush1.bf16.msra.mxu0 %v3584_v33  ;;  %2297 = vmatprep.subr.bf16.mxu1 %v3589_v34 }
  0xfd   :  { %2549 = vmatprep.subr.bf16.mxu0 %v3592_v35 }
  0xff   :  { %2298 = vmatpush1.bf16.msra.mxu1 %v3587_v36 }
 0x100   :  { %2550 = vmatpush1.bf16.msra.mxu0 %v3590_v37  ;;  %3015 = vmatprep.subr.bf16.mxu1 %v3601_v38 }
 0x101   :  { %2582 = vmatprep.subr.bf16.mxu0 %v3601_v38 }
 0x102   :  { %2300 = vmatmul.mubr.bf16.vlgmr.msra.gmra.mrb[0].mxu1 %v3593_v39 }
 0x103   :  { %2552 = vmatmul.mubr.bf16.vlgmr.msra.gmra.mrb[0].mxu0 %v3596_v40  ;;  %3031 = vmatpush1.bf16.msra.mxu1 %v3599_v41 }
 0x104   :  { %2583 = vmatpush1.bf16.msra.mxu0 %v3599_v41  ;;  %3016 = vmatprep.subr.bf16.mxu1 %v3604_v42 }
 0x105   :  { %2584 = vmatprep.subr.bf16.mxu0 %v3604_v42  ;;  %2309 = vmatprep.mubr.bf16.mxu1 %v3605_v43 }
 0x106   :  { %2561 = vmatprep.mubr.bf16.mxu0 %v3607_v44 }
 0x107   :  { %3032 = vmatpush1.bf16.msra.mxu1 %v3602_v45 }
 0x108   :  { %2585 = vmatpush1.bf16.msra.mxu0 %v3602_v45  ;;  %3017 = vmatprep.subr.bf16.mxu1 %v3613_v46 }
 0x109   :  { %2586 = vmatprep.subr.bf16.mxu0 %v3613_v46 }
 0x10a   :  { %2310 = vmatmul.mubr.bf16.gmra.mrb[4].mxu1 %v3609_v47 }
 0x10b   :  { %2562 = vmatmul.mubr.bf16.gmra.mrb[4].mxu0 %v3610_v48  ;;  %3033 = vmatpush1.bf16.msra.mxu1 %v3611_v49 }
 0x10c   :  { %2587 = vmatpush1.bf16.msra.mxu0 %v3611_v49  ;;  %3018 = vmatprep.subr.bf16.mxu1 %v3616_v50 }
 0x10d   :  { %2588 = vmatprep.subr.bf16.mxu0 %v3616_v50  ;;  %2319 = vmatprep.mubr.bf16.mxu1 %v3617_v51 }
 0x10e   :  { %2571 = vmatprep.mubr.bf16.mxu0 %v3619_v52 }
 0x10f   :  { %3034 = vmatpush1.bf16.msra.mxu1 %v3614_v53 }
 0x110   :  { %2589 = vmatpush1.bf16.msra.mxu0 %v3614_v53  ;;  %3019 = vmatprep.subr.bf16.mxu1 %v3625_v54 }
 0x111   :  { %2590 = vmatprep.subr.bf16.mxu0 %v3625_v54 }
 0x112   :  { %2320 = vmatmul.mubr.bf16.gmra.mrb[8].mxu1 %v3621_v55 }
 0x113   :  { %2572 = vmatmul.mubr.bf16.gmra.mrb[8].mxu0 %v3622_v56  ;;  %3035 = vmatpush1.bf16.msra.mxu1 %v3623_v57 }
 0x114   :  { %2591 = vmatpush1.bf16.msra.mxu0 %v3623_v57  ;;  %3020 = vmatprep.subr.bf16.mxu1 %v3628_v58 }
 0x115   :  { %2592 = vmatprep.subr.bf16.mxu0 %v3628_v58  ;;  %2614 = vmatprep.mubr.bf16.mxu0 %v3661_v59 }
 0x116   :  { %2624 = vmatprep.mubr.bf16.mxu1 %v3664_v60 }
 0x117   :  { %3036 = vmatpush1.bf16.msra.mxu1 %v3626_v61 }
 0x118   :  { %2593 = vmatpush1.bf16.msra.mxu0 %v3626_v61  ;;  %3021 = vmatprep.subr.bf16.mxu1 %v3631_v62 }
 0x119   :  { %2594 = vmatprep.subr.bf16.mxu0 %v3631_v62 }
 0x11b   :  { %3037 = vmatpush1.bf16.msra.mxu1 %v3629_v63 }
 0x11c   :  { %2595 = vmatpush1.bf16.msra.mxu0 %v3629_v63  ;;  %3022 = vmatprep.subr.bf16.mxu1 %v3634_v0 }
 0x11d   :  { %2596 = vmatprep.subr.bf16.mxu0 %v3634_v0 }
 0x11f   :  { %3038 = vmatpush1.bf16.msra.mxu1 %v3632_v1 }
 0x120   :  { %2597 = vmatpush1.bf16.msra.mxu0 %v3632_v1  ;;  %3023 = vmatprep.subr.bf16.mxu1 %v3637_v2 }
 0x121   :  { %2598 = vmatprep.subr.bf16.mxu0 %v3637_v2 }
 0x123   :  { %3039 = vmatpush1.bf16.msra.mxu1 %v3635_v3 }
 0x124   :  { %2599 = vmatpush1.bf16.msra.mxu0 %v3635_v3  ;;  %3024 = vmatprep.subr.bf16.mxu1 %v3640_v4 }
 0x125   :  { %2600 = vmatprep.subr.bf16.mxu0 %v3640_v4 }
 0x127   :  { %3040 = vmatpush1.bf16.msra.mxu1 %v3638_v5 }
 0x128   :  { %2601 = vmatpush1.bf16.msra.mxu0 %v3638_v5  ;;  %3025 = vmatprep.subr.bf16.mxu1 %v3643_v6 }
 0x129   :  { %2602 = vmatprep.subr.bf16.mxu0 %v3643_v6 }
 0x12b   :  { %3041 = vmatpush1.bf16.msra.mxu1 %v3641_v7 }
 0x12c   :  { %2603 = vmatpush1.bf16.msra.mxu0 %v3641_v7  ;;  %3026 = vmatprep.subr.bf16.mxu1 %v3646_v8 }
 0x12d   :  { %2604 = vmatprep.subr.bf16.mxu0 %v3646_v8 }
 0x12f   :  { %3042 = vmatpush1.bf16.msra.mxu1 %v3644_v9 }
 0x130   :  { %2605 = vmatpush1.bf16.msra.mxu0 %v3644_v9  ;;  %3027 = vmatprep.subr.bf16.mxu1 %v3649_v10 }
 0x131   :  { %2606 = vmatprep.subr.bf16.mxu0 %v3649_v10 }
 0x133   :  { %3043 = vmatpush1.bf16.msra.mxu1 %v3647_v11 }
 0x134   :  { %2607 = vmatpush1.bf16.msra.mxu0 %v3647_v11  ;;  %3028 = vmatprep.subr.bf16.mxu1 %v3652_v12 }
 0x135   :  { %2608 = vmatprep.subr.bf16.mxu0 %v3652_v12 }
 0x137   :  { %3044 = vmatpush1.bf16.msra.mxu1 %v3650_v13 }
 0x138   :  { %2609 = vmatpush1.bf16.msra.mxu0 %v3650_v13  ;;  %3029 = vmatprep.subr.bf16.mxu1 %v3655_v14 }
 0x139   :  { %2610 = vmatprep.subr.bf16.mxu0 %v3655_v14 }
 0x13b   :  { %3045 = vmatpush1.bf16.msra.mxu1 %v3653_v15 }
 0x13c   :  { %2611 = vmatpush1.bf16.msra.mxu0 %v3653_v15  ;;  %3030 = vmatprep.subr.bf16.mxu1 %v3658_v16 }
 0x13d   :  { %2612 = vmatprep.subr.bf16.mxu0 %v3658_v16 }
 0x13f   :  { %3046 = vmatpush1.bf16.msra.mxu1 %v3656_v17 }
 0x140   :  { %2613 = vmatpush1.bf16.msra.mxu0 %v3656_v17 }
 0x142   :  { %2625 = vmatmul.mubr.bf16.vlgmr.msra.gmra.mrb[12].mxu1 %v3662_v19 }
 0x143   :  { %2615 = vmatmul.mubr.bf16.vlgmr.msra.gmra.mrb[0].mxu0 %v3659_v18  ;;  %2634 = vmatprep.mubr.bf16.mxu1 %v3665_v20 }
 0x14a   :  { %2635 = vmatmul.mubr.bf16.gmra.mrb[16].mxu1 %v3667_v21 }
 0x1d5   :  { %v2301_v24 = vpop.f32.mrb[0].mxu1 }
 0x1d6   :  { %v2303_v25 = vpop.f32.mrb[1].mxu1  ;;  %v3047_v1 = vadd.f32 %v2301_v24, %v361_v31 }
 0x1d7   :  { %v2305_v26 = vpop.f32.mrb[2].mxu1  ;;  %v3049_v2 = vadd.f32 %v2303_v25, %v365_v32 }
 0x1d8   :  { %v2307_v28 = vpop.f32.mrb[3].mxu1  ;;  %v3051_v5 = vadd.f32 %v2305_v26, %v361_v31 }
 0x1d9   :  { %v3053_v10 = vadd.f32 %v2307_v28, %v365_v32 }
 0x1dd   :  { %v2311_v33 = vpop.f32.mrb[4].mxu1 }
 0x1de   :  { %v2563_v34 = vpop.f32.mrb[4].mxu0  ;;  %v3055_v35 = vadd.f32 %v2311_v33, %v361_v31  ;;  %v2313_v36 = vpop.f32.mrb[5].mxu1 }
 0x1df   :  { %v2565_v37 = vpop.f32.mrb[5].mxu0  ;;  %v3058_v38 = vadd.f32 %v2313_v36, %v365_v32  ;;  %v2315_v39 = vpop.f32.mrb[6].mxu1 }
 0x1e0   :  { %v2567_v40 = vpop.f32.mrb[6].mxu0  ;;  %v3056_v41 = vadd.f32 %v3055_v35, %v2563_v34  ;;  %v3061_v42 = vadd.f32 %v2315_v39, %v361_v31  ;;  %v2317_v43 = vpop.f32.mrb[7].mxu1 }
 0x1e1   :  { %v2569_v44 = vpop.f32.mrb[7].mxu0  ;;  %v3059_v45 = vadd.f32 %v3058_v38, %v2565_v37  ;;  %v3064_v46 = vadd.f32 %v2317_v43, %v365_v32 }
 0x1e2   :  { %v3062_v47 = vadd.f32 %v3061_v42, %v2567_v40 }
 0x1e3   :  { %v3065_v48 = vadd.f32 %v3064_v46, %v2569_v44 }
 0x1e5   :  { %v2321_v49 = vpop.f32.mrb[8].mxu1 }
 0x1e6   :  { %v2573_v50 = vpop.f32.mrb[8].mxu0  ;;  %v3067_v51 = vadd.f32 %v2321_v49, %v361_v31  ;;  %v2323_v52 = vpop.f32.mrb[9].mxu1 }
 0x1e7   :  { %v2575_v53 = vpop.f32.mrb[9].mxu0  ;;  %v3070_v54 = vadd.f32 %v2323_v52, %v365_v32  ;;  %v2325_v55 = vpop.f32.mrb[10].mxu1 }
 0x1e8   :  { %v2577_v56 = vpop.f32.mrb[10].mxu0  ;;  %v3068_v57 = vadd.f32 %v3067_v51, %v2573_v50  ;;  %v3073_v58 = vadd.f32 %v2325_v55, %v361_v31  ;;  %v2327_v59 = vpop.f32.mrb[11].mxu1 }
 0x1e9   :  { %v2579_v60 = vpop.f32.mrb[11].mxu0  ;;  %v3071_v61 = vadd.f32 %v3070_v54, %v2575_v53  ;;  %v3076_v62 = vadd.f32 %v2327_v59, %v365_v32 }
 0x1ea   :  { %v3074_v63 = vadd.f32 %v3073_v58, %v2577_v56 }
 0x1eb   :  { %v3077_v0 = vadd.f32 %v3076_v62, %v2579_v60 }
 0x215   :  { %v2626_v4 = vpop.f32.mrb[12].mxu1 }
 0x216   :  { %v2616_v3 = vpop.f32.mrb[0].mxu0  ;;  %v3057_v7 = vadd.f32 %v3056_v41, %v2626_v4  ;;  %v2628_v9 = vpop.f32.mrb[13].mxu1 }
 0x217   :  { %v3048_v6 = vadd.f32 %v3047_v1, %v2616_v3  ;;  %v2618_v8 = vpop.f32.mrb[1].mxu0  ;;  %v3060_v12 = vadd.f32 %v3059_v45, %v2628_v9  ;;  %v2630_v14 = vpop.f32.mrb[14].mxu1 }
 0x218   :  { %v3050_v11 = vadd.f32 %v3049_v2, %v2618_v8  ;;  %v2620_v13 = vpop.f32.mrb[2].mxu0  ;;  %v2649_v16 = vmax.f32 %v3057_v7, 0.0  ;;  %v3063_v18 = vadd.f32 %v3062_v47, %v2630_v14  ;;  %v2632_v20 = vpop.f32.mrb[15].mxu1 }
 0x219   :  { %v2645_v15 = vmax.f32 %v3048_v6, 0.0  ;;  %v3052_v17 = vadd.f32 %v3051_v5, %v2620_v13  ;;  %v2622_v19 = vpop.f32.mrb[3].mxu0  ;;  %v2650_v22 = vmax.f32 %v3060_v12, 0.0  ;;  %v3066_v24 = vadd.f32 %v3065_v48, %v2632_v20 }
 0x21a   :  { %v2646_v21 = vmax.f32 %v3050_v11, 0.0  ;;  %v3054_v23 = vadd.f32 %v3053_v10, %v2622_v19  ;;  %2661 = vst [vmem:[%s4756_s3 + $0x20] sm:$0xff] %v2649_v16  ;;  %v2651_v26 = vmax.f32 %v3063_v18, 0.0 }
 0x21b   :  { %2657 = vst [vmem:[%s4756_s3] sm:$0xff] %v2645_v15  ;;  %v2647_v25 = vmax.f32 %v3052_v17, 0.0  ;;  %2662 = vst [vmem:[%s4756_s3 + $0x28] sm:$0xff] %v2650_v22  ;;  %v2652_v28 = vmax.f32 %v3066_v24, 0.0 }
 0x21c   :  { %2658 = vst [vmem:[%s4756_s3 + $0x8] sm:$0xff] %v2646_v21  ;;  %v2648_v27 = vmax.f32 %v3054_v23, 0.0  ;;  %2663 = vst [vmem:[%s4756_s3 + $0x30] sm:$0xff] %v2651_v26 }
 0x21d   :  { %2659 = vst [vmem:[%s4756_s3 + $0x10] sm:$0xff] %v2647_v25  ;;  %2664 = vst [vmem:[%s4756_s3 + $0x38] sm:$0xff] %v2652_v28  ;;  %v2636_v29 = vpop.f32.mrb[16].mxu1 }
 0x21e   :  { %2660 = vst [vmem:[%s4756_s3 + $0x18] sm:$0xff] %v2648_v27  ;;  %v3069_v30 = vadd.f32 %v3068_v57, %v2636_v29  ;;  %v2638_v31 = vpop.f32.mrb[17].mxu1 }
 0x21f   :  { %v3072_v32 = vadd.f32 %v3071_v61, %v2638_v31  ;;  %v2640_v33 = vpop.f32.mrb[18].mxu1 }
 0x220   :  { %v2653_v34 = vmax.f32 %v3069_v30, 0.0  ;;  %v3075_v35 = vadd.f32 %v3074_v63, %v2640_v33  ;;  %v2642_v36 = vpop.f32.mrb[19].mxu1 }
 0x221   :  { %v2654_v37 = vmax.f32 %v3072_v32, 0.0  ;;  %v3078_v38 = vadd.f32 %v3077_v0, %v2642_v36 }
 0x222   :  { %2665 = vst [vmem:[%s4756_s3 + $0x40] sm:$0xff] %v2653_v34  ;;  %v2655_v39 = vmax.f32 %v3075_v35, 0.0 }
 0x223   :  { %2666 = vst [vmem:[%s4756_s3 + $0x48] sm:$0xff] %v2654_v37  ;;  %v2656_v40 = vmax.f32 %v3078_v38, 0.0 }
 0x224   :  { %2667 = vst [vmem:[%s4756_s3 + $0x50] sm:$0xff] %v2655_v39 }
 0x225   :  { %2668 = vst [vmem:[%s4756_s3 + $0x58] sm:$0xff] %v2656_v40 }

// kernel: forward.70
= control target key start
LH: loop header
LB: loop body
LE: loop exit
PB: predicated region body
PF: predicated region fallthrough
CT: control target
= control target key end

     0   :  { %s3139_s1 = inlined_call_operand.vmem [shape: bf16[1792,256], index: 1, kind: input, shape index: {}]   ;;  %s3140_s0 = inlined_call_operand.vmem [shape: bf16[16,1792], index: 0, kind: input, shape index: {}]   ;;  %s3141_s2 = inlined_call_operand.vmem [shape: f32[1,256], index: 2, kind: input, shape index: {}]   ;;  %s3142_s3 = inlined_call_operand.vmem [shape: f32[16,256], index: 3, kind: output, shape index: {}]  }
   0x1   :  { %v2033_v0 = vld [vmem:[%s3139_s1 + $0x4] ss:$8 sps:$4 sm:$0xff]   ;;  %v2037_v2 = vld [vmem:[%s3139_s1] ss:$8 sps:$4 sm:$0xff]   ;;  %v2039_v4 = vld [vmem:[%s3139_s1 + $0x14] ss:$8 sps:$4 sm:$0xff]  }
   0x2   :  { %v2035_v1 = vld [vmem:[%s3139_s1 + $0x304] ss:$8 sps:$4 sm:$0xff]   ;;  %1454 = vmatprep.subr.bf16.mxu1 %v2033_v0  ;;  %v2038_v3 = vld [vmem:[%s3139_s1 + $0x300] ss:$8 sps:$4 sm:$0xff]   ;;  %v2041_v5 = vld [vmem:[%s3139_s1 + $0x314] ss:$8 sps:$4 sm:$0xff]  }
   0x3   :  { %1583 = vmatprep.subr.bf16.mxu0 %v2035_v1  ;;  %1455 = vmatpush1.bf16.msra.mxu1 %v2037_v2  ;;  %v2043_v6 = vld [vmem:[%s3139_s1 + $0x10] ss:$8 sps:$4 sm:$0xff]   ;;  %v2045_v8 = vld [vmem:[%s3139_s1 + $0x24] ss:$8 sps:$4 sm:$0xff]   ;;  %v2049_v10 = vld [vmem:[%s3139_s1 + $0x20] ss:$8 sps:$4 sm:$0xff]  }
   0x4   :  { %1584 = vmatpush1.bf16.msra.mxu0 %v2038_v3  ;;  %1456 = vmatprep.subr.bf16.mxu1 %v2039_v4  ;;  %v2044_v7 = vld [vmem:[%s3139_s1 + $0x310] ss:$8 sps:$4 sm:$0xff]   ;;  %v2047_v9 = vld [vmem:[%s3139_s1 + $0x324] ss:$8 sps:$4 sm:$0xff]   ;;  %v2050_v11 = vld [vmem:[%s3139_s1 + $0x320] ss:$8 sps:$4 sm:$0xff]  }
   0x5   :  { %1585 = vmatprep.subr.bf16.mxu0 %v2041_v5  ;;  %v2051_v12 = vld [vmem:[%s3139_s1 + $0x34] ss:$8 sps:$4 sm:$0xff]   ;;  %v2055_v14 = vld [vmem:[%s3139_s1 + $0x30] ss:$8 sps:$4 sm:$0xff]   ;;  %v2057_v16 = vld [vmem:[%s3139_s1 + $0x44] ss:$8 sps:$4 sm:$0xff]  }
   0x6   :  { %v2053_v13 = vld [vmem:[%s3139_s1 + $0x334] ss:$8 sps:$4 sm:$0xff]   ;;  %v2056_v15 = vld [vmem:[%s3139_s1 + $0x330] ss:$8 sps:$4 sm:$0xff]   ;;  %v2059_v17 = vld [vmem:[%s3139_s1 + $0x344] ss:$8 sps:$4 sm:$0xff]  }
   0x7   :  { %1457 = vmatpush1.bf16.msra.mxu1 %v2043_v6  ;;  %v2061_v18 = vld [vmem:[%s3139_s1 + $0x40] ss:$8 sps:$4 sm:$0xff]   ;;  %v2063_v20 = vld [vmem:[%s3139_s1 + $0x54] ss:$8 sps:$4 sm:$0xff]   ;;  %v2067_v22 = vld [vmem:[%s3139_s1 + $0x50] ss:$8 sps:$4 sm:$0xff]  }
   0x8   :  { %1586 = vmatpush1.bf16.msra.mxu0 %v2044_v7  ;;  %1458 = vmatprep.subr.bf16.mxu1 %v2045_v8  ;;  %v2062_v19 = vld [vmem:[%s3139_s1 + $0x340] ss:$8 sps:$4 sm:$0xff]   ;;  %v2065_v21 = vld [vmem:[%s3139_s1 + $0x354] ss:$8 sps:$4 sm:$0xff]   ;;  %v2068_v23 = vld [vmem:[%s3139_s1 + $0x350] ss:$8 sps:$4 sm:$0xff]  }
   0x9   :  { %1587 = vmatprep.subr.bf16.mxu0 %v2047_v9  ;;  %v2069_v24 = vld [vmem:[%s3139_s1 + $0x64] ss:$8 sps:$4 sm:$0xff]   ;;  %v2073_v26 = vld [vmem:[%s3139_s1 + $0x60] ss:$8 sps:$4 sm:$0xff]   ;;  %v2075_v28 = vld [vmem:[%s3139_s1 + $0x74] ss:$8 sps:$4 sm:$0xff]  }
   0xa   :  { %v2071_v25 = vld [vmem:[%s3139_s1 + $0x364] ss:$8 sps:$4 sm:$0xff]   ;;  %v2074_v27 = vld [vmem:[%s3139_s1 + $0x360] ss:$8 sps:$4 sm:$0xff]   ;;  %v2077_v29 = vld [vmem:[%s3139_s1 + $0x374] ss:$8 sps:$4 sm:$0xff]  }
   0xb   :  { %1459 = vmatpush1.bf16.msra.mxu1 %v2049_v10  ;;  %v2079_v30 = vld [vmem:[%s3139_s1 + $0x70] ss:$8 sps:$4 sm:$0xff]   ;;  %v2081_v32 = vld [vmem:[%s3139_s1 + $0x84] ss:$8 sps:$4 sm:$0xff]   ;;  %v2085_v34 = vld [vmem:[%s3139_s1 + $0x80] ss:$8 sps:$4 sm:$0xff]  }
   0xc   :  { %1588 = vmatpush1.bf16.msra.mxu0 %v2050_v11  ;;  %1460 = vmatprep.subr.bf16.mxu1 %v2051_v12  ;;  %v2080_v31 = vld [vmem:[%s3139_s1 + $0x370] ss:$8 sps:$4 sm:$0xff]   ;;  %v2083_v33 = vld [vmem:[%s3139_s1 + $0x384] ss:$8 sps:$4 sm:$0xff]   ;;  %v2086_v35 = vld [vmem:[%s3139_s1 + $0x380] ss:$8 sps:$4 sm:$0xff]  }
   0xd   :  { %1589 = vmatprep.subr.bf16.mxu0 %v2053_v13  ;;  %v2087_v36 = vld [vmem:[%s3139_s1 + $0x94] ss:$8 sps:$4 sm:$0xff]   ;;  %v2091_v38 = vld [vmem:[%s3139_s1 + $0x90] ss:$8 sps:$4 sm:$0xff]   ;;  %v2093_v40 = vld [vmem:[%s3139_s1 + $0xa4] ss:$8 sps:$4 sm:$0xff]  }
   0xe   :  { %v2089_v37 = vld [vmem:[%s3139_s1 + $0x394] ss:$8 sps:$4 sm:$0xff]   ;;  %v2092_v39 = vld [vmem:[%s3139_s1 + $0x390] ss:$8 sps:$4 sm:$0xff]   ;;  %v2095_v41 = vld [vmem:[%s3139_s1 + $0x3a4] ss:$8 sps:$4 sm:$0xff]  }
   0xf   :  { %1461 = vmatpush1.bf16.msra.mxu1 %v2055_v14  ;;  %v2097_v42 = vld [vmem:[%s3139_s1 + $0xa0] ss:$8 sps:$4 sm:$0xff]   ;;  %v2099_v44 = vld [vmem:[%s3139_s1 + $0xb4] ss:$8 sps:$4 sm:$0xff]   ;;  %v2103_v46 = vld [vmem:[%s3139_s1 + $0xb0] ss:$8 sps:$4 sm:$0xff]  }
  0x10   :  { %1590 = vmatpush1.bf16.msra.mxu0 %v2056_v15  ;;  %1462 = vmatprep.subr.bf16.mxu1 %v2057_v16  ;;  %v2098_v43 = vld [vmem:[%s3139_s1 + $0x3a0] ss:$8 sps:$4 sm:$0xff]   ;;  %v2101_v45 = vld [vmem:[%s3139_s1 + $0x3b4] ss:$8 sps:$4 sm:$0xff]   ;;  %v2104_v47 = vld [vmem:[%s3139_s1 + $0x3b0] ss:$8 sps:$4 sm:$0xff]  }
  0x11   :  { %1591 = vmatprep.subr.bf16.mxu0 %v2059_v17  ;;  %v2131_v48 = vld [vmem:[%s3140_s0 + $0x4] ss:$56 sps:$4 sm:$0xff]   ;;  %v2109_v52 = vld [vmem:[%s3139_s1 + $0xc0] ss:$8 sps:$4 sm:$0xff]   ;;  %v2115_v56 = vld [vmem:[%s3139_s1 + $0xd0] ss:$8 sps:$4 sm:$0xff]  }
  0x12   :  { %v2105_v49 = vld [vmem:[%s3139_s1 + $0xc4] ss:$8 sps:$4 sm:$0xff]   ;;  %1486 = vmatprep.mubr.bf16.mxu1 %v2131_v48  ;;  %v2137_v51 = vld [vmem:[%s3140_s0 + $0x1c] ss:$56 sps:$4 sm:$0xff]   ;;  %v2110_v53 = vld [vmem:[%s3139_s1 + $0x3c0] ss:$8 sps:$4 sm:$0xff]  }
  0x13   :  { %1463 = vmatpush1.bf16.msra.mxu1 %v2061_v18  ;;  %v2107_v50 = vld [vmem:[%s3139_s1 + $0x3c4] ss:$8 sps:$4 sm:$0xff]   ;;  %v2111_v54 = vld [vmem:[%s3139_s1 + $0xd4] ss:$8 sps:$4 sm:$0xff]   ;;  %1615 = vmatprep.mubr.bf16.mxu0 %v2137_v51  ;;  %v2116_v57 = vld [vmem:[%s3139_s1 + $0x3d0] ss:$8 sps:$4 sm:$0xff]  }
  0x14   :  { %1592 = vmatpush1.bf16.msra.mxu0 %v2062_v19  ;;  %1464 = vmatprep.subr.bf16.mxu1 %v2063_v20  ;;  %v2113_v55 = vld [vmem:[%s3139_s1 + $0x3d4] ss:$8 sps:$4 sm:$0xff]   ;;  %v2117_v58 = vld [vmem:[%s3139_s1 + $0xe4] ss:$8 sps:$4 sm:$0xff]   ;;  %v2121_v60 = vld [vmem:[%s3139_s1 + $0xe0] ss:$8 sps:$4 sm:$0xff]  }
  0x15   :  { %1593 = vmatprep.subr.bf16.mxu0 %v2065_v21  ;;  %v2119_v59 = vld [vmem:[%s3139_s1 + $0x3e4] ss:$8 sps:$4 sm:$0xff]   ;;  %v2122_v61 = vld [vmem:[%s3139_s1 + $0x3e0] ss:$8 sps:$4 sm:$0xff]   ;;  %v2123_v62 = vld [vmem:[%s3139_s1 + $0xf4] ss:$8 sps:$4 sm:$0xff]  }
  0x16   :  { %v2125_v63 = vld [vmem:[%s3139_s1 + $0x3f4] ss:$8 sps:$4 sm:$0xff]   ;;  %v2127_v0 = vld [vmem:[%s3139_s1 + $0xf0] ss:$8 sps:$4 sm:$0xff]   ;;  %v2134_v2 = vld [vmem:[%s3139_s1 + $0x104] ss:$8 sps:$4 sm:$0xff]  }
  0x17   :  { %1465 = vmatpush1.bf16.msra.mxu1 %v2067_v22  ;;  %v2128_v1 = vld [vmem:[%s3139_s1 + $0x3f0] ss:$8 sps:$4 sm:$0xff]   ;;  %v2140_v3 = vld [vmem:[%s3139_s1 + $0x404] ss:$8 sps:$4 sm:$0xff]   ;;  %v2132_v5 = vld [vmem:[%s3139_s1 + $0x100] ss:$8 sps:$4 sm:$0xff]  }
  0x18   :  { %1594 = vmatpush1.bf16.msra.mxu0 %v2068_v23  ;;  %1466 = vmatprep.subr.bf16.mxu1 %v2069_v24  ;;  %v2129_v4 = vld [vmem:[%s3140_s0] ss:$56 sps:$4 sm:$0xff]   ;;  %v2143_v8 = vld [vmem:[%s3139_s1 + $0x114] ss:$8 sps:$4 sm:$0xff]   ;;  %v2149_v12 = vld [vmem:[%s3139_s1 + $0x124] ss:$8 sps:$4 sm:$0xff]  }
  0x19   :  { %1595 = vmatprep.subr.bf16.mxu0 %v2071_v25  ;;  %v2135_v6 = vld [vmem:[%s3140_s0 + $0x18] ss:$56 sps:$4 sm:$0xff]   ;;  %v2138_v7 = vld [vmem:[%s3139_s1 + $0x400] ss:$8 sps:$4 sm:$0xff]   ;;  %v2146_v9 = vld [vmem:[%s3139_s1 + $0x414] ss:$8 sps:$4 sm:$0xff]  }
  0x1a   :  { %v2141_v10 = vld [vmem:[%s3139_s1 + $0x110] ss:$8 sps:$4 sm:$0xff]   ;;  %v2152_v13 = vld [vmem:[%s3139_s1 + $0x424] ss:$8 sps:$4 sm:$0xff]   ;;  %v2147_v14 = vld [vmem:[%s3139_s1 + $0x120] ss:$8 sps:$4 sm:$0xff]  }
  0x1b   :  { %1467 = vmatpush1.bf16.msra.mxu1 %v2073_v26  ;;  %v2144_v11 = vld [vmem:[%s3139_s1 + $0x410] ss:$8 sps:$4 sm:$0xff]   ;;  %v2150_v15 = vld [vmem:[%s3139_s1 + $0x420] ss:$8 sps:$4 sm:$0xff]   ;;  %v2155_v16 = vld [vmem:[%s3139_s1 + $0x134] ss:$8 sps:$4 sm:$0xff]  }
  0x1c   :  { %1596 = vmatpush1.bf16.msra.mxu0 %v2074_v27  ;;  %1468 = vmatprep.subr.bf16.mxu1 %v2075_v28  ;;  %v2158_v17 = vld [vmem:[%s3139_s1 + $0x434] ss:$8 sps:$4 sm:$0xff]   ;;  %v2153_v18 = vld [vmem:[%s3139_s1 + $0x130] ss:$8 sps:$4 sm:$0xff]   ;;  %v2161_v20 = vld [vmem:[%s3139_s1 + $0x144] ss:$8 sps:$4 sm:$0xff]  }
  0x1d   :  { %1597 = vmatprep.subr.bf16.mxu0 %v2077_v29  ;;  %v2156_v19 = vld [vmem:[%s3139_s1 + $0x430] ss:$8 sps:$4 sm:$0xff]   ;;  %v2164_v21 = vld [vmem:[%s3139_s1 + $0x444] ss:$8 sps:$4 sm:$0xff]   ;;  %v2159_v22 = vld [vmem:[%s3139_s1 + $0x140] ss:$8 sps:$4 sm:$0xff]  }
  0x1e   :  { %v2162_v23 = vld [vmem:[%s3139_s1 + $0x440] ss:$8 sps:$4 sm:$0xff]   ;;  %v2167_v24 = vld [vmem:[%s3139_s1 + $0x154] ss:$8 sps:$4 sm:$0xff]   ;;  %v2165_v26 = vld [vmem:[%s3139_s1 + $0x150] ss:$8 sps:$4 sm:$0xff]  }
  0x1f   :  { %1469 = vmatpush1.bf16.msra.mxu1 %v2079_v30  ;;  %v2170_v25 = vld [vmem:[%s3139_s1 + $0x454] ss:$8 sps:$4 sm:$0xff]   ;;  %v2168_v27 = vld [vmem:[%s3139_s1 + $0x450] ss:$8 sps:$4 sm:$0xff]   ;;  %v2173_v28 = vld [vmem:[%s3139_s1 + $0x164] ss:$8 sps:$4 sm:$0xff]  }
  0x20   :  { %1598 = vmatpush1.bf16.msra.mxu0 %v2080_v31  ;;  %1470 = vmatprep.subr.bf16.mxu1 %v2081_v32  ;;  %v2176_v29 = vld [vmem:[%s3139_s1 + $0x464] ss:$8 sps:$4 sm:$0xff]   ;;  %v2171_v30 = vld [vmem:[%s3139_s1 + $0x160] ss:$8 sps:$4 sm:$0xff]   ;;  %v2179_v32 = vld [vmem:[%s3139_s1 + $0x174] ss:$8 sps:$4 sm:$0xff]  }
  0x21   :  { %1599 = vmatprep.subr.bf16.mxu0 %v2083_v33  ;;  %v2174_v31 = vld [vmem:[%s3139_s1 + $0x460] ss:$8 sps:$4 sm:$0xff]   ;;  %v2182_v33 = vld [vmem:[%s3139_s1 + $0x474] ss:$8 sps:$4 sm:$0xff]  }
  0x22   :  { %v2195_v48 = vld [vmem:[%s3139_s1 + $0x1a0] ss:$8 sps:$4 sm:$0xff]   ;;  %v2206_v51 = vld [vmem:[%s3139_s1 + $0x4b4] ss:$8 sps:$4 sm:$0xff]  }
  0x23   :  { %1471 = vmatpush1.bf16.msra.mxu1 %v2085_v34  ;;  %v2233_v34 = vld [vmem:[%s3140_s0 + $0xc] ss:$56 sps:$4 sm:$0xff]  }
  0x24   :  { %1600 = vmatpush1.bf16.msra.mxu0 %v2086_v35  ;;  %1472 = vmatprep.subr.bf16.mxu1 %v2087_v36  ;;  %v2177_v35 = vld [vmem:[%s3139_s1 + $0x170] ss:$8 sps:$4 sm:$0xff]  }
  0x25   :  { %1601 = vmatprep.subr.bf16.mxu0 %v2089_v37  ;;  %v2180_v36 = vld [vmem:[%s3139_s1 + $0x470] ss:$8 sps:$4 sm:$0xff]   ;;  %v2239_v37 = vld [vmem:[%s3140_s0 + $0x24] ss:$56 sps:$4 sm:$0xff]  }
  0x27   :  { %1473 = vmatpush1.bf16.msra.mxu1 %v2091_v38  ;;  %v2185_v38 = vld [vmem:[%s3139_s1 + $0x184] ss:$8 sps:$4 sm:$0xff]  }
  0x28   :  { %1602 = vmatpush1.bf16.msra.mxu0 %v2092_v39  ;;  %1474 = vmatprep.subr.bf16.mxu1 %v2093_v40  ;;  %v2188_v39 = vld [vmem:[%s3139_s1 + $0x484] ss:$8 sps:$4 sm:$0xff]   ;;  %v2183_v40 = vld [vmem:[%s3139_s1 + $0x180] ss:$8 sps:$4 sm:$0xff]  }
  0x29   :  { %1603 = vmatprep.subr.bf16.mxu0 %v2095_v41  ;;  %v2186_v41 = vld [vmem:[%s3139_s1 + $0x480] ss:$8 sps:$4 sm:$0xff]  }
  0x2b   :  { %1475 = vmatpush1.bf16.msra.mxu1 %v2097_v42  ;;  %v2191_v42 = vld [vmem:[%s3139_s1 + $0x194] ss:$8 sps:$4 sm:$0xff]  }
  0x2c   :  { %1604 = vmatpush1.bf16.msra.mxu0 %v2098_v43  ;;  %1476 = vmatprep.subr.bf16.mxu1 %v2099_v44  ;;  %v2194_v43 = vld [vmem:[%s3139_s1 + $0x494] ss:$8 sps:$4 sm:$0xff]   ;;  %v2189_v44 = vld [vmem:[%s3139_s1 + $0x190] ss:$8 sps:$4 sm:$0xff]  }
  0x2d   :  { %1605 = vmatprep.subr.bf16.mxu0 %v2101_v45  ;;  %v2192_v45 = vld [vmem:[%s3139_s1 + $0x490] ss:$8 sps:$4 sm:$0xff]  }
  0x2f   :  { %1477 = vmatpush1.bf16.msra.mxu1 %v2103_v46  ;;  %v2197_v46 = vld [vmem:[%s3139_s1 + $0x1a4] ss:$8 sps:$4 sm:$0xff]  }
  0x30   :  { %1606 = vmatpush1.bf16.msra.mxu0 %v2104_v47  ;;  %1478 = vmatprep.subr.bf16.mxu1 %v2105_v49  ;;  %v2200_v47 = vld [vmem:[%s3139_s1 + $0x4a4] ss:$8 sps:$4 sm:$0xff]   ;;  %v2198_v49 = vld [vmem:[%s3139_s1 + $0x4a0] ss:$8 sps:$4 sm:$0xff]  }
  0x31   :  { %1607 = vmatprep.subr.bf16.mxu0 %v2107_v50  ;;  %v2203_v50 = vld [vmem:[%s3139_s1 + $0x1b4] ss:$8 sps:$4 sm:$0xff]  }
  0x33   :  { %1479 = vmatpush1.bf16.msra.mxu1 %v2109_v52  ;;  %v2201_v52 = vld [vmem:[%s3139_s1 + $0x1b0] ss:$8 sps:$4 sm:$0xff]  }
  0x34   :  { %1608 = vmatpush1.bf16.msra.mxu0 %v2110_v53  ;;  %1480 = vmatprep.subr.bf16.mxu1 %v2111_v54  ;;  %v2204_v53 = vld [vmem:[%s3139_s1 + $0x4b0] ss:$8 sps:$4 sm:$0xff]   ;;  %v2209_v54 = vld [vmem:[%s3139_s1 + $0x1c4] ss:$8 sps:$4 sm:$0xff]  }
  0x35   :  { %1609 = vmatprep.subr.bf16.mxu0 %v2113_v55  ;;  %v2212_v55 = vld [vmem:[%s3139_s1 + $0x4c4] ss:$8 sps:$4 sm:$0xff]  }
  0x37   :  { %1481 = vmatpush1.bf16.msra.mxu1 %v2115_v56  ;;  %v2207_v56 = vld [vmem:[%s3139_s1 + $0x1c0] ss:$8 sps:$4 sm:$0xff]  }
  0x38   :  { %1610 = vmatpush1.bf16.msra.mxu0 %v2116_v57  ;;  %1482 = vmatprep.subr.bf16.mxu1 %v2117_v58  ;;  %v2210_v57 = vld [vmem:[%s3139_s1 + $0x4c0] ss:$8 sps:$4 sm:$0xff]   ;;  %v2215_v58 = vld [vmem:[%s3139_s1 + $0x1d4] ss:$8 sps:$4 sm:$0xff]  }
  0x39   :  { %1611 = vmatprep.subr.bf16.mxu0 %v2119_v59  ;;  %v2218_v59 = vld [vmem:[%s3139_s1 + $0x4d4] ss:$8 sps:$4 sm:$0xff]  }
  0x3b   :  { %1483 = vmatpush1.bf16.msra.mxu1 %v2121_v60  ;;  %v2213_v60 = vld [vmem:[%s3139_s1 + $0x1d0] ss:$8 sps:$4 sm:$0xff]  }
  0x3c   :  { %1612 = vmatpush1.bf16.msra.mxu0 %v2122_v61  ;;  %1484 = vmatprep.subr.bf16.mxu1 %v2123_v62  ;;  %v2216_v61 = vld [vmem:[%s3139_s1 + $0x4d0] ss:$8 sps:$4 sm:$0xff]   ;;  %v2221_v62 = vld [vmem:[%s3139_s1 + $0x1e4] ss:$8 sps:$4 sm:$0xff]  }
  0x3d   :  { %1613 = vmatprep.subr.bf16.mxu0 %v2125_v63  ;;  %v2224_v63 = vld [vmem:[%s3139_s1 + $0x4e4] ss:$8 sps:$4 sm:$0xff]  }
  0x3f   :  { %1485 = vmatpush1.bf16.msra.mxu1 %v2127_v0  ;;  %v2219_v0 = vld [vmem:[%s3139_s1 + $0x1e0] ss:$8 sps:$4 sm:$0xff]  }
  0x40   :  { %1614 = vmatpush1.bf16.msra.mxu0 %v2128_v1  ;;  %1497 = vmatprep.subr.bf16.mxu1 %v2134_v2  ;;  %v2222_v1 = vld [vmem:[%s3139_s1 + $0x4e0] ss:$8 sps:$4 sm:$0xff]   ;;  %v2227_v2 = vld [vmem:[%s3139_s1 + $0x1f4] ss:$8 sps:$4 sm:$0xff]  }
  0x41   :  { %1626 = vmatprep.subr.bf16.mxu0 %v2140_v3  ;;  %v2230_v3 = vld [vmem:[%s3139_s1 + $0x4f4] ss:$8 sps:$4 sm:$0xff]  }
  0x42   :  { %1487 = vmatmul.mubr.bf16.vlgmr.msra.gmra.mrb[0].mxu1 %v2129_v4  ;;  %v2225_v4 = vld [vmem:[%s3139_s1 + $0x1f0] ss:$8 sps:$4 sm:$0xff]  }
  0x43   :  { %1616 = vmatmul.mubr.bf16.vlgmr.msra.gmra.mrb[0].mxu0 %v2135_v6  ;;  %1498 = vmatpush1.bf16.msra.mxu1 %v2132_v5  ;;  %v2228_v5 = vld [vmem:[%s3139_s1 + $0x4f0] ss:$8 sps:$4 sm:$0xff]   ;;  %v2236_v6 = vld [vmem:[%s3139_s1 + $0x204] ss:$8 sps:$4 sm:$0xff]  }
  0x44   :  { %1627 = vmatpush1.bf16.msra.mxu0 %v2138_v7  ;;  %1499 = vmatprep.subr.bf16.mxu1 %v2143_v8  ;;  %v2242_v7 = vld [vmem:[%s3139_s1 + $0x504] ss:$8 sps:$4 sm:$0xff]   ;;  %v2231_v8 = vld [vmem:[%s3140_s0 + $0x8] ss:$56 sps:$4 sm:$0xff]  }
  0x45   :  { %1628 = vmatprep.subr.bf16.mxu0 %v2146_v9  ;;  %1529 = vmatprep.mubr.bf16.mxu1 %v2233_v34  ;;  %v2234_v9 = vld [vmem:[%s3139_s1 + $0x200] ss:$8 sps:$4 sm:$0xff]   ;;  %v2275_v34 = vld [vmem:[%s3139_s1 + $0x264] ss:$8 sps:$4 sm:$0xff]  }
  0x46   :  { %1658 = vmatprep.mubr.bf16.mxu0 %v2239_v37  ;;  %v2276_v37 = vld [vmem:[%s3139_s1 + $0x560] ss:$8 sps:$4 sm:$0xff]  }
  0x47   :  { %1500 = vmatpush1.bf16.msra.mxu1 %v2141_v10  ;;  %v2237_v10 = vld [vmem:[%s3140_s0 + $0x20] ss:$56 sps:$4 sm:$0xff]  }
  0x48   :  { %1629 = vmatpush1.bf16.msra.mxu0 %v2144_v11  ;;  %1501 = vmatprep.subr.bf16.mxu1 %v2149_v12  ;;  %v2240_v11 = vld [vmem:[%s3139_s1 + $0x500] ss:$8 sps:$4 sm:$0xff]   ;;  %v2245_v12 = vld [vmem:[%s3139_s1 + $0x214] ss:$8 sps:$4 sm:$0xff]  }
  0x49   :  { %1630 = vmatprep.subr.bf16.mxu0 %v2152_v13  ;;  %v2248_v13 = vld [vmem:[%s3139_s1 + $0x514] ss:$8 sps:$4 sm:$0xff]  }
  0x4b   :  { %1502 = vmatpush1.bf16.msra.mxu1 %v2147_v14  ;;  %v2243_v14 = vld [vmem:[%s3139_s1 + $0x210] ss:$8 sps:$4 sm:$0xff]  }
  0x4c   :  { %1631 = vmatpush1.bf16.msra.mxu0 %v2150_v15  ;;  %1503 = vmatprep.subr.bf16.mxu1 %v2155_v16  ;;  %v2246_v15 = vld [vmem:[%s3139_s1 + $0x510] ss:$8 sps:$4 sm:$0xff]   ;;  %v2251_v16 = vld [vmem:[%s3139_s1 + $0x224] ss:$8 sps:$4 sm:$0xff]  }
  0x4d   :  { %1632 = vmatprep.subr.bf16.mxu0 %v2158_v17  ;;  %v2254_v17 = vld [vmem:[%s3139_s1 + $0x524] ss:$8 sps:$4 sm:$0xff]  }
  0x4f   :  { %1504 = vmatpush1.bf16.msra.mxu1 %v2153_v18  ;;  %v2249_v18 = vld [vmem:[%s3139_s1 + $0x220] ss:$8 sps:$4 sm:$0xff]  }
  0x50   :  { %1633 = vmatpush1.bf16.msra.mxu0 %v2156_v19  ;;  %1505 = vmatprep.subr.bf16.mxu1 %v2161_v20  ;;  %v2335_v19 = vld [vmem:[%s3140_s0 + $0x14] ss:$56 sps:$4 sm:$0xff]   ;;  %v2252_v20 = vld [vmem:[%s3139_s1 + $0x520] ss:$8 sps:$4 sm:$0xff]  }
  0x51   :  { %1634 = vmatprep.subr.bf16.mxu0 %v2164_v21  ;;  %v2338_v21 = vld [vmem:[%s3140_s0 + $0x2c] ss:$56 sps:$4 sm:$0xff]  }
  0x53   :  { %1506 = vmatpush1.bf16.msra.mxu1 %v2159_v22  ;;  %v2257_v22 = vld [vmem:[%s3139_s1 + $0x234] ss:$8 sps:$4 sm:$0xff]  }
  0x54   :  { %1635 = vmatpush1.bf16.msra.mxu0 %v2162_v23  ;;  %1507 = vmatprep.subr.bf16.mxu1 %v2167_v24  ;;  %v2260_v23 = vld [vmem:[%s3139_s1 + $0x534] ss:$8 sps:$4 sm:$0xff]   ;;  %v2255_v24 = vld [vmem:[%s3139_s1 + $0x230] ss:$8 sps:$4 sm:$0xff]  }
  0x55   :  { %1636 = vmatprep.subr.bf16.mxu0 %v2170_v25  ;;  %v2258_v25 = vld [vmem:[%s3139_s1 + $0x530] ss:$8 sps:$4 sm:$0xff]  }
  0x57   :  { %1508 = vmatpush1.bf16.msra.mxu1 %v2165_v26  ;;  %v2263_v26 = vld [vmem:[%s3139_s1 + $0x244] ss:$8 sps:$4 sm:$0xff]  }
  0x58   :  { %1637 = vmatpush1.bf16.msra.mxu0 %v2168_v27  ;;  %1509 = vmatprep.subr.bf16.mxu1 %v2173_v28  ;;  %v2266_v27 = vld [vmem:[%s3139_s1 + $0x544] ss:$8 sps:$4 sm:$0xff]   ;;  %v2261_v28 = vld [vmem:[%s3139_s1 + $0x240] ss:$8 sps:$4 sm:$0xff]  }
  0x59   :  { %1638 = vmatprep.subr.bf16.mxu0 %v2176_v29  ;;  %v2264_v29 = vld [vmem:[%s3139_s1 + $0x540] ss:$8 sps:$4 sm:$0xff]  }
  0x5b   :  { %1510 = vmatpush1.bf16.msra.mxu1 %v2171_v30  ;;  %v2269_v30 = vld [vmem:[%s3139_s1 + $0x254] ss:$8 sps:$4 sm:$0xff]  }
  0x5c   :  { %1639 = vmatpush1.bf16.msra.mxu0 %v2174_v31  ;;  %1511 = vmatprep.subr.bf16.mxu1 %v2179_v32  ;;  %v2272_v31 = vld [vmem:[%s3139_s1 + $0x554] ss:$8 sps:$4 sm:$0xff]   ;;  %v2267_v32 = vld [vmem:[%s3139_s1 + $0x250] ss:$8 sps:$4 sm:$0xff]  }
  0x5d   :  { %1640 = vmatprep.subr.bf16.mxu0 %v2182_v33  ;;  %v2270_v33 = vld [vmem:[%s3139_s1 + $0x550] ss:$8 sps:$4 sm:$0xff]  }
  0x5f   :  { %1512 = vmatpush1.bf16.msra.mxu1 %v2177_v35  ;;  %v2278_v35 = vld [vmem:[%s3139_s1 + $0x564] ss:$8 sps:$4 sm:$0xff]  }
  0x60   :  { %1641 = vmatpush1.bf16.msra.mxu0 %v2180_v36  ;;  %1513 = vmatprep.subr.bf16.mxu1 %v2185_v38  ;;  %v2273_v36 = vld [vmem:[%s3139_s1 + $0x260] ss:$8 sps:$4 sm:$0xff]   ;;  %v2281_v38 = vld [vmem:[%s3139_s1 + $0x274] ss:$8 sps:$4 sm:$0xff]  }
  0x61   :  { %1642 = vmatprep.subr.bf16.mxu0 %v2188_v39  ;;  %v2284_v39 = vld [vmem:[%s3139_s1 + $0x574] ss:$8 sps:$4 sm:$0xff]  }
  0x63   :  { %1514 = vmatpush1.bf16.msra.mxu1 %v2183_v40  ;;  %v2279_v40 = vld [vmem:[%s3139_s1 + $0x270] ss:$8 sps:$4 sm:$0xff]  }
  0x64   :  { %1643 = vmatpush1.bf16.msra.mxu0 %v2186_v41  ;;  %1515 = vmatprep.subr.bf16.mxu1 %v2191_v42  ;;  %v2282_v41 = vld [vmem:[%s3139_s1 + $0x570] ss:$8 sps:$4 sm:$0xff]   ;;  %v2287_v42 = vld [vmem:[%s3139_s1 + $0x284] ss:$8 sps:$4 sm:$0xff]  }
  0x65   :  { %1644 = vmatprep.subr.bf16.mxu0 %v2194_v43  ;;  %v2290_v43 = vld [vmem:[%s3139_s1 + $0x584] ss:$8 sps:$4 sm:$0xff]  }
  0x67   :  { %1516 = vmatpush1.bf16.msra.mxu1 %v2189_v44  ;;  %v2285_v44 = vld [vmem:[%s3139_s1 + $0x280] ss:$8 sps:$4 sm:$0xff]  }
  0x68   :  { %1645 = vmatpush1.bf16.msra.mxu0 %v2192_v45  ;;  %1517 = vmatprep.subr.bf16.mxu1 %v2197_v46  ;;  %v2288_v45 = vld [vmem:[%s3139_s1 + $0x580] ss:$8 sps:$4 sm:$0xff]   ;;  %v2293_v46 = vld [vmem:[%s3139_s1 + $0x294] ss:$8 sps:$4 sm:$0xff]  }
  0x69   :  { %1646 = vmatprep.subr.bf16.mxu0 %v2200_v47  ;;  %v2296_v47 = vld [vmem:[%s3139_s1 + $0x594] ss:$8 sps:$4 sm:$0xff]  }
  0x6b   :  { %1518 = vmatpush1.bf16.msra.mxu1 %v2195_v48  ;;  %v2291_v48 = vld [vmem:[%s3139_s1 + $0x290] ss:$8 sps:$4 sm:$0xff]  }
  0x6c   :  { %1647 = vmatpush1.bf16.msra.mxu0 %v2198_v49  ;;  %1519 = vmatprep.subr.bf16.mxu1 %v2203_v50  ;;  %v2294_v49 = vld [vmem:[%s3139_s1 + $0x590] ss:$8 sps:$4 sm:$0xff]   ;;  %v2299_v50 = vld [vmem:[%s3139_s1 + $0x2a4] ss:$8 sps:$4 sm:$0xff]  }
  0x6d   :  { %1648 = vmatprep.subr.bf16.mxu0 %v2206_v51  ;;  %v2302_v51 = vld [vmem:[%s3139_s1 + $0x5a4] ss:$8 sps:$4 sm:$0xff]  }
  0x6f   :  { %1520 = vmatpush1.bf16.msra.mxu1 %v2201_v52  ;;  %v2297_v52 = vld [vmem:[%s3139_s1 + $0x2a0] ss:$8 sps:$4 sm:$0xff]  }
  0x70   :  { %1649 = vmatpush1.bf16.msra.mxu0 %v2204_v53  ;;  %1521 = vmatprep.subr.bf16.mxu1 %v2209_v54  ;;  %v2300_v53 = vld [vmem:[%s3139_s1 + $0x5a0] ss:$8 sps:$4 sm:$0xff]   ;;  %v2305_v54 = vld [vmem:[%s3139_s1 + $0x2b4] ss:$8 sps:$4 sm:$0xff]  }
  0x71   :  { %1650 = vmatprep.subr.bf16.mxu0 %v2212_v55  ;;  %v2308_v55 = vld [vmem:[%s3139_s1 + $0x5b4] ss:$8 sps:$4 sm:$0xff]  }
  0x73   :  { %1522 = vmatpush1.bf16.msra.mxu1 %v2207_v56  ;;  %v2303_v56 = vld [vmem:[%s3139_s1 + $0x2b0] ss:$8 sps:$4 sm:$0xff]  }
  0x74   :  { %1651 = vmatpush1.bf16.msra.mxu0 %v2210_v57  ;;  %1523 = vmatprep.subr.bf16.mxu1 %v2215_v58  ;;  %v2306_v57 = vld [vmem:[%s3139_s1 + $0x5b0] ss:$8 sps:$4 sm:$0xff]   ;;  %v2311_v58 = vld [vmem:[%s3139_s1 + $0x2c4] ss:$8 sps:$4 sm:$0xff]  }
  0x75   :  { %1652 = vmatprep.subr.bf16.mxu0 %v2218_v59  ;;  %v2314_v59 = vld [vmem:[%s3139_s1 + $0x5c4] ss:$8 sps:$4 sm:$0xff]  }
  0x77   :  { %1524 = vmatpush1.bf16.msra.mxu1 %v2213_v60  ;;  %v2309_v60 = vld [vmem:[%s3139_s1 + $0x2c0] ss:$8 sps:$4 sm:$0xff]  }
  0x78   :  { %1653 = vmatpush1.bf16.msra.mxu0 %v2216_v61  ;;  %1525 = vmatprep.subr.bf16.mxu1 %v2221_v62  ;;  %v2312_v61 = vld [vmem:[%s3139_s1 + $0x5c0] ss:$8 sps:$4 sm:$0xff]   ;;  %v2317_v62 = vld [vmem:[%s3139_s1 + $0x2d4] ss:$8 sps:$4 sm:$0xff]  }
  0x79   :  { %1654 = vmatprep.subr.bf16.mxu0 %v2224_v63  ;;  %v2320_v63 = vld [vmem:[%s3139_s1 + $0x5d4] ss:$8 sps:$4 sm:$0xff]  }
  0x7b   :  { %1526 = vmatpush1.bf16.msra.mxu1 %v2219_v0  ;;  %v2315_v0 = vld [vmem:[%s3139_s1 + $0x2d0] ss:$8 sps:$4 sm:$0xff]  }
  0x7c   :  { %1655 = vmatpush1.bf16.msra.mxu0 %v2222_v1  ;;  %1527 = vmatprep.subr.bf16.mxu1 %v2227_v2  ;;  %v2318_v1 = vld [vmem:[%s3139_s1 + $0x5d0] ss:$8 sps:$4 sm:$0xff]   ;;  %v2323_v2 = vld [vmem:[%s3139_s1 + $0x2e4] ss:$8 sps:$4 sm:$0xff]  }
  0x7d   :  { %1656 = vmatprep.subr.bf16.mxu0 %v2230_v3  ;;  %v2326_v3 = vld [vmem:[%s3139_s1 + $0x5e4] ss:$8 sps:$4 sm:$0xff]  }
  0x7f   :  { %1528 = vmatpush1.bf16.msra.mxu1 %v2225_v4  ;;  %v2321_v4 = vld [vmem:[%s3139_s1 + $0x2e0] ss:$8 sps:$4 sm:$0xff]  }
  0x80   :  { %1657 = vmatpush1.bf16.msra.mxu0 %v2228_v5  ;;  %1540 = vmatprep.subr.bf16.mxu1 %v2236_v6  ;;  %v2324_v5 = vld [vmem:[%s3139_s1 + $0x5e0] ss:$8 sps:$4 sm:$0xff]   ;;  %v2329_v6 = vld [vmem:[%s3139_s1 + $0x2f4] ss:$8 sps:$4 sm:$0xff]  }
  0x81   :  { %1669 = vmatprep.subr.bf16.mxu0 %v2242_v7  ;;  %v2332_v7 = vld [vmem:[%s3139_s1 + $0x5f4] ss:$8 sps:$4 sm:$0xff]  }
  0x82   :  { %1530 = vmatmul.mubr.bf16.vlgmr.msra.gmra.mrb[0].mxu1 %v2231_v8  ;;  %v2327_v8 = vld [vmem:[%s3139_s1 + $0x2f0] ss:$8 sps:$4 sm:$0xff]  }
  0x83   :  { %1659 = vmatmul.mubr.bf16.vlgmr.msra.gmra.mrb[0].mxu0 %v2237_v10  ;;  %1541 = vmatpush1.bf16.msra.mxu1 %v2234_v9  ;;  %v2330_v9 = vld [vmem:[%s3139_s1 + $0x5f0] ss:$8 sps:$4 sm:$0xff]   ;;  %v2341_v10 = vld [vmem:[%s3139_s1 + $0x604] ss:$8 sps:$4 sm:$0xff]  }
  0x84   :  { %1670 = vmatpush1.bf16.msra.mxu0 %v2240_v11  ;;  %1542 = vmatprep.subr.bf16.mxu1 %v2245_v12  ;;  %v2333_v11 = vld [vmem:[%s3140_s0 + $0x10] ss:$56 sps:$4 sm:$0xff]  }
  0x85   :  { %1671 = vmatprep.subr.bf16.mxu0 %v2248_v13  ;;  %1572 = vmatprep.mubr.bf16.mxu1 %v2335_v19  ;;  %v2336_v12 = vld [vmem:[%s3140_s0 + $0x28] ss:$56 sps:$4 sm:$0xff]   ;;  %v2350_v19 = vld [vmem:[%s3139_s1 + $0x634] ss:$8 sps:$4 sm:$0xff]  }
  0x86   :  { %1701 = vmatprep.mubr.bf16.mxu0 %v2338_v21  ;;  %v2339_v13 = vld [vmem:[%s3139_s1 + $0x600] ss:$8 sps:$4 sm:$0xff]   ;;  %v2353_v21 = vld [vmem:[%s3139_s1 + $0x644] ss:$8 sps:$4 sm:$0xff]  }
  0x87   :  { %1543 = vmatpush1.bf16.msra.mxu1 %v2243_v14  ;;  %v2389_v14 = vld [vmem:[%s3140_s0 + $0x34] ss:$56 sps:$4 sm:$0xff]  }
  0x88   :  { %1672 = vmatpush1.bf16.msra.mxu0 %v2246_v15  ;;  %1544 = vmatprep.subr.bf16.mxu1 %v2251_v16  ;;  %v2344_v15 = vld [vmem:[%s3139_s1 + $0x614] ss:$8 sps:$4 sm:$0xff]   ;;  %v2342_v16 = vld [vmem:[%s3139_s1 + $0x610] ss:$8 sps:$4 sm:$0xff]  }
  0x89   :  { %1673 = vmatprep.subr.bf16.mxu0 %v2254_v17  ;;  %v2347_v17 = vld [vmem:[%s3139_s1 + $0x624] ss:$8 sps:$4 sm:$0xff]  }
  0x8b   :  { %1545 = vmatpush1.bf16.msra.mxu1 %v2249_v18  ;;  %v2345_v18 = vld [vmem:[%s3139_s1 + $0x620] ss:$8 sps:$4 sm:$0xff]  }
  0x8c   :  { %1674 = vmatpush1.bf16.msra.mxu0 %v2252_v20  ;;  %1546 = vmatprep.subr.bf16.mxu1 %v2257_v22  ;;  %v2348_v20 = vld [vmem:[%s3139_s1 + $0x630] ss:$8 sps:$4 sm:$0xff]   ;;  %v2351_v22 = vld [vmem:[%s3139_s1 + $0x640] ss:$8 sps:$4 sm:$0xff]  }
  0x8d   :  { %1675 = vmatprep.subr.bf16.mxu0 %v2260_v23  ;;  %v2356_v23 = vld [vmem:[%s3139_s1 + $0x654] ss:$8 sps:$4 sm:$0xff]  }
  0x8f   :  { %1547 = vmatpush1.bf16.msra.mxu1 %v2255_v24  ;;  %v2354_v24 = vld [vmem:[%s3139_s1 + $0x650] ss:$8 sps:$4 sm:$0xff]  }
  0x90   :  { %1676 = vmatpush1.bf16.msra.mxu0 %v2258_v25  ;;  %1548 = vmatprep.subr.bf16.mxu1 %v2263_v26  ;;  %v2359_v25 = vld [vmem:[%s3139_s1 + $0x664] ss:$8 sps:$4 sm:$0xff]   ;;  %v2357_v26 = vld [vmem:[%s3139_s1 + $0x660] ss:$8 sps:$4 sm:$0xff]  }
  0x91   :  { %1677 = vmatprep.subr.bf16.mxu0 %v2266_v27  ;;  %v2362_v27 = vld [vmem:[%s3139_s1 + $0x674] ss:$8 sps:$4 sm:$0xff]  }
  0x93   :  { %1549 = vmatpush1.bf16.msra.mxu1 %v2261_v28  ;;  %v2360_v28 = vld [vmem:[%s3139_s1 + $0x670] ss:$8 sps:$4 sm:$0xff]  }
  0x94   :  { %1678 = vmatpush1.bf16.msra.mxu0 %v2264_v29  ;;  %1550 = vmatprep.subr.bf16.mxu1 %v2269_v30  ;;  %v2365_v29 = vld [vmem:[%s3139_s1 + $0x684] ss:$8 sps:$4 sm:$0xff]   ;;  %v2363_v30 = vld [vmem:[%s3139_s1 + $0x680] ss:$8 sps:$4 sm:$0xff]  }
  0x95   :  { %1679 = vmatprep.subr.bf16.mxu0 %v2272_v31  ;;  %v2368_v31 = vld [vmem:[%s3139_s1 + $0x694] ss:$8 sps:$4 sm:$0xff]  }
  0x97   :  { %1551 = vmatpush1.bf16.msra.mxu1 %v2267_v32  ;;  %v2366_v32 = vld [vmem:[%s3139_s1 + $0x690] ss:$8 sps:$4 sm:$0xff]  }
  0x98   :  { %1680 = vmatpush1.bf16.msra.mxu0 %v2270_v33  ;;  %1552 = vmatprep.subr.bf16.mxu1 %v2275_v34  ;;  %v2371_v33 = vld [vmem:[%s3139_s1 + $0x6a4] ss:$8 sps:$4 sm:$0xff]   ;;  %v2369_v34 = vld [vmem:[%s3139_s1 + $0x6a0] ss:$8 sps:$4 sm:$0xff]  }
  0x99   :  { %1681 = vmatprep.subr.bf16.mxu0 %v2278_v35  ;;  %v2374_v35 = vld [vmem:[%s3139_s1 + $0x6b4] ss:$8 sps:$4 sm:$0xff]  }
  0x9b   :  { %1553 = vmatpush1.bf16.msra.mxu1 %v2273_v36  ;;  %v2372_v36 = vld [vmem:[%s3139_s1 + $0x6b0] ss:$8 sps:$4 sm:$0xff]  }
  0x9c   :  { %1682 = vmatpush1.bf16.msra.mxu0 %v2276_v37  ;;  %1554 = vmatprep.subr.bf16.mxu1 %v2281_v38  ;;  %v2377_v37 = vld [vmem:[%s3139_s1 + $0x6c4] ss:$8 sps:$4 sm:$0xff]   ;;  %v2375_v38 = vld [vmem:[%s3139_s1 + $0x6c0] ss:$8 sps:$4 sm:$0xff]  }
  0x9d   :  { %1683 = vmatprep.subr.bf16.mxu0 %v2284_v39  ;;  %v2380_v39 = vld [vmem:[%s3139_s1 + $0x6d4] ss:$8 sps:$4 sm:$0xff]  }
  0x9f   :  { %1555 = vmatpush1.bf16.msra.mxu1 %v2279_v40  ;;  %v2378_v40 = vld [vmem:[%s3139_s1 + $0x6d0] ss:$8 sps:$4 sm:$0xff]  }
  0xa0   :  { %1684 = vmatpush1.bf16.msra.mxu0 %v2282_v41  ;;  %1556 = vmatprep.subr.bf16.mxu1 %v2287_v42  ;;  %v2383_v41 = vld [vmem:[%s3139_s1 + $0x6e4] ss:$8 sps:$4 sm:$0xff]   ;;  %v2381_v42 = vld [vmem:[%s3139_s1 + $0x6e0] ss:$8 sps:$4 sm:$0xff]  }
  0xa1   :  { %1685 = vmatprep.subr.bf16.mxu0 %v2290_v43  ;;  %v2386_v43 = vld [vmem:[%s3139_s1 + $0x6f4] ss:$8 sps:$4 sm:$0xff]  }
  0xa3   :  { %1557 = vmatpush1.bf16.msra.mxu1 %v2285_v44  ;;  %v2384_v44 = vld [vmem:[%s3139_s1 + $0x6f0] ss:$8 sps:$4 sm:$0xff]  }
  0xa4   :  { %1686 = vmatpush1.bf16.msra.mxu0 %v2288_v45  ;;  %1558 = vmatprep.subr.bf16.mxu1 %v2293_v46  ;;  %v2387_v45 = vld [vmem:[%s3140_s0 + $0x30] ss:$56 sps:$4 sm:$0xff]  }
  0xa5   :  { %1687 = vmatprep.subr.bf16.mxu0 %v2296_v47 }
  0xa7   :  { %1559 = vmatpush1.bf16.msra.mxu1 %v2291_v48 }
  0xa8   :  { %1688 = vmatpush1.bf16.msra.mxu0 %v2294_v49  ;;  %1560 = vmatprep.subr.bf16.mxu1 %v2299_v50  ;;  %v254_v50 = vlaneseq }
  0xa9   :  { %1689 = vmatprep.subr.bf16.mxu0 %v2302_v51 }
  0xaa   :  { %v255_v51 = vshrl.u32 %v254_v50, 7 }
  0xab   :  { %1561 = vmatpush1.bf16.msra.mxu1 %v2297_v52 }
  0xac   :  { %1690 = vmatpush1.bf16.msra.mxu0 %v2300_v53  ;;  %1562 = vmatprep.subr.bf16.mxu1 %v2305_v54  ;;  %v256_v52 = vsub.s32 0, %v255_v51  ;;  %v252_v53 = vld [vmem:[%s3141_s2] sm:$0x3]  ;;  %v260_v54 = vsub.s32 1, %v255_v51 }
  0xad   :  { %1691 = vmatprep.subr.bf16.mxu0 %v2308_v55 }
  0xae   :  { %v257_v55 = vrot.slane %v252_v53, %v256_v52 }
  0xaf   :  { %1563 = vmatpush1.bf16.msra.mxu1 %v2303_v56  ;;  %v261_v56 = vrot.slane %v252_v53, %v260_v54 }
  0xb0   :  { %1692 = vmatpush1.bf16.msra.mxu0 %v2306_v57  ;;  %1564 = vmatprep.subr.bf16.mxu1 %v2311_v58 }
  0xb1   :  { %1693 = vmatprep.subr.bf16.mxu0 %v2314_v59 }
  0xb3   :  { %1565 = vmatpush1.bf16.msra.mxu1 %v2309_v60 }
  0xb4   :  { %1694 = vmatpush1.bf16.msra.mxu0 %v2312_v61  ;;  %1566 = vmatprep.subr.bf16.mxu1 %v2317_v62 }
  0xb5   :  { %1695 = vmatprep.subr.bf16.mxu0 %v2320_v63 }
  0xb7   :  { %1567 = vmatpush1.bf16.msra.mxu1 %v2315_v0 }
  0xb8   :  { %1696 = vmatpush1.bf16.msra.mxu0 %v2318_v1  ;;  %1568 = vmatprep.subr.bf16.mxu1 %v2323_v2 }
  0xb9   :  { %1697 = vmatprep.subr.bf16.mxu0 %v2326_v3 }
  0xbb   :  { %1569 = vmatpush1.bf16.msra.mxu1 %v2321_v4 }
  0xbc   :  { %1698 = vmatpush1.bf16.msra.mxu0 %v2324_v5  ;;  %1570 = vmatprep.subr.bf16.mxu1 %v2329_v6 }
  0xbd   :  { %1699 = vmatprep.subr.bf16.mxu0 %v2332_v7 }
  0xbf   :  { %1571 = vmatpush1.bf16.msra.mxu1 %v2327_v8 }
  0xc0   :  { %1700 = vmatpush1.bf16.msra.mxu0 %v2330_v9 }
  0xc1   :  { %1712 = vmatprep.subr.bf16.mxu0 %v2341_v10 }
  0xc2   :  { %1573 = vmatmul.mubr.bf16.vlgmr.msra.gmra.mrb[0].mxu1 %v2333_v11 }
  0xc3   :  { %1702 = vmatmul.mubr.bf16.vlgmr.msra.gmra.mrb[0].mxu0 %v2336_v12 }
  0xc4   :  { %1713 = vmatpush1.bf16.msra.mxu0 %v2339_v13  ;;  %1744 = vmatprep.mubr.bf16.mxu0 %v2389_v14 }
  0xc5   :  { %1714 = vmatprep.subr.bf16.mxu0 %v2344_v15 }
  0xc8   :  { %1715 = vmatpush1.bf16.msra.mxu0 %v2342_v16 }
  0xc9   :  { %1716 = vmatprep.subr.bf16.mxu0 %v2347_v17 }
  0xcc   :  { %1717 = vmatpush1.bf16.msra.mxu0 %v2345_v18 }
  0xcd   :  { %1718 = vmatprep.subr.bf16.mxu0 %v2350_v19 }
  0xd0   :  { %1719 = vmatpush1.bf16.msra.mxu0 %v2348_v20 }
  0xd1   :  { %1720 = vmatprep.subr.bf16.mxu0 %v2353_v21 }
  0xd4   :  { %1721 = vmatpush1.bf16.msra.mxu0 %v2351_v22 }
  0xd5   :  { %1722 = vmatprep.subr.bf16.mxu0 %v2356_v23 }
  0xd8   :  { %1723 = vmatpush1.bf16.msra.mxu0 %v2354_v24 }
  0xd9   :  { %1724 = vmatprep.subr.bf16.mxu0 %v2359_v25 }
  0xdc   :  { %1725 = vmatpush1.bf16.msra.mxu0 %v2357_v26 }
  0xdd   :  { %1726 = vmatprep.subr.bf16.mxu0 %v2362_v27 }
  0xe0   :  { %1727 = vmatpush1.bf16.msra.mxu0 %v2360_v28 }
  0xe1   :  { %1728 = vmatprep.subr.bf16.mxu0 %v2365_v29 }
  0xe4   :  { %1729 = vmatpush1.bf16.msra.mxu0 %v2363_v30 }
  0xe5   :  { %1730 = vmatprep.subr.bf16.mxu0 %v2368_v31 }
  0xe8   :  { %1731 = vmatpush1.bf16.msra.mxu0 %v2366_v32 }
  0xe9   :  { %1732 = vmatprep.subr.bf16.mxu0 %v2371_v33 }
  0xec   :  { %1733 = vmatpush1.bf16.msra.mxu0 %v2369_v34 }
  0xed   :  { %1734 = vmatprep.subr.bf16.mxu0 %v2374_v35 }
  0xf0   :  { %1735 = vmatpush1.bf16.msra.mxu0 %v2372_v36 }
  0xf1   :  { %1736 = vmatprep.subr.bf16.mxu0 %v2377_v37 }
  0xf4   :  { %1737 = vmatpush1.bf16.msra.mxu0 %v2375_v38 }
  0xf5   :  { %1738 = vmatprep.subr.bf16.mxu0 %v2380_v39 }
  0xf8   :  { %1739 = vmatpush1.bf16.msra.mxu0 %v2378_v40 }
  0xf9   :  { %1740 = vmatprep.subr.bf16.mxu0 %v2383_v41 }
  0xfc   :  { %1741 = vmatpush1.bf16.msra.mxu0 %v2381_v42 }
  0xfd   :  { %1742 = vmatprep.subr.bf16.mxu0 %v2386_v43 }
 0x100   :  { %1743 = vmatpush1.bf16.msra.mxu0 %v2384_v44 }
 0x103   :  { %1745 = vmatmul.mubr.bf16.vlgmr.msra.gmra.mrb[0].mxu0 %v2387_v45 }
 0x195   :  { %v1574_v46 = vpop.f32.mrb[0].mxu1 }
 0x196   :  { %v1576_v47 = vpop.f32.mrb[1].mxu1  ;;  %v2005_v57 = vadd.f32 %v1574_v46, %v257_v55 }
 0x197   :  { %v1578_v48 = vpop.f32.mrb[2].mxu1  ;;  %v2007_v58 = vadd.f32 %v1576_v47, %v261_v56 }
 0x198   :  { %v1580_v49 = vpop.f32.mrb[3].mxu1  ;;  %v2009_v60 = vadd.f32 %v1578_v48, %v257_v55 }
 0x199   :  { %v2011_v63 = vadd.f32 %v1580_v49, %v261_v56 }
 0x1d6   :  { %v1746_v59 = vpop.f32.mrb[0].mxu0 }
 0x1d7   :  { %v2006_v61 = vadd.f32 %v2005_v57, %v1746_v59  ;;  %v1748_v62 = vpop.f32.mrb[1].mxu0 }
 0x1d8   :  { %v2008_v0 = vadd.f32 %v2007_v58, %v1748_v62  ;;  %v1750_v1 = vpop.f32.mrb[2].mxu0 }
 0x1d9   :  { %v1755_v2 = vmax.f32 %v2006_v61, 0.0  ;;  %v2010_v3 = vadd.f32 %v2009_v60, %v1750_v1  ;;  %v1752_v4 = vpop.f32.mrb[3].mxu0 }
 0x1da   :  { %v1756_v5 = vmax.f32 %v2008_v0, 0.0  ;;  %v2012_v6 = vadd.f32 %v2011_v63, %v1752_v4 }
 0x1db   :  { %1759 = vst [vmem:[%s3142_s3] sm:$0xff] %v1755_v2  ;;  %v1757_v7 = vmax.f32 %v2010_v3, 0.0 }
 0x1dc   :  { %1760 = vst [vmem:[%s3142_s3 + $0x8] sm:$0xff] %v1756_v5  ;;  %v1758_v8 = vmax.f32 %v2012_v6, 0.0 }
 0x1dd   :  { %1761 = vst [vmem:[%s3142_s3 + $0x10] sm:$0xff] %v1757_v7 }
 0x1de   :  { %1762 = vst [vmem:[%s3142_s3 + $0x18] sm:$0xff] %v1758_v8 }

// kernel: custom-call.13
= control target key start
LH: loop header
LB: loop body
LE: loop exit
PB: predicated region body
PF: predicated region fallthrough
CT: control target
= control target key end

     0   :  { %s6_s0 = inlined_call_operand.vmem [shape: f32[2,128], index: 0, kind: output, shape index: {}]  }

// kernel: custom-call.12
= control target key start
LH: loop header
LB: loop body
LE: loop exit
PB: predicated region body
PF: predicated region fallthrough
CT: control target
= control target key end

     0   :  { %s6_s0 = inlined_call_operand.vmem [shape: bf16[2,128], index: 0, kind: output, shape index: {}]  }

// kernel: forward.74
= control target key start
LH: loop header
LB: loop body
LE: loop exit
PB: predicated region body
PF: predicated region fallthrough
CT: control target
= control target key end

     0   :  { %s1592_s1 = inlined_call_operand.vmem [shape: bf16[256,1024], index: 1, kind: input, shape index: {}]   ;;  %s1593_s0 = inlined_call_operand.vmem [shape: bf16[8,256], index: 0, kind: input, shape index: {}]   ;;  %s1594_s2 = inlined_call_operand.vmem [shape: f32[1,1024], index: 2, kind: input, shape index: {}]   ;;  %s1595_s3 = inlined_call_operand.vmem [shape: f32[8,1024], index: 3, kind: output, shape index: {}]  }
   0x1   :  { %v15_v0 = vld [vmem:[%s1592_s1] sm:$0xff]  ;;  %v16_v2 = vld [vmem:[%s1592_s1 + $0x8] sm:$0xff] }
   0x2   :  { %v19_v1 = vld [vmem:[%s1592_s1 + $0x20] sm:$0xff]  ;;  %v20_v4 = vld [vmem:[%s1592_s1 + $0x28] sm:$0xff] }
   0x3   :  { %v1011_v3 = vcombine.high %v15_v0, %v19_v1  ;;  %v1010_v5 = vcombine.low %v15_v0, %v19_v1  ;;  %v23_v6 = vld [vmem:[%s1592_s1 + $0x40] sm:$0xff]  ;;  %v1013_v8 = vcombine.high %v16_v2, %v20_v4  ;;  %v1012_v9 = vcombine.low %v16_v2, %v20_v4  ;;  %v24_v11 = vld [vmem:[%s1592_s1 + $0x48] sm:$0xff] }
   0x4   :  { %v27_v7 = vld [vmem:[%s1592_s1 + $0x60] sm:$0xff]  ;;  %v28_v12 = vld [vmem:[%s1592_s1 + $0x68] sm:$0xff] }
   0x5   :  { %v1019_v10 = vcombine.high %v23_v6, %v27_v7  ;;  %v31_v13 = vld [vmem:[%s1592_s1 + $0x80] sm:$0xff]  ;;  %832 = vmatprep.subr.bf16.mxu0 %v1011_v3  ;;  %v1021_v14 = vcombine.high %v24_v11, %v28_v12  ;;  %v32_v16 = vld [vmem:[%s1592_s1 + $0x88] sm:$0xff]  ;;  %873 = vmatprep.subr.bf16.mxu1 %v1013_v8  ;;  %v1018_v18 = vcombine.low %v23_v6, %v27_v7 }
   0x6   :  { %v35_v15 = vld [vmem:[%s1592_s1 + $0xa0] sm:$0xff]  ;;  %v36_v17 = vld [vmem:[%s1592_s1 + $0xa8] sm:$0xff]  ;;  %833 = vmatpush1.bf16.msra.mxu0 %v1010_v5  ;;  %874 = vmatpush1.bf16.msra.mxu1 %v1012_v9  ;;  %v1020_v19 = vcombine.low %v24_v11, %v28_v12 }
   0x7   :  { %834 = vmatprep.subr.bf16.mxu0 %v1019_v10  ;;  %v1027_v20 = vcombine.high %v31_v13, %v35_v15  ;;  %875 = vmatprep.subr.bf16.mxu1 %v1021_v14  ;;  %v1029_v21 = vcombine.high %v32_v16, %v36_v17  ;;  %v39_v22 = vld [vmem:[%s1592_s1 + $0xc0] sm:$0xff]  ;;  %v40_v24 = vld [vmem:[%s1592_s1 + $0xc8] sm:$0xff]  ;;  %v1026_v26 = vcombine.low %v31_v13, %v35_v15 }
   0x8   :  { %v43_v23 = vld [vmem:[%s1592_s1 + $0xe0] sm:$0xff]  ;;  %v44_v25 = vld [vmem:[%s1592_s1 + $0xe8] sm:$0xff]  ;;  %v1028_v27 = vcombine.low %v32_v16, %v36_v17 }
   0x9   :  { %v1035_v28 = vcombine.high %v39_v22, %v43_v23  ;;  %v1037_v29 = vcombine.high %v40_v24, %v44_v25  ;;  %v47_v30 = vld [vmem:[%s1592_s1 + $0x100] sm:$0xff]  ;;  %v48_v32 = vld [vmem:[%s1592_s1 + $0x108] sm:$0xff]  ;;  %v1034_v34 = vcombine.low %v39_v22, %v43_v23  ;;  %v1036_v35 = vcombine.low %v40_v24, %v44_v25 }
   0xa   :  { %835 = vmatpush1.bf16.msra.mxu0 %v1018_v18  ;;  %876 = vmatpush1.bf16.msra.mxu1 %v1020_v19  ;;  %v51_v31 = vld [vmem:[%s1592_s1 + $0x120] sm:$0xff]  ;;  %v52_v33 = vld [vmem:[%s1592_s1 + $0x128] sm:$0xff] }
   0xb   :  { %836 = vmatprep.subr.bf16.mxu0 %v1027_v20  ;;  %877 = vmatprep.subr.bf16.mxu1 %v1029_v21  ;;  %v1043_v36 = vcombine.high %v47_v30, %v51_v31  ;;  %v1045_v37 = vcombine.high %v48_v32, %v52_v33  ;;  %v55_v38 = vld [vmem:[%s1592_s1 + $0x140] sm:$0xff]  ;;  %v56_v40 = vld [vmem:[%s1592_s1 + $0x148] sm:$0xff]  ;;  %v1042_v42 = vcombine.low %v47_v30, %v51_v31 }
   0xc   :  { %v59_v39 = vld [vmem:[%s1592_s1 + $0x160] sm:$0xff]  ;;  %v60_v41 = vld [vmem:[%s1592_s1 + $0x168] sm:$0xff]  ;;  %v1044_v43 = vcombine.low %v48_v32, %v52_v33 }
   0xd   :  { %v1051_v44 = vcombine.high %v55_v38, %v59_v39  ;;  %v1053_v45 = vcombine.high %v56_v40, %v60_v41  ;;  %v63_v46 = vld [vmem:[%s1592_s1 + $0x180] sm:$0xff]  ;;  %v64_v48 = vld [vmem:[%s1592_s1 + $0x188] sm:$0xff]  ;;  %v1050_v50 = vcombine.low %v55_v38, %v59_v39  ;;  %v1052_v51 = vcombine.low %v56_v40, %v60_v41 }
   0xe   :  { %837 = vmatpush1.bf16.msra.mxu0 %v1026_v26  ;;  %878 = vmatpush1.bf16.msra.mxu1 %v1028_v27  ;;  %v67_v47 = vld [vmem:[%s1592_s1 + $0x1a0] sm:$0xff]  ;;  %v68_v49 = vld [vmem:[%s1592_s1 + $0x1a8] sm:$0xff] }
   0xf   :  { %838 = vmatprep.subr.bf16.mxu0 %v1035_v28  ;;  %879 = vmatprep.subr.bf16.mxu1 %v1037_v29  ;;  %v1059_v52 = vcombine.high %v63_v46, %v67_v47  ;;  %v1247_v53 = vld [vmem:[%s1593_s0] sm:$0xff]  ;;  %v1061_v54 = vcombine.high %v64_v48, %v68_v49  ;;  %v72_v58 = vld [vmem:[%s1592_s1 + $0x1c8] sm:$0xff]  ;;  %v1058_v60 = vcombine.low %v63_v46, %v67_v47 }
  0x10   :  { %v71_v55 = vld [vmem:[%s1592_s1 + $0x1c0] sm:$0xff]  ;;  %v1257_v57 = vcombine.high %v1247_v53, %v1247_v53  ;;  %v76_v59 = vld [vmem:[%s1592_s1 + $0x1e8] sm:$0xff]  ;;  %v1060_v61 = vcombine.low %v64_v48, %v68_v49 }
  0x11   :  { %v75_v56 = vld [vmem:[%s1592_s1 + $0x1e0] sm:$0xff]  ;;  %v1069_v63 = vcombine.high %v72_v58, %v76_v59  ;;  %v80_v2 = vld [vmem:[%s1592_s1 + $0x208] sm:$0xff]  ;;  %v1068_v5 = vcombine.low %v72_v58, %v76_v59 }
  0x12   :  { %839 = vmatpush1.bf16.msra.mxu0 %v1034_v34  ;;  %880 = vmatpush1.bf16.msra.mxu1 %v1036_v35  ;;  %v1067_v62 = vcombine.high %v71_v55, %v75_v56  ;;  %v79_v0 = vld [vmem:[%s1592_s1 + $0x200] sm:$0xff]  ;;  %v84_v3 = vld [vmem:[%s1592_s1 + $0x228] sm:$0xff]  ;;  %v1066_v4 = vcombine.low %v71_v55, %v75_v56 }
  0x13   :  { %840 = vmatprep.subr.bf16.mxu0 %v1043_v36  ;;  %881 = vmatprep.subr.bf16.mxu1 %v1045_v37  ;;  %v83_v1 = vld [vmem:[%s1592_s1 + $0x220] sm:$0xff]  ;;  %v1077_v7 = vcombine.high %v80_v2, %v84_v3  ;;  %v88_v10 = vld [vmem:[%s1592_s1 + $0x248] sm:$0xff]  ;;  %v1076_v13 = vcombine.low %v80_v2, %v84_v3  ;;  %v17_v2 = vld [vmem:[%s1592_s1 + $0x10] sm:$0xff] }
  0x14   :  { %864 = vmatprep.mubr.bf16.mxu0 %v1257_v57  ;;  %905 = vmatprep.mubr.bf16.mxu1 %v1257_v57  ;;  %v1075_v6 = vcombine.high %v79_v0, %v83_v1  ;;  %v87_v8 = vld [vmem:[%s1592_s1 + $0x240] sm:$0xff]  ;;  %v92_v11 = vld [vmem:[%s1592_s1 + $0x268] sm:$0xff]  ;;  %v1074_v12 = vcombine.low %v79_v0, %v83_v1  ;;  %v21_v3 = vld [vmem:[%s1592_s1 + $0x30] sm:$0xff] }
  0x15   :  { %v91_v9 = vld [vmem:[%s1592_s1 + $0x260] sm:$0xff]  ;;  %v1085_v15 = vcombine.high %v88_v10, %v92_v11  ;;  %v96_v18 = vld [vmem:[%s1592_s1 + $0x288] sm:$0xff]  ;;  %v1084_v21 = vcombine.low %v88_v10, %v92_v11  ;;  %v25_v10 = vld [vmem:[%s1592_s1 + $0x50] sm:$0xff] }
  0x16   :  { %841 = vmatpush1.bf16.msra.mxu0 %v1042_v42  ;;  %882 = vmatpush1.bf16.msra.mxu1 %v1044_v43  ;;  %v1083_v14 = vcombine.high %v87_v8, %v91_v9  ;;  %v95_v16 = vld [vmem:[%s1592_s1 + $0x280] sm:$0xff]  ;;  %v100_v19 = vld [vmem:[%s1592_s1 + $0x2a8] sm:$0xff]  ;;  %v1082_v20 = vcombine.low %v87_v8, %v91_v9  ;;  %v1015_v8 = vcombine.high %v17_v2, %v21_v3  ;;  %v29_v11 = vld [vmem:[%s1592_s1 + $0x70] sm:$0xff] }
  0x17   :  { %842 = vmatprep.subr.bf16.mxu0 %v1051_v44  ;;  %883 = vmatprep.subr.bf16.mxu1 %v1053_v45  ;;  %v99_v17 = vld [vmem:[%s1592_s1 + $0x2a0] sm:$0xff]  ;;  %v1093_v23 = vcombine.high %v96_v18, %v100_v19  ;;  %v104_v26 = vld [vmem:[%s1592_s1 + $0x2c8] sm:$0xff]  ;;  %v1092_v29 = vcombine.low %v96_v18, %v100_v19  ;;  %v37_v19 = vld [vmem:[%s1592_s1 + $0xb0] sm:$0xff] }
  0x18   :  { %v1091_v22 = vcombine.high %v95_v16, %v99_v17  ;;  %v103_v24 = vld [vmem:[%s1592_s1 + $0x2c0] sm:$0xff]  ;;  %v108_v27 = vld [vmem:[%s1592_s1 + $0x2e8] sm:$0xff]  ;;  %v1090_v28 = vcombine.low %v95_v16, %v99_v17  ;;  %v1023_v17 = vcombine.high %v25_v10, %v29_v11 }
  0x19   :  { %v107_v25 = vld [vmem:[%s1592_s1 + $0x2e0] sm:$0xff]  ;;  %v1101_v31 = vcombine.high %v104_v26, %v108_v27  ;;  %v112_v34 = vld [vmem:[%s1592_s1 + $0x308] sm:$0xff]  ;;  %v1100_v37 = vcombine.low %v104_v26, %v108_v27  ;;  %v41_v26 = vld [vmem:[%s1592_s1 + $0xd0] sm:$0xff] }
  0x1a   :  { %843 = vmatpush1.bf16.msra.mxu0 %v1050_v50  ;;  %884 = vmatpush1.bf16.msra.mxu1 %v1052_v51  ;;  %v1099_v30 = vcombine.high %v103_v24, %v107_v25  ;;  %v111_v32 = vld [vmem:[%s1592_s1 + $0x300] sm:$0xff]  ;;  %v116_v35 = vld [vmem:[%s1592_s1 + $0x328] sm:$0xff]  ;;  %v1098_v36 = vcombine.low %v103_v24, %v107_v25  ;;  %v45_v27 = vld [vmem:[%s1592_s1 + $0xf0] sm:$0xff] }
  0x1b   :  { %844 = vmatprep.subr.bf16.mxu0 %v1059_v52  ;;  %885 = vmatprep.subr.bf16.mxu1 %v1061_v54  ;;  %v115_v33 = vld [vmem:[%s1592_s1 + $0x320] sm:$0xff]  ;;  %v1109_v39 = vcombine.high %v112_v34, %v116_v35  ;;  %v120_v42 = vld [vmem:[%s1592_s1 + $0x348] sm:$0xff]  ;;  %v1108_v45 = vcombine.low %v112_v34, %v116_v35  ;;  %v49_v34 = vld [vmem:[%s1592_s1 + $0x110] sm:$0xff] }
  0x1c   :  { %v1107_v38 = vcombine.high %v111_v32, %v115_v33  ;;  %v119_v40 = vld [vmem:[%s1592_s1 + $0x340] sm:$0xff]  ;;  %v124_v43 = vld [vmem:[%s1592_s1 + $0x368] sm:$0xff]  ;;  %v1106_v44 = vcombine.low %v111_v32, %v115_v33  ;;  %v1039_v32 = vcombine.high %v41_v26, %v45_v27  ;;  %v53_v35 = vld [vmem:[%s1592_s1 + $0x130] sm:$0xff] }
  0x1d   :  { %v123_v41 = vld [vmem:[%s1592_s1 + $0x360] sm:$0xff]  ;;  %v1117_v47 = vcombine.high %v120_v42, %v124_v43  ;;  %v128_v50 = vld [vmem:[%s1592_s1 + $0x388] sm:$0xff]  ;;  %v1116_v54 = vcombine.low %v120_v42, %v124_v43  ;;  %v61_v42 = vld [vmem:[%s1592_s1 + $0x170] sm:$0xff] }
  0x1e   :  { %845 = vmatpush1.bf16.msra.mxu0 %v1058_v60  ;;  %886 = vmatpush1.bf16.msra.mxu1 %v1060_v61  ;;  %v1115_v46 = vcombine.high %v119_v40, %v123_v41  ;;  %v127_v48 = vld [vmem:[%s1592_s1 + $0x380] sm:$0xff]  ;;  %v132_v51 = vld [vmem:[%s1592_s1 + $0x3a8] sm:$0xff]  ;;  %v1114_v52 = vcombine.low %v119_v40, %v123_v41  ;;  %v57_v41 = vld [vmem:[%s1592_s1 + $0x150] sm:$0xff] }
  0x1f   :  { %846 = vmatprep.subr.bf16.mxu0 %v1067_v62  ;;  %887 = vmatprep.subr.bf16.mxu1 %v1069_v63  ;;  %v131_v49 = vld [vmem:[%s1592_s1 + $0x3a0] sm:$0xff]  ;;  %v1125_v56 = vcombine.high %v128_v50, %v132_v51  ;;  %v136_v60 = vld [vmem:[%s1592_s1 + $0x3c8] sm:$0xff]  ;;  %v1124_v63 = vcombine.low %v128_v50, %v132_v51  ;;  %v58_v43 = vld [vmem:[%s1592_s1 + $0x158] sm:$0xff] }
  0x20   :  { %v1123_v55 = vcombine.high %v127_v48, %v131_v49  ;;  %v135_v58 = vld [vmem:[%s1592_s1 + $0x3c0] sm:$0xff]  ;;  %v140_v61 = vld [vmem:[%s1592_s1 + $0x3e8] sm:$0xff]  ;;  %v1122_v62 = vcombine.low %v127_v48, %v131_v49  ;;  %v65_v49 = vld [vmem:[%s1592_s1 + $0x190] sm:$0xff] }
  0x21   :  { %v139_v59 = vld [vmem:[%s1592_s1 + $0x3e0] sm:$0xff]  ;;  %v1133_v1 = vcombine.high %v136_v60, %v140_v61  ;;  %v69_v50 = vld [vmem:[%s1592_s1 + $0x1b0] sm:$0xff]  ;;  %v66_v51 = vld [vmem:[%s1592_s1 + $0x198] sm:$0xff] }
  0x22   :  { %847 = vmatpush1.bf16.msra.mxu0 %v1066_v4  ;;  %888 = vmatpush1.bf16.msra.mxu1 %v1068_v5  ;;  %v1131_v0 = vcombine.high %v135_v58, %v139_v59  ;;  %v18_v4 = vld [vmem:[%s1592_s1 + $0x18] sm:$0xff] }
  0x23   :  { %848 = vmatprep.subr.bf16.mxu0 %v1075_v6  ;;  %889 = vmatprep.subr.bf16.mxu1 %v1077_v7  ;;  %v22_v5 = vld [vmem:[%s1592_s1 + $0x38] sm:$0xff]  ;;  %v1130_v6 = vcombine.low %v135_v58, %v139_v59  ;;  %v1132_v7 = vcombine.low %v136_v60, %v140_v61  ;;  %v73_v59 = vld [vmem:[%s1592_s1 + $0x1d0] sm:$0xff] }
  0x24   :  { %v1017_v9 = vcombine.high %v18_v4, %v22_v5  ;;  %v1016_v16 = vcombine.low %v18_v4, %v22_v5  ;;  %v77_v60 = vld [vmem:[%s1592_s1 + $0x1f0] sm:$0xff]  ;;  %v74_v61 = vld [vmem:[%s1592_s1 + $0x1d8] sm:$0xff] }
  0x25   :  { %v85_v4 = vld [vmem:[%s1592_s1 + $0x230] sm:$0xff]  ;;  %v82_v5 = vld [vmem:[%s1592_s1 + $0x218] sm:$0xff] }
  0x26   :  { %849 = vmatpush1.bf16.msra.mxu0 %v1074_v12  ;;  %890 = vmatpush1.bf16.msra.mxu1 %v1076_v13  ;;  %v1383_v12 = vcombine.low %v1247_v53, %v1247_v53  ;;  %v26_v13 = vld [vmem:[%s1592_s1 + $0x58] sm:$0xff]  ;;  %v33_v53 = vld [vmem:[%s1592_s1 + $0x90] sm:$0xff] }
  0x27   :  { %850 = vmatprep.subr.bf16.mxu0 %v1083_v14  ;;  %891 = vmatprep.subr.bf16.mxu1 %v1085_v15  ;;  %v30_v14 = vld [vmem:[%s1592_s1 + $0x78] sm:$0xff]  ;;  %v1014_v15 = vcombine.low %v17_v2, %v21_v3  ;;  %v1031_v24 = vcombine.high %v33_v53, %v37_v19  ;;  %v81_v3 = vld [vmem:[%s1592_s1 + $0x210] sm:$0xff] }
  0x28   :  { %v1025_v18 = vcombine.high %v26_v13, %v30_v14 }
  0x2a   :  { %851 = vmatpush1.bf16.msra.mxu0 %v1082_v20  ;;  %892 = vmatpush1.bf16.msra.mxu1 %v1084_v21  ;;  %v34_v20 = vld [vmem:[%s1592_s1 + $0x98] sm:$0xff] }
  0x2b   :  { %852 = vmatprep.subr.bf16.mxu0 %v1091_v22  ;;  %893 = vmatprep.subr.bf16.mxu1 %v1093_v23  ;;  %v38_v21 = vld [vmem:[%s1592_s1 + $0xb8] sm:$0xff]  ;;  %v1022_v22 = vcombine.low %v25_v10, %v29_v11  ;;  %v1024_v23 = vcombine.low %v26_v13, %v30_v14  ;;  %v89_v11 = vld [vmem:[%s1592_s1 + $0x250] sm:$0xff] }
  0x2c   :  { %v1033_v25 = vcombine.high %v34_v20, %v38_v21  ;;  %v93_v13 = vld [vmem:[%s1592_s1 + $0x270] sm:$0xff]  ;;  %v90_v14 = vld [vmem:[%s1592_s1 + $0x258] sm:$0xff] }
  0x2e   :  { %853 = vmatpush1.bf16.msra.mxu0 %v1090_v28  ;;  %894 = vmatpush1.bf16.msra.mxu1 %v1092_v29  ;;  %v42_v28 = vld [vmem:[%s1592_s1 + $0xd8] sm:$0xff] }
  0x2f   :  { %854 = vmatprep.subr.bf16.mxu0 %v1099_v30  ;;  %895 = vmatprep.subr.bf16.mxu1 %v1101_v31  ;;  %v46_v29 = vld [vmem:[%s1592_s1 + $0xf8] sm:$0xff]  ;;  %v1030_v30 = vcombine.low %v33_v53, %v37_v19  ;;  %v1032_v31 = vcombine.low %v34_v20, %v38_v21  ;;  %v97_v19 = vld [vmem:[%s1592_s1 + $0x290] sm:$0xff] }
  0x30   :  { %v1041_v33 = vcombine.high %v42_v28, %v46_v29  ;;  %v101_v20 = vld [vmem:[%s1592_s1 + $0x2b0] sm:$0xff]  ;;  %v98_v21 = vld [vmem:[%s1592_s1 + $0x298] sm:$0xff] }
  0x32   :  { %855 = vmatpush1.bf16.msra.mxu0 %v1098_v36  ;;  %896 = vmatpush1.bf16.msra.mxu1 %v1100_v37  ;;  %v54_v36 = vld [vmem:[%s1592_s1 + $0x138] sm:$0xff]  ;;  %v1038_v37 = vcombine.low %v41_v26, %v45_v27  ;;  %v105_v27 = vld [vmem:[%s1592_s1 + $0x2d0] sm:$0xff] }
  0x33   :  { %856 = vmatprep.subr.bf16.mxu0 %v1107_v38  ;;  %897 = vmatprep.subr.bf16.mxu1 %v1109_v39  ;;  %v1040_v38 = vcombine.low %v42_v28, %v46_v29  ;;  %v1047_v39 = vcombine.high %v49_v34, %v53_v35  ;;  %v109_v28 = vld [vmem:[%s1592_s1 + $0x2f0] sm:$0xff]  ;;  %v106_v29 = vld [vmem:[%s1592_s1 + $0x2d8] sm:$0xff] }
  0x36   :  { %857 = vmatpush1.bf16.msra.mxu0 %v1106_v44  ;;  %898 = vmatpush1.bf16.msra.mxu1 %v1108_v45  ;;  %v62_v44 = vld [vmem:[%s1592_s1 + $0x178] sm:$0xff]  ;;  %v1046_v45 = vcombine.low %v49_v34, %v53_v35  ;;  %v113_v35 = vld [vmem:[%s1592_s1 + $0x310] sm:$0xff] }
  0x37   :  { %858 = vmatprep.subr.bf16.mxu0 %v1115_v46  ;;  %899 = vmatprep.subr.bf16.mxu1 %v1117_v47  ;;  %v1055_v47 = vcombine.high %v57_v41, %v61_v42  ;;  %v1057_v48 = vcombine.high %v58_v43, %v62_v44 }
  0x3a   :  { %859 = vmatpush1.bf16.msra.mxu0 %v1114_v52  ;;  %900 = vmatpush1.bf16.msra.mxu1 %v1116_v54  ;;  %v70_v52 = vld [vmem:[%s1592_s1 + $0x1b8] sm:$0xff]  ;;  %v1054_v54 = vcombine.low %v57_v41, %v61_v42  ;;  %v121_v42 = vld [vmem:[%s1592_s1 + $0x350] sm:$0xff] }
  0x3b   :  { %860 = vmatprep.subr.bf16.mxu0 %v1123_v55  ;;  %901 = vmatprep.subr.bf16.mxu1 %v1125_v56  ;;  %v1056_v55 = vcombine.low %v58_v43, %v62_v44  ;;  %v1063_v56 = vcombine.high %v65_v49, %v69_v50  ;;  %v1065_v58 = vcombine.high %v66_v51, %v70_v52  ;;  %v125_v43 = vld [vmem:[%s1592_s1 + $0x370] sm:$0xff]  ;;  %v122_v44 = vld [vmem:[%s1592_s1 + $0x358] sm:$0xff] }
  0x3e   :  { %861 = vmatpush1.bf16.msra.mxu0 %v1122_v62  ;;  %902 = vmatpush1.bf16.msra.mxu1 %v1124_v63  ;;  %v78_v62 = vld [vmem:[%s1592_s1 + $0x1f8] sm:$0xff]  ;;  %v1062_v63 = vcombine.low %v65_v49, %v69_v50  ;;  %v129_v50 = vld [vmem:[%s1592_s1 + $0x390] sm:$0xff] }
  0x3f   :  { %862 = vmatprep.subr.bf16.mxu0 %v1131_v0  ;;  %903 = vmatprep.subr.bf16.mxu1 %v1133_v1  ;;  %v1064_v0 = vcombine.low %v66_v51, %v70_v52  ;;  %v1071_v1 = vcombine.high %v73_v59, %v77_v60  ;;  %v1073_v2 = vcombine.high %v74_v61, %v78_v62  ;;  %v133_v51 = vld [vmem:[%s1592_s1 + $0x3b0] sm:$0xff]  ;;  %v130_v52 = vld [vmem:[%s1592_s1 + $0x398] sm:$0xff] }
  0x42   :  { %863 = vmatpush1.bf16.msra.mxu0 %v1130_v6  ;;  %904 = vmatpush1.bf16.msra.mxu1 %v1132_v7  ;;  %v86_v6 = vld [vmem:[%s1592_s1 + $0x238] sm:$0xff]  ;;  %v1070_v7 = vcombine.low %v73_v59, %v77_v60  ;;  %v137_v60 = vld [vmem:[%s1592_s1 + $0x3d0] sm:$0xff] }
  0x43   :  { %914 = vmatprep.subr.bf16.mxu0 %v1015_v8  ;;  %955 = vmatprep.subr.bf16.mxu1 %v1017_v9  ;;  %v1072_v8 = vcombine.low %v74_v61, %v78_v62  ;;  %v1079_v9 = vcombine.high %v81_v3, %v85_v4  ;;  %v1081_v10 = vcombine.high %v82_v5, %v86_v6  ;;  %v141_v61 = vld [vmem:[%s1592_s1 + $0x3f0] sm:$0xff]  ;;  %v138_v62 = vld [vmem:[%s1592_s1 + $0x3d8] sm:$0xff] }
  0x45   :  { %865 = vmatmul.mubr.bf16.vlgmr.msra.gmra.mrb[0].mxu0 %v1383_v12  ;;  %906 = vmatmul.mubr.bf16.vlgmr.msra.gmra.mrb[0].mxu1 %v1383_v12 }
  0x46   :  { %915 = vmatpush1.bf16.msra.mxu0 %v1014_v15  ;;  %956 = vmatpush1.bf16.msra.mxu1 %v1016_v16  ;;  %v94_v15 = vld [vmem:[%s1592_s1 + $0x278] sm:$0xff]  ;;  %v1078_v16 = vcombine.low %v81_v3, %v85_v4  ;;  %v1134_v4 = vcombine.low %v137_v60, %v141_v61 }
  0x47   :  { %916 = vmatprep.subr.bf16.mxu0 %v1023_v17  ;;  %957 = vmatprep.subr.bf16.mxu1 %v1025_v18  ;;  %v1080_v17 = vcombine.low %v82_v5, %v86_v6  ;;  %v1087_v18 = vcombine.high %v89_v11, %v93_v13  ;;  %v1089_v53 = vcombine.high %v90_v14, %v94_v15  ;;  %v145_v6 = vlaneseq }
  0x48   :  { %946 = vmatprep.mubr.bf16.mxu0 %v1257_v57  ;;  %987 = vmatprep.mubr.bf16.mxu1 %v1257_v57  ;;  %v50_v57 = vld [vmem:[%s1592_s1 + $0x118] sm:$0xff] }
  0x49   :  { %v1049_v40 = vcombine.high %v50_v57, %v54_v36  ;;  %v1048_v46 = vcombine.low %v50_v57, %v54_v36  ;;  %v117_v57 = vld [vmem:[%s1592_s1 + $0x330] sm:$0xff]  ;;  %v114_v36 = vld [vmem:[%s1592_s1 + $0x318] sm:$0xff] }
  0x4a   :  { %917 = vmatpush1.bf16.msra.mxu0 %v1022_v22  ;;  %958 = vmatpush1.bf16.msra.mxu1 %v1024_v23  ;;  %v102_v22 = vld [vmem:[%s1592_s1 + $0x2b8] sm:$0xff]  ;;  %v1086_v23 = vcombine.low %v89_v11, %v93_v13 }
  0x4b   :  { %918 = vmatprep.subr.bf16.mxu0 %v1031_v24  ;;  %959 = vmatprep.subr.bf16.mxu1 %v1033_v25  ;;  %v1088_v24 = vcombine.low %v90_v14, %v94_v15  ;;  %v1095_v25 = vcombine.high %v97_v19, %v101_v20  ;;  %v1097_v26 = vcombine.high %v98_v21, %v102_v22 }
  0x4e   :  { %919 = vmatpush1.bf16.msra.mxu0 %v1030_v30  ;;  %960 = vmatpush1.bf16.msra.mxu1 %v1032_v31  ;;  %v110_v30 = vld [vmem:[%s1592_s1 + $0x2f8] sm:$0xff]  ;;  %v1094_v31 = vcombine.low %v97_v19, %v101_v20 }
  0x4f   :  { %920 = vmatprep.subr.bf16.mxu0 %v1039_v32  ;;  %961 = vmatprep.subr.bf16.mxu1 %v1041_v33  ;;  %v1096_v32 = vcombine.low %v98_v21, %v102_v22  ;;  %v1103_v33 = vcombine.high %v105_v27, %v109_v28  ;;  %v1105_v34 = vcombine.high %v106_v29, %v110_v30 }
  0x52   :  { %921 = vmatpush1.bf16.msra.mxu0 %v1038_v37  ;;  %962 = vmatpush1.bf16.msra.mxu1 %v1040_v38  ;;  %v118_v37 = vld [vmem:[%s1592_s1 + $0x338] sm:$0xff]  ;;  %v1102_v38 = vcombine.low %v105_v27, %v109_v28 }
  0x53   :  { %922 = vmatprep.subr.bf16.mxu0 %v1047_v39  ;;  %963 = vmatprep.subr.bf16.mxu1 %v1049_v40  ;;  %v1104_v39 = vcombine.low %v106_v29, %v110_v30  ;;  %v1111_v40 = vcombine.high %v113_v35, %v117_v57  ;;  %v1113_v41 = vcombine.high %v114_v36, %v118_v37 }
  0x56   :  { %923 = vmatpush1.bf16.msra.mxu0 %v1046_v45  ;;  %964 = vmatpush1.bf16.msra.mxu1 %v1048_v46  ;;  %v126_v45 = vld [vmem:[%s1592_s1 + $0x378] sm:$0xff]  ;;  %v1110_v46 = vcombine.low %v113_v35, %v117_v57 }
  0x57   :  { %924 = vmatprep.subr.bf16.mxu0 %v1055_v47  ;;  %965 = vmatprep.subr.bf16.mxu1 %v1057_v48  ;;  %v1112_v47 = vcombine.low %v114_v36, %v118_v37  ;;  %v1119_v48 = vcombine.high %v121_v42, %v125_v43  ;;  %v1121_v49 = vcombine.high %v122_v44, %v126_v45 }
  0x5a   :  { %925 = vmatpush1.bf16.msra.mxu0 %v1054_v54  ;;  %966 = vmatpush1.bf16.msra.mxu1 %v1056_v55  ;;  %v134_v54 = vld [vmem:[%s1592_s1 + $0x3b8] sm:$0xff]  ;;  %v1118_v55 = vcombine.low %v121_v42, %v125_v43 }
  0x5b   :  { %926 = vmatprep.subr.bf16.mxu0 %v1063_v56  ;;  %967 = vmatprep.subr.bf16.mxu1 %v1065_v58  ;;  %v1120_v56 = vcombine.low %v122_v44, %v126_v45  ;;  %v1127_v58 = vcombine.high %v129_v50, %v133_v51  ;;  %v1129_v59 = vcombine.high %v130_v52, %v134_v54 }
  0x5e   :  { %927 = vmatpush1.bf16.msra.mxu0 %v1062_v63  ;;  %968 = vmatpush1.bf16.msra.mxu1 %v1064_v0  ;;  %v142_v63 = vld [vmem:[%s1592_s1 + $0x3f8] sm:$0xff]  ;;  %v1126_v0 = vcombine.low %v129_v50, %v133_v51 }
  0x5f   :  { %928 = vmatprep.subr.bf16.mxu0 %v1071_v1  ;;  %969 = vmatprep.subr.bf16.mxu1 %v1073_v2  ;;  %v1128_v1 = vcombine.low %v130_v52, %v134_v54  ;;  %v1135_v2 = vcombine.high %v137_v60, %v141_v61  ;;  %v1137_v3 = vcombine.high %v138_v62, %v142_v63 }
  0x60   :  { %v1136_v5 = vcombine.low %v138_v62, %v142_v63 }
  0x62   :  { %929 = vmatpush1.bf16.msra.mxu0 %v1070_v7  ;;  %970 = vmatpush1.bf16.msra.mxu1 %v1072_v8  ;;  %v146_v7 = vshrl.u32 %v145_v6, 7 }
  0x63   :  { %930 = vmatprep.subr.bf16.mxu0 %v1079_v9  ;;  %971 = vmatprep.subr.bf16.mxu1 %v1081_v10  ;;  %v143_v9 = vld [vmem:[%s1594_s2] sm:$0xff] }
  0x64   :  { %v147_v8 = vsub.s32 0, %v146_v7  ;;  %v155_v10 = vsub.s32 2, %v146_v7  ;;  %v151_v11 = vsub.s32 1, %v146_v7  ;;  %v159_v13 = vsub.s32 3, %v146_v7 }
  0x65   :  { %v163_v28 = vsub.s32 4, %v146_v7  ;;  %v171_v29 = vsub.s32 6, %v146_v7  ;;  %v167_v30 = vsub.s32 5, %v146_v7 }
  0x66   :  { %931 = vmatpush1.bf16.msra.mxu0 %v1078_v16  ;;  %972 = vmatpush1.bf16.msra.mxu1 %v1080_v17  ;;  %v148_v14 = vrot.slane %v143_v9, %v147_v8  ;;  %v156_v15 = vrot.slane %v143_v9, %v155_v10  ;;  %v152_v16 = vrot.slane %v143_v9, %v151_v11 }
  0x67   :  { %932 = vmatprep.subr.bf16.mxu0 %v1087_v18  ;;  %973 = vmatprep.subr.bf16.mxu1 %v1089_v53  ;;  %v160_v17 = vrot.slane %v143_v9, %v159_v13 }
  0x6a   :  { %933 = vmatpush1.bf16.msra.mxu0 %v1086_v23  ;;  %974 = vmatpush1.bf16.msra.mxu1 %v1088_v24 }
  0x6b   :  { %934 = vmatprep.subr.bf16.mxu0 %v1095_v25  ;;  %975 = vmatprep.subr.bf16.mxu1 %v1097_v26 }
  0x6e   :  { %935 = vmatpush1.bf16.msra.mxu0 %v1094_v31  ;;  %976 = vmatpush1.bf16.msra.mxu1 %v1096_v32  ;;  %v175_v31 = vsub.s32 7, %v146_v7  ;;  %v164_v32 = vrot.slane %v143_v9, %v163_v28 }
  0x6f   :  { %936 = vmatprep.subr.bf16.mxu0 %v1103_v33  ;;  %977 = vmatprep.subr.bf16.mxu1 %v1105_v34  ;;  %v172_v33 = vrot.slane %v143_v9, %v171_v29  ;;  %v168_v34 = vrot.slane %v143_v9, %v167_v30 }
  0x70   :  { %v176_v35 = vrot.slane %v143_v9, %v175_v31 }
  0x72   :  { %937 = vmatpush1.bf16.msra.mxu0 %v1102_v38  ;;  %978 = vmatpush1.bf16.msra.mxu1 %v1104_v39 }
  0x73   :  { %938 = vmatprep.subr.bf16.mxu0 %v1111_v40  ;;  %979 = vmatprep.subr.bf16.mxu1 %v1113_v41 }
  0x76   :  { %939 = vmatpush1.bf16.msra.mxu0 %v1110_v46  ;;  %980 = vmatpush1.bf16.msra.mxu1 %v1112_v47 }
  0x77   :  { %940 = vmatprep.subr.bf16.mxu0 %v1119_v48  ;;  %981 = vmatprep.subr.bf16.mxu1 %v1121_v49 }
  0x7a   :  { %941 = vmatpush1.bf16.msra.mxu0 %v1118_v55  ;;  %982 = vmatpush1.bf16.msra.mxu1 %v1120_v56 }
  0x7b   :  { %942 = vmatprep.subr.bf16.mxu0 %v1127_v58  ;;  %983 = vmatprep.subr.bf16.mxu1 %v1129_v59 }
  0x7e   :  { %943 = vmatpush1.bf16.msra.mxu0 %v1126_v0  ;;  %984 = vmatpush1.bf16.msra.mxu1 %v1128_v1 }
  0x7f   :  { %944 = vmatprep.subr.bf16.mxu0 %v1135_v2  ;;  %985 = vmatprep.subr.bf16.mxu1 %v1137_v3 }
  0x82   :  { %945 = vmatpush1.bf16.msra.mxu0 %v1134_v4  ;;  %986 = vmatpush1.bf16.msra.mxu1 %v1136_v5 }
  0x85   :  { %947 = vmatmul.mubr.bf16.vlgmr.msra.gmra.mrb[4].mxu0 %v1383_v12  ;;  %988 = vmatmul.mubr.bf16.vlgmr.msra.gmra.mrb[4].mxu1 %v1383_v12 }
 0x118   :  { %v866_v18 = vpop.f32.mrb[0].mxu0  ;;  %v907_v19 = vpop.f32.mrb[0].mxu1 }
 0x119   :  { %v867_v53 = vadd.f32 %v866_v18, %v148_v14  ;;  %v868_v20 = vpop.f32.mrb[1].mxu0  ;;  %v908_v21 = vadd.f32 %v907_v19, %v156_v15  ;;  %v909_v22 = vpop.f32.mrb[1].mxu1 }
 0x11a   :  { %v869_v12 = vadd.f32 %v868_v20, %v152_v16  ;;  %v870_v23 = vpop.f32.mrb[2].mxu0  ;;  %v910_v24 = vadd.f32 %v909_v22, %v160_v17  ;;  %v911_v25 = vpop.f32.mrb[2].mxu1 }
 0x11b   :  { %996 = vst [vmem:[%s1595_s3] sm:$0xff] %v867_v53  ;;  %v871_v26 = vpop.f32.mrb[3].mxu0  ;;  %998 = vst [vmem:[%s1595_s3 + $0x10] sm:$0xff] %v908_v21  ;;  %v912_v27 = vpop.f32.mrb[3].mxu1 }
 0x11c   :  { %997 = vst [vmem:[%s1595_s3 + $0x8] sm:$0xff] %v869_v12  ;;  %999 = vst [vmem:[%s1595_s3 + $0x18] sm:$0xff] %v910_v24 }
 0x158   :  { %v948_v57 = vpop.f32.mrb[4].mxu0  ;;  %v989_v37 = vpop.f32.mrb[4].mxu1 }
 0x159   :  { %v949_v36 = vadd.f32 %v948_v57, %v164_v32  ;;  %v950_v38 = vpop.f32.mrb[5].mxu0  ;;  %v990_v39 = vadd.f32 %v989_v37, %v172_v33  ;;  %v991_v41 = vpop.f32.mrb[5].mxu1 }
 0x15a   :  { %v951_v40 = vadd.f32 %v950_v38, %v168_v34  ;;  %v952_v42 = vpop.f32.mrb[6].mxu0  ;;  %v992_v43 = vadd.f32 %v991_v41, %v176_v35  ;;  %v993_v44 = vpop.f32.mrb[6].mxu1 }
 0x15b   :  { %1000 = vst [vmem:[%s1595_s3 + $0x20] sm:$0xff] %v949_v36  ;;  %v953_v45 = vpop.f32.mrb[7].mxu0  ;;  %1002 = vst [vmem:[%s1595_s3 + $0x30] sm:$0xff] %v990_v39  ;;  %v994_v46 = vpop.f32.mrb[7].mxu1 }
 0x15c   :  { %1001 = vst [vmem:[%s1595_s3 + $0x28] sm:$0xff] %v951_v40  ;;  %1003 = vst [vmem:[%s1595_s3 + $0x38] sm:$0xff] %v992_v43 }

// kernel: forward.77
= control target key start
LH: loop header
LB: loop body
LE: loop exit
PB: predicated region body
PF: predicated region fallthrough
CT: control target
= control target key end

     0   :  { %s1355_s1 = inlined_call_operand.vmem [shape: bf16[256,768], index: 1, kind: input, shape index: {}]   ;;  %s1356_s0 = inlined_call_operand.vmem [shape: bf16[8,256], index: 0, kind: input, shape index: {}]   ;;  %s1357_s2 = inlined_call_operand.vmem [shape: f32[1,768], index: 2, kind: input, shape index: {}]   ;;  %s1358_s3 = inlined_call_operand.vmem [shape: f32[8,768], index: 3, kind: output, shape index: {}]  }
   0x1   :  { %v861_v0 = vld [vmem:[%s1355_s1 + $0x4] ss:$24 sps:$4 sm:$0xff]   ;;  %v863_v1 = vld [vmem:[%s1355_s1] ss:$24 sps:$4 sm:$0xff]   ;;  %v864_v2 = vld [vmem:[%s1355_s1 + $0x34] ss:$24 sps:$4 sm:$0xff]  }
   0x2   :  { %630 = vmatprep.subr.bf16.mxu0 %v861_v0  ;;  %v866_v3 = vld [vmem:[%s1355_s1 + $0x30] ss:$24 sps:$4 sm:$0xff]   ;;  %v867_v4 = vld [vmem:[%s1355_s1 + $0x64] ss:$24 sps:$4 sm:$0xff]   ;;  %v869_v5 = vld [vmem:[%s1355_s1 + $0x60] ss:$24 sps:$4 sm:$0xff]  }
   0x3   :  { %631 = vmatpush1.bf16.msra.mxu0 %v863_v1  ;;  %v870_v6 = vld [vmem:[%s1355_s1 + $0x94] ss:$24 sps:$4 sm:$0xff]   ;;  %v872_v7 = vld [vmem:[%s1355_s1 + $0x90] ss:$24 sps:$4 sm:$0xff]   ;;  %v873_v8 = vld [vmem:[%s1355_s1 + $0xc4] ss:$24 sps:$4 sm:$0xff]  }
   0x4   :  { %632 = vmatprep.subr.bf16.mxu0 %v864_v2  ;;  %v875_v9 = vld [vmem:[%s1355_s1 + $0xc0] ss:$24 sps:$4 sm:$0xff]   ;;  %v876_v10 = vld [vmem:[%s1355_s1 + $0xf4] ss:$24 sps:$4 sm:$0xff]   ;;  %v878_v11 = vld [vmem:[%s1355_s1 + $0xf0] ss:$24 sps:$4 sm:$0xff]  }
   0x5   :  { %v879_v12 = vld [vmem:[%s1355_s1 + $0x124] ss:$24 sps:$4 sm:$0xff]   ;;  %v911_v14 = vld [vmem:[%s1355_s1 + $0x8] ss:$24 sps:$4 sm:$0xff]   ;;  %v882_v18 = vld [vmem:[%s1355_s1 + $0x154] ss:$24 sps:$4 sm:$0xff]  }
   0x6   :  { %v909_v13 = vld [vmem:[%s1355_s1 + $0xc] ss:$24 sps:$4 sm:$0xff]   ;;  %v881_v16 = vld [vmem:[%s1355_s1 + $0x120] ss:$24 sps:$4 sm:$0xff]   ;;  %v917_v19 = vld [vmem:[%s1355_s1 + $0x3c] ss:$24 sps:$4 sm:$0xff]  }
   0x7   :  { %633 = vmatpush1.bf16.msra.mxu0 %v866_v3  ;;  %v1075_v15 = vld [vmem:[%s1356_s0] sm:$0xff]  ;;  %671 = vmatprep.subr.bf16.mxu1 %v909_v13  ;;  %v919_v20 = vld [vmem:[%s1355_s1 + $0x38] ss:$24 sps:$4 sm:$0xff]   ;;  %v929_v25 = vld [vmem:[%s1355_s1 + $0x9c] ss:$24 sps:$4 sm:$0xff]  }
   0x8   :  { %634 = vmatprep.subr.bf16.mxu0 %v867_v4  ;;  %v1082_v17 = vcombine.high %v1075_v15, %v1075_v15  ;;  %672 = vmatpush1.bf16.msra.mxu1 %v911_v14  ;;  %v884_v21 = vld [vmem:[%s1355_s1 + $0x150] ss:$24 sps:$4 sm:$0xff]   ;;  %v923_v22 = vld [vmem:[%s1355_s1 + $0x6c] ss:$24 sps:$4 sm:$0xff]   ;;  %v887_v26 = vld [vmem:[%s1355_s1 + $0x180] ss:$24 sps:$4 sm:$0xff]   ;;  %v1205_v57 = vcombine.low %v1075_v15, %v1075_v15 }
   0x9   :  { %673 = vmatprep.subr.bf16.mxu1 %v917_v19  ;;  %v885_v23 = vld [vmem:[%s1355_s1 + $0x184] ss:$24 sps:$4 sm:$0xff]   ;;  %v925_v24 = vld [vmem:[%s1355_s1 + $0x68] ss:$24 sps:$4 sm:$0xff]   ;;  %v888_v27 = vld [vmem:[%s1355_s1 + $0x1b4] ss:$24 sps:$4 sm:$0xff]  }
   0xa   :  { %662 = vmatprep.mubr.bf16.mxu0 %v1082_v17  ;;  %703 = vmatprep.mubr.bf16.mxu1 %v1082_v17  ;;  %v931_v28 = vld [vmem:[%s1355_s1 + $0x98] ss:$24 sps:$4 sm:$0xff]   ;;  %v935_v29 = vld [vmem:[%s1355_s1 + $0xcc] ss:$24 sps:$4 sm:$0xff]   ;;  %v937_v32 = vld [vmem:[%s1355_s1 + $0xc8] ss:$24 sps:$4 sm:$0xff]  }
   0xb   :  { %635 = vmatpush1.bf16.msra.mxu0 %v869_v5  ;;  %v890_v30 = vld [vmem:[%s1355_s1 + $0x1b0] ss:$24 sps:$4 sm:$0xff]   ;;  %v891_v31 = vld [vmem:[%s1355_s1 + $0x1e4] ss:$24 sps:$4 sm:$0xff]   ;;  %v893_v34 = vld [vmem:[%s1355_s1 + $0x1e0] ss:$24 sps:$4 sm:$0xff]  }
   0xc   :  { %636 = vmatprep.subr.bf16.mxu0 %v870_v6  ;;  %674 = vmatpush1.bf16.msra.mxu1 %v919_v20  ;;  %v941_v33 = vld [vmem:[%s1355_s1 + $0xfc] ss:$24 sps:$4 sm:$0xff]   ;;  %v943_v36 = vld [vmem:[%s1355_s1 + $0xf8] ss:$24 sps:$4 sm:$0xff]   ;;  %v947_v37 = vld [vmem:[%s1355_s1 + $0x12c] ss:$24 sps:$4 sm:$0xff]  }
   0xd   :  { %675 = vmatprep.subr.bf16.mxu1 %v923_v22  ;;  %v894_v35 = vld [vmem:[%s1355_s1 + $0x214] ss:$24 sps:$4 sm:$0xff]   ;;  %v896_v38 = vld [vmem:[%s1355_s1 + $0x210] ss:$24 sps:$4 sm:$0xff]   ;;  %v897_v39 = vld [vmem:[%s1355_s1 + $0x244] ss:$24 sps:$4 sm:$0xff]  }
   0xe   :  { %v949_v40 = vld [vmem:[%s1355_s1 + $0x128] ss:$24 sps:$4 sm:$0xff]   ;;  %v953_v41 = vld [vmem:[%s1355_s1 + $0x15c] ss:$24 sps:$4 sm:$0xff]   ;;  %v955_v44 = vld [vmem:[%s1355_s1 + $0x158] ss:$24 sps:$4 sm:$0xff]  }
   0xf   :  { %637 = vmatpush1.bf16.msra.mxu0 %v872_v7  ;;  %v899_v42 = vld [vmem:[%s1355_s1 + $0x240] ss:$24 sps:$4 sm:$0xff]   ;;  %v900_v43 = vld [vmem:[%s1355_s1 + $0x274] ss:$24 sps:$4 sm:$0xff]   ;;  %v902_v46 = vld [vmem:[%s1355_s1 + $0x270] ss:$24 sps:$4 sm:$0xff]  }
  0x10   :  { %638 = vmatprep.subr.bf16.mxu0 %v873_v8  ;;  %676 = vmatpush1.bf16.msra.mxu1 %v925_v24  ;;  %v959_v45 = vld [vmem:[%s1355_s1 + $0x18c] ss:$24 sps:$4 sm:$0xff]   ;;  %v961_v48 = vld [vmem:[%s1355_s1 + $0x188] ss:$24 sps:$4 sm:$0xff]   ;;  %v965_v49 = vld [vmem:[%s1355_s1 + $0x1bc] ss:$24 sps:$4 sm:$0xff]  }
  0x11   :  { %677 = vmatprep.subr.bf16.mxu1 %v929_v25  ;;  %v903_v47 = vld [vmem:[%s1355_s1 + $0x2a4] ss:$24 sps:$4 sm:$0xff]   ;;  %v905_v50 = vld [vmem:[%s1355_s1 + $0x2a0] ss:$24 sps:$4 sm:$0xff]   ;;  %v906_v51 = vld [vmem:[%s1355_s1 + $0x2d4] ss:$24 sps:$4 sm:$0xff]  }
  0x12   :  { %v967_v52 = vld [vmem:[%s1355_s1 + $0x1b8] ss:$24 sps:$4 sm:$0xff]   ;;  %v971_v53 = vld [vmem:[%s1355_s1 + $0x1ec] ss:$24 sps:$4 sm:$0xff]   ;;  %v973_v56 = vld [vmem:[%s1355_s1 + $0x1e8] ss:$24 sps:$4 sm:$0xff]  }
  0x13   :  { %639 = vmatpush1.bf16.msra.mxu0 %v875_v9  ;;  %v908_v54 = vld [vmem:[%s1355_s1 + $0x2d0] ss:$24 sps:$4 sm:$0xff]   ;;  %v916_v55 = vld [vmem:[%s1355_s1 + $0x14] ss:$24 sps:$4 sm:$0xff]   ;;  %v922_v60 = vld [vmem:[%s1355_s1 + $0x44] ss:$24 sps:$4 sm:$0xff]  }
  0x14   :  { %640 = vmatprep.subr.bf16.mxu0 %v876_v10  ;;  %678 = vmatpush1.bf16.msra.mxu1 %v931_v28  ;;  %v977_v58 = vld [vmem:[%s1355_s1 + $0x21c] ss:$24 sps:$4 sm:$0xff]   ;;  %v914_v59 = vld [vmem:[%s1355_s1 + $0x10] ss:$24 sps:$4 sm:$0xff]   ;;  %v983_v62 = vld [vmem:[%s1355_s1 + $0x24c] ss:$24 sps:$4 sm:$0xff]  }
  0x15   :  { %679 = vmatprep.subr.bf16.mxu1 %v935_v29  ;;  %v979_v61 = vld [vmem:[%s1355_s1 + $0x218] ss:$24 sps:$4 sm:$0xff]   ;;  %v928_v0 = vld [vmem:[%s1355_s1 + $0x74] ss:$24 sps:$4 sm:$0xff]   ;;  %v985_v1 = vld [vmem:[%s1355_s1 + $0x248] ss:$24 sps:$4 sm:$0xff]  }
  0x16   :  { %v920_v63 = vld [vmem:[%s1355_s1 + $0x40] ss:$24 sps:$4 sm:$0xff]   ;;  %v989_v2 = vld [vmem:[%s1355_s1 + $0x27c] ss:$24 sps:$4 sm:$0xff]   ;;  %v926_v3 = vld [vmem:[%s1355_s1 + $0x70] ss:$24 sps:$4 sm:$0xff]  }
  0x17   :  { %641 = vmatpush1.bf16.msra.mxu0 %v878_v11  ;;  %v934_v4 = vld [vmem:[%s1355_s1 + $0xa4] ss:$24 sps:$4 sm:$0xff]   ;;  %v991_v5 = vld [vmem:[%s1355_s1 + $0x278] ss:$24 sps:$4 sm:$0xff]   ;;  %v940_v8 = vld [vmem:[%s1355_s1 + $0xd4] ss:$24 sps:$4 sm:$0xff]  }
  0x18   :  { %642 = vmatprep.subr.bf16.mxu0 %v879_v12  ;;  %680 = vmatpush1.bf16.msra.mxu1 %v937_v32  ;;  %v995_v6 = vld [vmem:[%s1355_s1 + $0x2ac] ss:$24 sps:$4 sm:$0xff]   ;;  %v932_v7 = vld [vmem:[%s1355_s1 + $0xa0] ss:$24 sps:$4 sm:$0xff]   ;;  %v1001_v10 = vld [vmem:[%s1355_s1 + $0x2dc] ss:$24 sps:$4 sm:$0xff]  }
  0x19   :  { %681 = vmatprep.subr.bf16.mxu1 %v941_v33  ;;  %v997_v9 = vld [vmem:[%s1355_s1 + $0x2a8] ss:$24 sps:$4 sm:$0xff]   ;;  %v946_v12 = vld [vmem:[%s1355_s1 + $0x104] ss:$24 sps:$4 sm:$0xff]   ;;  %v1003_v13 = vld [vmem:[%s1355_s1 + $0x2d8] ss:$24 sps:$4 sm:$0xff]  }
  0x1a   :  { %v938_v11 = vld [vmem:[%s1355_s1 + $0xd0] ss:$24 sps:$4 sm:$0xff]   ;;  %v944_v14 = vld [vmem:[%s1355_s1 + $0x100] ss:$24 sps:$4 sm:$0xff]   ;;  %v952_v15 = vld [vmem:[%s1355_s1 + $0x134] ss:$24 sps:$4 sm:$0xff]  }
  0x1b   :  { %643 = vmatpush1.bf16.msra.mxu0 %v881_v16  ;;  %v950_v16 = vld [vmem:[%s1355_s1 + $0x130] ss:$24 sps:$4 sm:$0xff]   ;;  %v964_v19 = vld [vmem:[%s1355_s1 + $0x194] ss:$24 sps:$4 sm:$0xff]   ;;  %v968_v22 = vld [vmem:[%s1355_s1 + $0x1c0] ss:$24 sps:$4 sm:$0xff]  }
  0x1c   :  { %644 = vmatprep.subr.bf16.mxu0 %v882_v18  ;;  %682 = vmatpush1.bf16.msra.mxu1 %v943_v36  ;;  %v956_v18 = vld [vmem:[%s1355_s1 + $0x160] ss:$24 sps:$4 sm:$0xff]   ;;  %v962_v20 = vld [vmem:[%s1355_s1 + $0x190] ss:$24 sps:$4 sm:$0xff]   ;;  %v982_v25 = vld [vmem:[%s1355_s1 + $0x224] ss:$24 sps:$4 sm:$0xff]  }
  0x1d   :  { %683 = vmatprep.subr.bf16.mxu1 %v947_v37  ;;  %v974_v24 = vld [vmem:[%s1355_s1 + $0x1f0] ss:$24 sps:$4 sm:$0xff]   ;;  %v994_v29 = vld [vmem:[%s1355_s1 + $0x284] ss:$24 sps:$4 sm:$0xff]  }
  0x1e   :  { %v986_v28 = vld [vmem:[%s1355_s1 + $0x250] ss:$24 sps:$4 sm:$0xff]   ;;  %v1006_v33 = vld [vmem:[%s1355_s1 + $0x2e4] ss:$24 sps:$4 sm:$0xff]  }
  0x1f   :  { %645 = vmatpush1.bf16.msra.mxu0 %v884_v21  ;;  %v970_v21 = vld [vmem:[%s1355_s1 + $0x1c4] ss:$24 sps:$4 sm:$0xff]   ;;  %v998_v32 = vld [vmem:[%s1355_s1 + $0x2b0] ss:$24 sps:$4 sm:$0xff]  }
  0x20   :  { %646 = vmatprep.subr.bf16.mxu0 %v885_v23  ;;  %684 = vmatpush1.bf16.msra.mxu1 %v949_v40  ;;  %v976_v23 = vld [vmem:[%s1355_s1 + $0x1f4] ss:$24 sps:$4 sm:$0xff]  }
  0x21   :  { %685 = vmatprep.subr.bf16.mxu1 %v953_v41 }
  0x23   :  { %647 = vmatpush1.bf16.msra.mxu0 %v887_v26  ;;  %v980_v26 = vld [vmem:[%s1355_s1 + $0x220] ss:$24 sps:$4 sm:$0xff]  }
  0x24   :  { %648 = vmatprep.subr.bf16.mxu0 %v888_v27  ;;  %686 = vmatpush1.bf16.msra.mxu1 %v955_v44  ;;  %v988_v27 = vld [vmem:[%s1355_s1 + $0x254] ss:$24 sps:$4 sm:$0xff]  }
  0x25   :  { %687 = vmatprep.subr.bf16.mxu1 %v959_v45 }
  0x27   :  { %649 = vmatpush1.bf16.msra.mxu0 %v890_v30  ;;  %v992_v30 = vld [vmem:[%s1355_s1 + $0x280] ss:$24 sps:$4 sm:$0xff]  }
  0x28   :  { %650 = vmatprep.subr.bf16.mxu0 %v891_v31  ;;  %688 = vmatpush1.bf16.msra.mxu1 %v961_v48  ;;  %v1000_v31 = vld [vmem:[%s1355_s1 + $0x2b4] ss:$24 sps:$4 sm:$0xff]  }
  0x29   :  { %689 = vmatprep.subr.bf16.mxu1 %v965_v49 }
  0x2b   :  { %651 = vmatpush1.bf16.msra.mxu0 %v893_v34  ;;  %v1004_v34 = vld [vmem:[%s1355_s1 + $0x2e0] ss:$24 sps:$4 sm:$0xff]  }
  0x2c   :  { %652 = vmatprep.subr.bf16.mxu0 %v894_v35  ;;  %690 = vmatpush1.bf16.msra.mxu1 %v967_v52  ;;  %v113_v35 = vlaneseq }
  0x2d   :  { %691 = vmatprep.subr.bf16.mxu1 %v971_v53 }
  0x2e   :  { %v114_v36 = vshrl.u32 %v113_v35, 7 }
  0x2f   :  { %653 = vmatpush1.bf16.msra.mxu0 %v896_v38  ;;  %v111_v38 = vld [vmem:[%s1357_s2] sm:$0x3f] }
  0x30   :  { %654 = vmatprep.subr.bf16.mxu0 %v897_v39  ;;  %692 = vmatpush1.bf16.msra.mxu1 %v973_v56  ;;  %v115_v37 = vsub.s32 0, %v114_v36  ;;  %v119_v39 = vsub.s32 1, %v114_v36  ;;  %v123_v48 = vsub.s32 2, %v114_v36  ;;  %v127_v49 = vsub.s32 3, %v114_v36 }
  0x31   :  { %693 = vmatprep.subr.bf16.mxu1 %v977_v58  ;;  %v131_v58 = vsub.s32 4, %v114_v36 }
  0x32   :  { %v116_v40 = vrot.slane %v111_v38, %v115_v37  ;;  %v120_v41 = vrot.slane %v111_v38, %v119_v39 }
  0x33   :  { %655 = vmatpush1.bf16.msra.mxu0 %v899_v42 }
  0x34   :  { %656 = vmatprep.subr.bf16.mxu0 %v900_v43  ;;  %694 = vmatpush1.bf16.msra.mxu1 %v979_v61 }
  0x35   :  { %695 = vmatprep.subr.bf16.mxu1 %v983_v62 }
  0x37   :  { %657 = vmatpush1.bf16.msra.mxu0 %v902_v46 }
  0x38   :  { %658 = vmatprep.subr.bf16.mxu0 %v903_v47  ;;  %696 = vmatpush1.bf16.msra.mxu1 %v985_v1 }
  0x39   :  { %697 = vmatprep.subr.bf16.mxu1 %v989_v2 }
  0x3b   :  { %659 = vmatpush1.bf16.msra.mxu0 %v905_v50  ;;  %v124_v50 = vrot.slane %v111_v38, %v123_v48 }
  0x3c   :  { %660 = vmatprep.subr.bf16.mxu0 %v906_v51  ;;  %698 = vmatpush1.bf16.msra.mxu1 %v991_v5  ;;  %v128_v51 = vrot.slane %v111_v38, %v127_v49 }
  0x3d   :  { %699 = vmatprep.subr.bf16.mxu1 %v995_v6 }
  0x3f   :  { %661 = vmatpush1.bf16.msra.mxu0 %v908_v54 }
  0x40   :  { %712 = vmatprep.subr.bf16.mxu0 %v916_v55  ;;  %700 = vmatpush1.bf16.msra.mxu1 %v997_v9 }
  0x41   :  { %701 = vmatprep.subr.bf16.mxu1 %v1001_v10 }
  0x42   :  { %663 = vmatmul.mubr.bf16.vlgmr.msra.gmra.mrb[0].mxu0 %v1205_v57 }
  0x43   :  { %713 = vmatpush1.bf16.msra.mxu0 %v914_v59  ;;  %744 = vmatprep.mubr.bf16.mxu0 %v1082_v17  ;;  %v958_v17 = vld [vmem:[%s1355_s1 + $0x164] ss:$24 sps:$4 sm:$0xff]   ;;  %v135_v59 = vsub.s32 5, %v114_v36 }
  0x44   :  { %714 = vmatprep.subr.bf16.mxu0 %v922_v60  ;;  %702 = vmatpush1.bf16.msra.mxu1 %v1003_v13  ;;  %v132_v60 = vrot.slane %v111_v38, %v131_v58 }
  0x45   :  { %v136_v61 = vrot.slane %v111_v38, %v135_v59 }
  0x47   :  { %715 = vmatpush1.bf16.msra.mxu0 %v920_v63  ;;  %704 = vmatmul.mubr.bf16.vlgmr.msra.gmra.mrb[0].mxu1 %v1205_v57 }
  0x48   :  { %716 = vmatprep.subr.bf16.mxu0 %v928_v0 }
  0x4b   :  { %717 = vmatpush1.bf16.msra.mxu0 %v926_v3 }
  0x4c   :  { %718 = vmatprep.subr.bf16.mxu0 %v934_v4 }
  0x4f   :  { %719 = vmatpush1.bf16.msra.mxu0 %v932_v7 }
  0x50   :  { %720 = vmatprep.subr.bf16.mxu0 %v940_v8 }
  0x53   :  { %721 = vmatpush1.bf16.msra.mxu0 %v938_v11 }
  0x54   :  { %722 = vmatprep.subr.bf16.mxu0 %v946_v12 }
  0x57   :  { %723 = vmatpush1.bf16.msra.mxu0 %v944_v14 }
  0x58   :  { %724 = vmatprep.subr.bf16.mxu0 %v952_v15 }
  0x5b   :  { %725 = vmatpush1.bf16.msra.mxu0 %v950_v16 }
  0x5c   :  { %726 = vmatprep.subr.bf16.mxu0 %v958_v17 }
  0x5f   :  { %727 = vmatpush1.bf16.msra.mxu0 %v956_v18 }
  0x60   :  { %728 = vmatprep.subr.bf16.mxu0 %v964_v19 }
  0x63   :  { %729 = vmatpush1.bf16.msra.mxu0 %v962_v20 }
  0x64   :  { %730 = vmatprep.subr.bf16.mxu0 %v970_v21 }
  0x67   :  { %731 = vmatpush1.bf16.msra.mxu0 %v968_v22 }
  0x68   :  { %732 = vmatprep.subr.bf16.mxu0 %v976_v23 }
  0x6b   :  { %733 = vmatpush1.bf16.msra.mxu0 %v974_v24 }
  0x6c   :  { %734 = vmatprep.subr.bf16.mxu0 %v982_v25 }
  0x6f   :  { %735 = vmatpush1.bf16.msra.mxu0 %v980_v26 }
  0x70   :  { %736 = vmatprep.subr.bf16.mxu0 %v988_v27 }
  0x73   :  { %737 = vmatpush1.bf16.msra.mxu0 %v986_v28 }
  0x74   :  { %738 = vmatprep.subr.bf16.mxu0 %v994_v29 }
  0x77   :  { %739 = vmatpush1.bf16.msra.mxu0 %v992_v30 }
  0x78   :  { %740 = vmatprep.subr.bf16.mxu0 %v1000_v31 }
  0x7b   :  { %741 = vmatpush1.bf16.msra.mxu0 %v998_v32 }
  0x7c   :  { %742 = vmatprep.subr.bf16.mxu0 %v1006_v33 }
  0x7f   :  { %743 = vmatpush1.bf16.msra.mxu0 %v1004_v34 }
  0x82   :  { %745 = vmatmul.mubr.bf16.vlgmr.msra.gmra.mrb[4].mxu0 %v1205_v57 }
 0x115   :  { %v664_v42 = vpop.f32.mrb[0].mxu0 }
 0x116   :  { %v665_v43 = vadd.f32 %v664_v42, %v116_v40  ;;  %v666_v44 = vpop.f32.mrb[1].mxu0 }
 0x117   :  { %v667_v45 = vadd.f32 %v666_v44, %v120_v41  ;;  %v668_v46 = vpop.f32.mrb[2].mxu0 }
 0x118   :  { %753 = vst [vmem:[%s1358_s3] sm:$0xff] %v665_v43  ;;  %v669_v47 = vpop.f32.mrb[3].mxu0 }
 0x119   :  { %754 = vst [vmem:[%s1358_s3 + $0x8] sm:$0xff] %v667_v45 }
 0x11a   :  { %v705_v52 = vpop.f32.mrb[0].mxu1 }
 0x11b   :  { %v706_v53 = vadd.f32 %v705_v52, %v124_v50  ;;  %v707_v54 = vpop.f32.mrb[1].mxu1 }
 0x11c   :  { %v708_v55 = vadd.f32 %v707_v54, %v128_v51  ;;  %v709_v56 = vpop.f32.mrb[2].mxu1 }
 0x11d   :  { %755 = vst [vmem:[%s1358_s3 + $0x10] sm:$0xff] %v706_v53  ;;  %v710_v57 = vpop.f32.mrb[3].mxu1 }
 0x11e   :  { %756 = vst [vmem:[%s1358_s3 + $0x18] sm:$0xff] %v708_v55 }
 0x155   :  { %v746_v62 = vpop.f32.mrb[4].mxu0 }
 0x156   :  { %v747_v63 = vadd.f32 %v746_v62, %v132_v60  ;;  %v748_v0 = vpop.f32.mrb[5].mxu0 }
 0x157   :  { %v749_v1 = vadd.f32 %v748_v0, %v136_v61  ;;  %v750_v2 = vpop.f32.mrb[6].mxu0 }
 0x158   :  { %757 = vst [vmem:[%s1358_s3 + $0x20] sm:$0xff] %v747_v63  ;;  %v751_v3 = vpop.f32.mrb[7].mxu0 }
 0x159   :  { %758 = vst [vmem:[%s1358_s3 + $0x28] sm:$0xff] %v749_v1 }

// kernel: forward.78
= control target key start
LH: loop header
LB: loop body
LE: loop exit
PB: predicated region body
PF: predicated region fallthrough
CT: control target
= control target key end

     0   :  { %s1481_s12 = smov 0   ;;  %s1663_s0 = inlined_call_operand.vmem [shape: bf16[2,4,256], index: 0, kind: input, shape index: {}]   ;;  %s1664_s1 = inlined_call_operand.vmem [shape: bf16[2,4,256], index: 1, kind: input, shape index: {}]   ;;  %s1665_s2 = inlined_call_operand.vmem [shape: bf16[2,4,256], index: 2, kind: input, shape index: {}]   ;;  %s1666_s3 = inlined_call_operand.vmem [shape: f32[2,4,256], index: 3, kind: output, shape index: {}]  }
   0x1 LB: > { %s1238_s13 = sadd.s32 4294967295, %s1453_s12   ;;  %p1242_p0 = scmp.ge.s32.totalorder %s1453_s12, 1  ;;  %s1453_s12 = sphi %s1481_s12, %s13_s12  }
   0x2   : > { %p157_p1 = scmp.lt.s32.totalorder %s1453_s12, 3 }
   0x4   : > { %p158_p2 = pnand %p1242_p0, %p157_p1 }
   0x5   : > { %p191_p3 = scmp.lt.s32.totalorder (!%p158_p2), %s1238_s13, 1  ;;  %v1455_v0 = vmov (!%p158_p2), 0.0   ;;  %vm1456_vm0 = vmmov (!%p158_p2), 0   ;;  %vm215_vm1 = vcmask (!%p158_p2), 261120   ;;  %vm263_vm2 = vcmask (!%p158_p2), 27648   ;;  %s1458_s21 = smov (!%p158_p2), 96  }
   0x6   : > { %161 = sbr.rel (%p158_p2) target bundleno = 1517 (0x5ed), region = 32  ;;  %1305 = vmatprep.subr.bf16.mxu0 (!%p158_p2), %v1455_v0  ;;  %1311 = vmatprep.subr.bf16.mxu1 (!%p158_p2), %v1455_v0  ;;  %v1457_v10 = vmov (!%p158_p2), 1983009808   ;;  %v328_v12 = vlaneseq (!%p158_p2)  ;;  %s1459_s22 = smov (!%p158_p2), 64   ;;  %vm280_vm3 = vcmask (!%p158_p2), 1041408   ;;  %vm276_vm4 = vcmask (!%p158_p2), 31744  }
   0x7   : > { %1307 = vmatprep.mubr.msk.bf16.mxu0 (!%p158_p2), %vm1456_vm0, %v1455_v0  ;;  %1313 = vmatprep.mubr.msk.bf16.mxu1 (!%p158_p2), %vm1456_vm0, %v1455_v0  ;;  %v326_v11 = vunpack.c.l.s4 (!%p158_p2), %v1457_v10  ;;  %s1460_s23 = smov (!%p158_p2), 32   ;;  %vm1147_vm5 = vcmask (!%p158_p2), 523264   ;;  %vm1149_vm6 = vcmask (!%p158_p2), 785408  }
   0x8   : > { %v329_v14 = vshrl.u32 (!%p158_p2), %v328_v12, 7 }
   0x9   : > { %v327_v13 = vunpack.c.0.s8 (!%p158_p2), %v326_v11 }
   0xb   : > { %v1514_v15 = vsub.s32 (!%p158_p2), %v327_v13, %v329_v14 }
   0xd   : > { %s1668_s13 = smov (!%p191_p3, %s1238_s13), 1 }
   0xe   : > { %s1498_s14 = sshll.u32 %s1668_s13, 2  ;;  %s1272_s27 = sshll.u32 %s1668_s13, 3 }
   0xf   : > { %s200_s17 = scalar_lea.vmem %s1664_s1, %s1498_s14  ;;  %s195_s20 = scalar_lea.vmem %s1663_s0, %s1498_s14 }
  0x10   : > { %v213_v1 = vld [vmem:[%s200_s17] sm:$0xf]  ;;  %s205_s26 = scalar_lea.vmem %s1665_s2, %s1498_s14  ;;  %s210_s30 = scalar_lea.vmem %s1666_s3, %s1272_s27 }
  0x11   : > { %v220_v2 = vsel %vm215_vm1, %v213_v1, 0  ;;  %v212_v3 = vld [vmem:[%s195_s20] sm:$0xf]  ;;  %v341_v16 = vrot.slane %v213_v1, %v1514_v15 }
  0x12   : > { %1306 = vmatpush3.bf16.xpose.msra.mxu0 %v220_v2  ;;  %v331_v17 = vrot.slane %v212_v3, %v1514_v15  ;;  %v1532_v25 = vld [vmem:[%s205_s26] sm:$0xf] }
  0x13   : > { %1323 = vmatprep.subr.bf16.mxu0 %v1455_v0  ;;  %342 = vrot.lane.b32.xlu1 %v341_v16, %s1458_s21  ;;  %v682_v18 = vcombine.high %v341_v16, %v341_v16  ;;  %v282_v26 = vsel %vm280_vm3, %v1532_v25, 0 }
  0x14   : > { %v681_v19 = vcombine.high %v331_v17, %v331_v17  ;;  %1312 = vmatpush3.bf16.msra.mxu1 %v282_v26 }
  0x15   : > { %1317 = vmatprep.subr.bf16.mxu1 %v1455_v0  ;;  %v687_v40 = vsel %vm215_vm1, %v682_v18, 0 }
  0x17   : > { %332 = vrot.lane.b32.xlu1 %v331_v17, %s1458_s21 }
  0x19   : > { %1308 = vmatmul.mubr.msk.bf16.vlgmr.msra.gmra.mrb[0].mxu0 %vm215_vm1, %v212_v3 }
  0x1a   : > { %1325 = vmatprep.mubr.msk.bf16.mxu0 %vm1456_vm0, %v1455_v0 }
  0x1b   : > { %459 = vrot.lane.b32.xlu1 %v331_v17, %s1459_s22 }
  0x1f   : > { %572 = vrot.lane.b32.xlu1 %v341_v16, %s1460_s23 }
  0x23   : > { %570 = vrot.lane.b32.xlu1 %v331_v17, %s1460_s23 }
  0x27   : > { %791 = vrot.lane.b32.xlu1 %v682_v18, %s1458_s21 }
  0x2b   : > { %789 = vrot.lane.b32.xlu1 %v681_v19, %s1458_s21 }
  0x2f   : > { %902 = vrot.lane.b32.xlu1 %v682_v18, %s1459_s22 }
  0x33   : > { %1013 = vrot.lane.b32.xlu1 %v682_v18, %s1460_s23 }
  0x85   : > { %v343_v29 = vpop.permute.xlu1 %342 }
  0x86   : > { %v348_v31 = vsel %vm215_vm1, %v343_v29, 0 }
  0x89   : > { %v333_v33 = vpop.permute.xlu1 %332 }
  0x8d   : > { %v460_v35 = vpop.permute.xlu1 %459 }
  0x91   : > { %v573_v37 = vpop.permute.xlu1 %572 }
  0x92   : > { %v578_v38 = vsel %vm215_vm1, %v573_v37, 0 }
  0x95   : > { %v571_v39 = vpop.permute.xlu1 %570 }
  0x99   : > { %v792_v41 = vpop.permute.xlu1 %791 }
  0x9a   : > { %v797_v43 = vsel %vm215_vm1, %v792_v41, 0 }
  0x9d   : > { %v790_v42 = vpop.permute.xlu1 %789 }
  0xa1   : > { %v903_v44 = vpop.permute.xlu1 %902 }
  0xa2   : > { %v908_v45 = vsel %vm215_vm1, %v903_v44, 0 }
  0xa5   : > { %v1014_v46 = vpop.permute.xlu1 %1013 }
  0xa6   : > { %v1019_v48 = vsel %vm215_vm1, %v1014_v46, 0 }
  0xec   : > { %v256_v4 = vpop.f32.mrb[0].mxu0 }
  0xed   : > { %v262_v5 = vmul.f32 0.17677669, %v256_v4  ;;  %v1309_v6 = vpop.f32.mrb[1].mxu0 }
  0xee   : > { %v259_v7 = vpop.f32.mrb[2].mxu0 }
  0xef   : > { %v1310_v8 = vpop.f32.mrb[3].mxu0  ;;  %v264_v9 = vsel %vm263_vm2, %v262_v5, -inf }
  0xf0   : > { %265 = vmax.xlane.f32.xlu0 %v264_v9 }
 0x17d   : > { %v266_v20 = vpop.xlane.xlu0 %265 }
 0x17e   : > { %v267_v21 = vsub.f32 %v262_v5, %v266_v20 }
 0x180   : > { %v268_v22 = vmul.f32 1.442695, %v267_v21 }
 0x182   : > { %1415 = vpow2.f32 %v268_v22 }
 0x18c   : > { %v1416_v23 = vpop.eup %1415 }
 0x18d   : > { %v270_v24 = vsel %vm263_vm2, %v1416_v23, 0.0 }
 0x18e   : > { %271 = vadd.xlane.f32.xlu0 %v270_v24 }
 0x1a4   : > { %461 = vrot.lane.b32.xlu0 %v341_v16, %s1459_s22 }
 0x1a8   : > { %900 = vrot.lane.b32.xlu0 %v681_v19, %s1459_s22 }
 0x1ac   : > { %1011 = vrot.lane.b32.xlu0 %v681_v19, %s1460_s23 }
 0x21b   : > { %v272_v27 = vpop.xlane.xlu0 %271 }
 0x21c   : > { %1417 = vrcp.f32 %v272_v27 }
 0x21f   : > { %v462_v34 = vpop.permute.xlu0 %461 }
 0x220   : > { %v467_v36 = vsel %vm215_vm1, %v462_v34, 0 }
 0x223   : > { %v901_v47 = vpop.permute.xlu0 %900 }
 0x226   : > { %v1418_v28 = vpop.eup %1417 }
 0x227   : > { %v274_v30 = vmul.f32 %v1418_v28, %v1416_v23  ;;  %v1012_v49 = vpop.permute.xlu0 %1011 }
 0x229   : > { %v275_v32 = vpack.c.bf16 %v274_v30, %v274_v30 }
 0x22b   : > { %1314 = vmatmul.mubr.msk.bf16.vlgmr.msra.gmra.mrb[0].mxu1 %vm276_vm4, %v275_v32 }
 0x22c   : > { %1318 = vmatpush3.bf16.xpose.msra.mxu1 %v348_v31  ;;  %1319 = vmatprep.mubr.msk.bf16.mxu1 %vm1456_vm0, %v1455_v0 }
 0x22d   : > { %1329 = vmatprep.subr.bf16.mxu1 %v1455_v0 }
 0x233   : > { %1320 = vmatmul.mubr.msk.bf16.vlgmr.msra.gmra.mrb[4].mxu1 %vm215_vm1, %v333_v33 }
 0x234   : > { %1330 = vmatpush3.bf16.xpose.msra.mxu1 %v467_v36  ;;  %1331 = vmatprep.mubr.msk.bf16.mxu1 %vm1456_vm0, %v1455_v0 }
 0x235   : > { %1341 = vmatprep.subr.bf16.mxu1 %v1455_v0 }
 0x23b   : > { %1332 = vmatmul.mubr.msk.bf16.vlgmr.msra.gmra.mrb[8].mxu1 %vm215_vm1, %v460_v35  ;;  %v410_v35 = vrot.slane %v1532_v25, %v1514_v15 }
 0x23c   : > { %1342 = vmatpush3.bf16.xpose.msra.mxu1 %v578_v38  ;;  %1343 = vmatprep.mubr.msk.bf16.mxu1 %vm1456_vm0, %v1455_v0 }
 0x23d   : > { %1353 = vmatprep.subr.bf16.mxu1 %v1455_v0 }
 0x243   : > { %1344 = vmatmul.mubr.msk.bf16.vlgmr.msra.gmra.mrb[12].mxu1 %vm215_vm1, %v571_v39 }
 0x244   : > { %1354 = vmatpush3.bf16.xpose.msra.mxu1 %v687_v40  ;;  %1355 = vmatprep.mubr.msk.bf16.mxu1 %vm1456_vm0, %v1455_v0 }
 0x245   : > { %1365 = vmatprep.subr.bf16.mxu1 %v1455_v0 }
 0x24b   : > { %1356 = vmatmul.mubr.msk.bf16.vlgmr.msra.gmra.mrb[16].mxu1 %vm215_vm1, %v681_v19 }
 0x24c   : > { %1366 = vmatpush3.bf16.xpose.msra.mxu1 %v797_v43  ;;  %1367 = vmatprep.mubr.msk.bf16.mxu1 %vm1456_vm0, %v1455_v0 }
 0x24d   : > { %1377 = vmatprep.subr.bf16.mxu1 %v1455_v0 }
 0x253   : > { %1368 = vmatmul.mubr.msk.bf16.vlgmr.msra.gmra.mrb[20].mxu1 %vm215_vm1, %v790_v42 }
 0x254   : > { %1378 = vmatpush3.bf16.xpose.msra.mxu1 %v908_v45  ;;  %1379 = vmatprep.mubr.msk.bf16.mxu1 %vm1456_vm0, %v1455_v0 }
 0x255   : > { %1389 = vmatprep.subr.bf16.mxu1 %v1455_v0 }
 0x25b   : > { %1380 = vmatmul.mubr.msk.bf16.vlgmr.msra.gmra.mrb[24].mxu1 %vm215_vm1, %v901_v47 }
 0x25c   : > { %1390 = vmatpush3.bf16.xpose.msra.mxu1 %v1019_v48  ;;  %1391 = vmatprep.mubr.msk.bf16.mxu1 %vm1456_vm0, %v1455_v0 }
 0x263   : > { %1392 = vmatmul.mubr.msk.bf16.vlgmr.msra.gmra.mrb[28].mxu1 %vm215_vm1, %v1012_v49 }
 0x2fe   : > { %v1575_v50 = vpop.f32.mrb[0].mxu1 }
 0x2ff   : > { %v1315_v51 = vpop.f32.mrb[1].mxu1 }
 0x300   : > { %v321_v52 = vpop.f32.mrb[2].mxu1 }
 0x301   : > { %v1316_v53 = vpop.f32.mrb[3].mxu1 }
 0x306   : > { %v384_v54 = vpop.f32.mrb[4].mxu1 }
 0x307   : > { %v390_v55 = vmul.f32 0.17677669, %v384_v54  ;;  %v1321_v56 = vpop.f32.mrb[5].mxu1 }
 0x308   : > { %v387_v57 = vpop.f32.mrb[6].mxu1 }
 0x309   : > { %v1322_v58 = vpop.f32.mrb[7].mxu1  ;;  %v391_v59 = vsel %vm263_vm2, %v390_v55, -inf }
 0x30a   : > { %392 = vmax.xlane.f32.xlu1 %v391_v59  ;;  %v742_v58 = vcombine.high %v410_v35, %v410_v35 }
 0x30e   : > { %v503_v60 = vpop.f32.mrb[8].mxu1 }
 0x30f   : > { %v509_v61 = vmul.f32 0.17677669, %v503_v60  ;;  %v1333_v62 = vpop.f32.mrb[9].mxu1 }
 0x310   : > { %v506_v63 = vpop.f32.mrb[10].mxu1 }
 0x311   : > { %v1334_v1 = vpop.f32.mrb[11].mxu1  ;;  %v510_v2 = vsel %vm263_vm2, %v509_v61, -inf }
 0x312   : > { %511 = vmax.xlane.f32.xlu0 %v510_v2 }
 0x316   : > { %v614_v3 = vpop.f32.mrb[12].mxu1 }
 0x317   : > { %v620_v4 = vmul.f32 0.17677669, %v614_v3  ;;  %v1345_v5 = vpop.f32.mrb[13].mxu1 }
 0x318   : > { %v617_v6 = vpop.f32.mrb[14].mxu1 }
 0x319   : > { %v1346_v7 = vpop.f32.mrb[15].mxu1  ;;  %v621_v8 = vsel %vm263_vm2, %v620_v4, -inf }
 0x31a   : > { %622 = vmax.xlane.f32.xlu0 %v621_v8 }
 0x31e   : > { %v723_v9 = vpop.f32.mrb[16].mxu1 }
 0x31f   : > { %v729_v10 = vmul.f32 0.17677669, %v723_v9  ;;  %v1357_v11 = vpop.f32.mrb[17].mxu1 }
 0x320   : > { %v726_v12 = vpop.f32.mrb[18].mxu1 }
 0x321   : > { %v1358_v13 = vpop.f32.mrb[19].mxu1  ;;  %v730_v14 = vsel %vm263_vm2, %v729_v10, -inf }
 0x322   : > { %731 = vmax.xlane.f32.xlu1 %v730_v14 }
 0x326   : > { %v833_v16 = vpop.f32.mrb[20].mxu1 }
 0x327   : > { %v1581_v17 = vmul.f32 0.17677669, %v833_v16  ;;  %v1369_v18 = vpop.f32.mrb[21].mxu1 }
 0x328   : > { %v836_v19 = vpop.f32.mrb[22].mxu1 }
 0x329   : > { %v840_v20 = vsel %vm263_vm2, %v1581_v17, -inf  ;;  %v1370_v21 = vpop.f32.mrb[23].mxu1 }
 0x32a   : > { %841 = vmax.xlane.f32.xlu0 %v840_v20 }
 0x32e   : > { %v944_v22 = vpop.f32.mrb[24].mxu1 }
 0x32f   : > { %v950_v23 = vmul.f32 0.17677669, %v944_v22  ;;  %v1381_v24 = vpop.f32.mrb[25].mxu1 }
 0x330   : > { %v947_v26 = vpop.f32.mrb[26].mxu1 }
 0x331   : > { %v951_v27 = vsel %vm263_vm2, %v950_v23, -inf  ;;  %v1382_v28 = vpop.f32.mrb[27].mxu1 }
 0x332   : > { %952 = vmax.xlane.f32.xlu1 %v951_v27 }
 0x336   : > { %v1055_v29 = vpop.f32.mrb[28].mxu1 }
 0x337   : > { %v1061_v30 = vmul.f32 0.17677669, %v1055_v29  ;;  %v1393_v31 = vpop.f32.mrb[29].mxu1  ;;  %v747_v29 = vsel %vm280_vm3, %v742_v58, 0 }
 0x338   : > { %v1058_v32 = vpop.f32.mrb[30].mxu1 }
 0x339   : > { %v1062_v33 = vsel %vm263_vm2, %v1061_v30, -inf  ;;  %v1394_v34 = vpop.f32.mrb[31].mxu1 }
 0x33a   : > { %1063 = vmax.xlane.f32.xlu0 %v1062_v33 }
 0x343   : > { %411 = vrot.lane.b32.xlu1 %v410_v35, %s1458_s21 }
 0x350   : > { %522 = vrot.lane.b32.xlu0 %v410_v35, %s1459_s22 }
 0x397   : > { %v393_v36 = vpop.xlane.xlu1 %392 }
 0x398   : > { %v394_v37 = vsub.f32 %v390_v55, %v393_v36 }
 0x39a   : > { %v395_v38 = vmul.f32 1.442695, %v394_v37 }
 0x39c   : > { %1419 = vpow2.f32 %v395_v38 }
 0x39f   : > { %v512_v39 = vpop.xlane.xlu0 %511 }
 0x3a0   : > { %v513_v40 = vsub.f32 %v509_v61, %v512_v39 }
 0x3a2   : > { %v514_v41 = vmul.f32 1.442695, %v513_v40 }
 0x3a4   : > { %1421 = vpow2.f32 %v514_v41 }
 0x3a6   : > { %v1420_v42 = vpop.eup %1419 }
 0x3a7   : > { %v623_v43 = vpop.xlane.xlu0 %622  ;;  %v397_v44 = vsel %vm263_vm2, %v1420_v42, 0.0 }
 0x3a8   : > { %v624_v45 = vsub.f32 %v620_v4, %v623_v43  ;;  %398 = vadd.xlane.f32.xlu1 %v397_v44 }
 0x3aa   : > { %v625_v46 = vmul.f32 1.442695, %v624_v45 }
 0x3ac   : > { %1423 = vpow2.f32 %v625_v46 }
 0x3ae   : > { %v1422_v15 = vpop.eup %1421 }
 0x3af   : > { %v732_v25 = vpop.xlane.xlu1 %731  ;;  %v516_v47 = vsel %vm263_vm2, %v1422_v15, 0.0 }
 0x3b0   : > { %v733_v48 = vsub.f32 %v729_v10, %v732_v25  ;;  %517 = vadd.xlane.f32.xlu0 %v516_v47 }
 0x3b2   : > { %v734_v49 = vmul.f32 1.442695, %v733_v48 }
 0x3b4   : > { %1425 = vpow2.f32 %v734_v49 }
 0x3b6   : > { %v1424_v51 = vpop.eup %1423 }
 0x3b7   : > { %v627_v52 = vsel %vm263_vm2, %v1424_v51, 0.0  ;;  %v842_v61 = vpop.xlane.xlu0 %841 }
 0x3b8   : > { %628 = vadd.xlane.f32.xlu1 %v627_v52  ;;  %v843_v62 = vsub.f32 %v1581_v17, %v842_v61 }
 0x3ba   : > { %v844_v1 = vmul.f32 1.442695, %v843_v62 }
 0x3be   : > { %v1594_v53 = vpop.eup %1425 }
 0x3bf   : > { %v953_v54 = vpop.xlane.xlu1 %952  ;;  %v736_v55 = vsel %vm263_vm2, %v1594_v53, 0.0 }
 0x3c0   : > { %737 = vadd.xlane.f32.xlu0 %v736_v55  ;;  %v954_v59 = vsub.f32 %v950_v23, %v953_v54 }
 0x3c2   : > { %v955_v60 = vmul.f32 1.442695, %v954_v59 }
 0x3c3   : > { %v412_v56 = vpop.permute.xlu1 %411 }
 0x3c4   : > { %v417_v57 = vsel %vm280_vm3, %v412_v56, 0  ;;  %1427 = vpow2.f32 %v955_v60 }
 0x3c5   : > { %1324 = vmatpush3.bf16.msra.mxu0 %v417_v57  ;;  %1429 = vpow2.f32 %v844_v1 }
 0x3c6   : > { %1335 = vmatprep.subr.bf16.mxu0 %v1455_v0 }
 0x3c7   : > { %v1064_v63 = vpop.xlane.xlu0 %1063 }
 0x3c8   : > { %v1065_v2 = vsub.f32 %v1061_v30, %v1064_v63 }
 0x3c9   : > { %852 = vrot.lane.b32.xlu1 %v742_v58, %s1458_s21 }
 0x3ca   : > { %v1066_v3 = vmul.f32 1.442695, %v1065_v2 }
 0x3cb   : > { %v523_v11 = vpop.permute.xlu0 %522 }
 0x3cc   : > { %1431 = vpow2.f32 %v1066_v3  ;;  %v528_v17 = vsel %vm280_vm3, %v523_v11, 0 }
 0x3ce   : > { %v1603_v4 = vpop.eup %1427 }
 0x3cf   : > { %v957_v5 = vsel %vm263_vm2, %v1603_v4, 0.0  ;;  %v1430_v6 = vpop.eup %1429 }
 0x3d0   : > { %v846_v7 = vsel %vm263_vm2, %v1430_v6, 0.0 }
 0x3d6   : > { %633 = vrot.lane.b32.xlu0 %v410_v35, %s1460_s23  ;;  %v1608_v8 = vpop.eup %1431 }
 0x3d7   : > { %v1068_v9 = vsel %vm263_vm2, %v1608_v8, 0.0 }
 0x3ed   : > { %958 = vadd.xlane.f32.xlu1 %v957_v5 }
 0x3f5   : > { %847 = vadd.xlane.f32.xlu0 %v846_v7 }
 0x3f9   : > { %1069 = vadd.xlane.f32.xlu0 %v1068_v9 }
 0x3fe   : > { %1074 = vrot.lane.b32.xlu1 %v742_v58, %s1460_s23 }
 0x40f   : > { %963 = vrot.lane.b32.xlu0 %v742_v58, %s1459_s22 }
 0x435   : > { %v399_v10 = vpop.xlane.xlu1 %398 }
 0x436   : > { %1433 = vrcp.f32 %v399_v10 }
 0x43d   : > { %v518_v12 = vpop.xlane.xlu0 %517 }
 0x43e   : > { %1435 = vrcp.f32 %v518_v12 }
 0x440   : > { %v1434_v13 = vpop.eup %1433 }
 0x441   : > { %v401_v14 = vmul.f32 %v1434_v13, %v1420_v42 }
 0x443   : > { %v402_v16 = vpack.c.bf16 %v401_v14, %v401_v14 }
 0x445   : > { %1326 = vmatmul.mubr.msk.bf16.vlgmr.msra.gmra.mrb[4].mxu0 %vm276_vm4, %v402_v16  ;;  %v629_v18 = vpop.xlane.xlu1 %628 }
 0x446   : > { %1437 = vrcp.f32 %v629_v18  ;;  %1336 = vmatpush3.bf16.msra.mxu0 %v528_v17  ;;  %1337 = vmatprep.mubr.msk.bf16.mxu0 %vm1456_vm0, %v1455_v0 }
 0x447   : > { %1347 = vmatprep.subr.bf16.mxu0 %v1455_v0 }
 0x448   : > { %v1436_v19 = vpop.eup %1435 }
 0x449   : > { %v520_v20 = vmul.f32 %v1436_v19, %v1422_v15  ;;  %v853_v32 = vpop.permute.xlu1 %852 }
 0x44a   : > { %v858_v34 = vsel %vm280_vm3, %v853_v32, 0 }
 0x44b   : > { %v521_v21 = vpack.c.bf16 %v520_v20, %v520_v20 }
 0x44d   : > { %1338 = vmatmul.mubr.msk.bf16.vlgmr.msra.gmra.mrb[8].mxu0 %vm276_vm4, %v521_v21  ;;  %v738_v22 = vpop.xlane.xlu0 %737 }
 0x44e   : > { %1439 = vrcp.f32 %v738_v22  ;;  %1349 = vmatprep.mubr.msk.bf16.mxu0 %vm1456_vm0, %v1455_v0 }
 0x450   : > { %v1438_v23 = vpop.eup %1437 }
 0x451   : > { %v631_v24 = vmul.f32 %v1438_v23, %v1424_v51  ;;  %v634_v26 = vpop.permute.xlu0 %633 }
 0x452   : > { %v639_v27 = vsel %vm280_vm3, %v634_v26, 0 }
 0x453   : > { %1348 = vmatpush3.bf16.msra.mxu0 %v639_v27  ;;  %v632_v28 = vpack.c.bf16 %v631_v24, %v631_v24 }
 0x454   : > { %1359 = vmatprep.subr.bf16.mxu0 %v1455_v0 }
 0x456   : > { %1350 = vmatmul.mubr.msk.bf16.vlgmr.msra.gmra.mrb[12].mxu0 %vm276_vm4, %v632_v28 }
 0x457   : > { %1360 = vmatpush3.bf16.msra.mxu0 %v747_v29  ;;  %1361 = vmatprep.mubr.msk.bf16.mxu0 %vm1456_vm0, %v1455_v0 }
 0x458   : > { %v1440_v30 = vpop.eup %1439  ;;  %1371 = vmatprep.subr.bf16.mxu0 %v1455_v0 }
 0x459   : > { %v740_v31 = vmul.f32 %v1440_v30, %v1594_v53 }
 0x45b   : > { %v741_v33 = vpack.c.bf16 %v740_v31, %v740_v31 }
 0x45e   : > { %1362 = vmatmul.mubr.msk.bf16.vlgmr.msra.gmra.mrb[16].mxu0 %vm276_vm4, %v741_v33 }
 0x45f   : > { %1372 = vmatpush3.bf16.msra.mxu0 %v858_v34  ;;  %1373 = vmatprep.mubr.msk.bf16.mxu0 %vm1456_vm0, %v1455_v0 }
 0x460   : > { %1383 = vmatprep.subr.bf16.mxu0 %v1455_v0 }
 0x47a   : > { %v959_v36 = vpop.xlane.xlu1 %958 }
 0x47e   : > { %v1075_v45 = vpop.permute.xlu1 %1074 }
 0x47f   : > { %v1080_v46 = vsel %vm280_vm3, %v1075_v45, 0 }
 0x482   : > { %v848_v35 = vpop.xlane.xlu0 %847 }
 0x483   : > { %1441 = vrcp.f32 %v848_v35 }
 0x484   : > { %1443 = vrcp.f32 %v959_v36 }
 0x486   : > { %v1070_v37 = vpop.xlane.xlu0 %1069 }
 0x487   : > { %1445 = vrcp.f32 %v1070_v37 }
 0x48a   : > { %v964_v39 = vpop.permute.xlu0 %963 }
 0x48b   : > { %v969_v41 = vsel %vm280_vm3, %v964_v39, 0 }
 0x48d   : > { %v1442_v38 = vpop.eup %1441 }
 0x48e   : > { %v850_v40 = vmul.f32 %v1442_v38, %v1430_v6  ;;  %v1444_v43 = vpop.eup %1443 }
 0x48f   : > { %v961_v44 = vmul.f32 %v1444_v43, %v1603_v4 }
 0x490   : > { %v851_v42 = vpack.c.bf16 %v850_v40, %v850_v40 }
 0x491   : > { %v962_v15 = vpack.c.bf16 %v961_v44, %v961_v44  ;;  %v1446_v25 = vpop.eup %1445 }
 0x492   : > { %1374 = vmatmul.mubr.msk.bf16.vlgmr.msra.gmra.mrb[20].mxu0 %vm276_vm4, %v851_v42  ;;  %v1072_v47 = vmul.f32 %v1446_v25, %v1608_v8 }
 0x493   : > { %1384 = vmatpush3.bf16.msra.mxu0 %v969_v41  ;;  %1385 = vmatprep.mubr.msk.bf16.mxu0 %vm1456_vm0, %v1455_v0 }
 0x494   : > { %1395 = vmatprep.subr.bf16.mxu0 %v1455_v0  ;;  %v1073_v48 = vpack.c.bf16 %v1072_v47, %v1072_v47 }
 0x49a   : > { %1386 = vmatmul.mubr.msk.bf16.vlgmr.msra.gmra.mrb[24].mxu0 %vm276_vm4, %v962_v15 }
 0x49b   : > { %1396 = vmatpush3.bf16.msra.mxu0 %v1080_v46  ;;  %1397 = vmatprep.mubr.msk.bf16.mxu0 %vm1456_vm0, %v1455_v0 }
 0x4a2   : > { %1398 = vmatmul.mubr.msk.bf16.vlgmr.msra.gmra.mrb[28].mxu0 %vm276_vm4, %v1073_v48 }
 0x518   : > { %v453_v49 = vpop.f32.mrb[4].mxu0 }
 0x519   : > { %1123 = vrot.lane.b32.xlu1 %v453_v49, %s1460_s23  ;;  %v1327_v51 = vpop.f32.mrb[5].mxu0 }
 0x51a   : > { %v456_v52 = vpop.f32.mrb[6].mxu0 }
 0x51b   : > { %v1328_v53 = vpop.f32.mrb[7].mxu0 }
 0x520   : > { %v564_v54 = vpop.f32.mrb[8].mxu0 }
 0x521   : > { %1127 = vrot.lane.b32.xlu1 %v564_v54, %s1459_s22  ;;  %v1339_v55 = vpop.f32.mrb[9].mxu0 }
 0x522   : > { %v567_v56 = vpop.f32.mrb[10].mxu0 }
 0x523   : > { %v1340_v57 = vpop.f32.mrb[11].mxu0 }
 0x529   : > { %v675_v58 = vpop.f32.mrb[12].mxu0 }
 0x52a   : > { %1131 = vrot.lane.b32.xlu1 %v675_v58, %s1458_s21  ;;  %v1351_v0 = vpop.f32.mrb[13].mxu0 }
 0x52b   : > { %v678_v59 = vpop.f32.mrb[14].mxu0 }
 0x52c   : > { %v1352_v60 = vpop.f32.mrb[15].mxu0 }
 0x531   : > { %v783_v61 = vpop.f32.mrb[16].mxu0 }
 0x532   : > { %v1363_v62 = vpop.f32.mrb[17].mxu0 }
 0x533   : > { %v786_v63 = vpop.f32.mrb[18].mxu0 }
 0x534   : > { %v1364_v1 = vpop.f32.mrb[19].mxu0 }
 0x565   : > { %v894_v2 = vpop.f32.mrb[20].mxu0 }
 0x566   : > { %1135 = vrot.lane.b32.xlu0 %v894_v2, %s1460_s23  ;;  %v1375_v3 = vpop.f32.mrb[21].mxu0 }
 0x567   : > { %v897_v4 = vpop.f32.mrb[22].mxu0 }
 0x568   : > { %v1376_v5 = vpop.f32.mrb[23].mxu0 }
 0x56d   : > { %v1005_v6 = vpop.f32.mrb[24].mxu0 }
 0x56e   : > { %1139 = vrot.lane.b32.xlu1 %v1005_v6, %s1459_s22  ;;  %v1387_v7 = vpop.f32.mrb[25].mxu0 }
 0x56f   : > { %v1008_v8 = vpop.f32.mrb[26].mxu0 }
 0x570   : > { %v1388_v9 = vpop.f32.mrb[27].mxu0 }
 0x575   : > { %v1116_v10 = vpop.f32.mrb[28].mxu0 }
 0x576   : > { %1143 = vrot.lane.b32.xlu0 %v1116_v10, %s1458_s21  ;;  %v1399_v11 = vpop.f32.mrb[29].mxu0 }
 0x577   : > { %v1119_v12 = vpop.f32.mrb[30].mxu0 }
 0x578   : > { %v1400_v13 = vpop.f32.mrb[31].mxu0 }
 0x58b   : > { %v1124_v14 = vpop.permute.xlu1 %1123 }
 0x58c   : > { %v1146_v20 = vsel %vm215_vm1, %v1575_v50, %v1124_v14 }
 0x593   : > { %v1128_v16 = vpop.permute.xlu1 %1127 }
 0x594   : > { %v1148_v22 = vsel %vm1147_vm5, %v1146_v20, %v1128_v16 }
 0x59c   : > { %v1132_v17 = vpop.permute.xlu1 %1131 }
 0x59d   : > { %v1150_v26 = vsel %vm1149_vm6, %v1148_v22, %v1132_v17 }
 0x5d8   : > { %v1136_v18 = vpop.permute.xlu0 %1135 }
 0x5d9   : > { %v1151_v21 = vsel %vm215_vm1, %v783_v61, %v1136_v18 }
 0x5e0   : > { %v1140_v19 = vpop.permute.xlu1 %1139 }
 0x5e1   : > { %v1152_v23 = vsel %vm1147_vm5, %v1151_v21, %v1140_v19 }
 0x5e8   : > { %v1144_v24 = vpop.permute.xlu0 %1143 }
 0x5e9   : > { %v1153_v27 = vsel %vm1149_vm6, %v1152_v23, %v1144_v24 }
 0x5ea   : > { %v1156_v28 = vcombine.low %v1150_v26, %v1153_v27 }
 0x5ec   : > { %1158 = vst [vmem:[%s210_s30] sm:$0xff] %v1156_v28 }
 0x5ed PF: > { %s13_s12 = sadd.s32 1, %s1453_s12  }
 0x5ee   : > { %p10_p4 = scmp.ge.s32.totalorder %s13_s12, 4  }
 0x5f0   :  { %12 = sbr.rel (!%p10_p4) target bundleno = 1 (0x1), region = 68 }

// kernel: forward.79
= control target key start
LH: loop header
LB: loop body
LE: loop exit
PB: predicated region body
PF: predicated region fallthrough
CT: control target
= control target key end

     0   :  { %v270_v35 = vlaneseq  ;;  %s574_s1 = inlined_call_operand.vmem [shape: bf16[256,256], index: 1, kind: input, shape index: {}]   ;;  %s575_s0 = inlined_call_operand.vmem [shape: bf16[8,256], index: 0, kind: input, shape index: {}]   ;;  %s576_s2 = inlined_call_operand.vmem [shape: f32[1,256], index: 2, kind: input, shape index: {}]   ;;  %s577_s3 = inlined_call_operand.vmem [shape: f32[8,256], index: 3, kind: input, shape index: {}]   ;;  %s578_s4 = inlined_call_operand.vmem [shape: f32[1,256], index: 4, kind: input, shape index: {}]   ;;  %s579_s5 = inlined_call_operand.vmem [shape: f32[1,256], index: 5, kind: input, shape index: {}]   ;;  %s580_s6 = inlined_call_operand.vmem [shape: f32[8,256], index: 6, kind: output, shape index: {}]  }
   0x1   :  { %v367_v0 = vld [vmem:[%s574_s1 + $0x4] ss:$8 sps:$4 sm:$0xff]   ;;  %v369_v1 = vld [vmem:[%s574_s1] ss:$8 sps:$4 sm:$0xff]   ;;  %v370_v2 = vld [vmem:[%s574_s1 + $0x14] ss:$8 sps:$4 sm:$0xff]  }
   0x2   :  { %223 = vmatprep.subr.bf16.mxu0 %v367_v0  ;;  %v372_v3 = vld [vmem:[%s574_s1 + $0x10] ss:$8 sps:$4 sm:$0xff]   ;;  %v373_v4 = vld [vmem:[%s574_s1 + $0x24] ss:$8 sps:$4 sm:$0xff]   ;;  %v375_v5 = vld [vmem:[%s574_s1 + $0x20] ss:$8 sps:$4 sm:$0xff]  }
   0x3   :  { %224 = vmatpush1.bf16.msra.mxu0 %v369_v1  ;;  %v376_v6 = vld [vmem:[%s574_s1 + $0x34] ss:$8 sps:$4 sm:$0xff]   ;;  %v378_v7 = vld [vmem:[%s574_s1 + $0x30] ss:$8 sps:$4 sm:$0xff]   ;;  %v379_v8 = vld [vmem:[%s574_s1 + $0x44] ss:$8 sps:$4 sm:$0xff]  }
   0x4   :  { %225 = vmatprep.subr.bf16.mxu0 %v370_v2  ;;  %v381_v9 = vld [vmem:[%s574_s1 + $0x40] ss:$8 sps:$4 sm:$0xff]   ;;  %v382_v10 = vld [vmem:[%s574_s1 + $0x54] ss:$8 sps:$4 sm:$0xff]   ;;  %v384_v11 = vld [vmem:[%s574_s1 + $0x50] ss:$8 sps:$4 sm:$0xff]  }
   0x5   :  { %v385_v12 = vld [vmem:[%s574_s1 + $0x64] ss:$8 sps:$4 sm:$0xff]   ;;  %v387_v15 = vld [vmem:[%s574_s1 + $0x60] ss:$8 sps:$4 sm:$0xff]   ;;  %v388_v16 = vld [vmem:[%s574_s1 + $0x74] ss:$8 sps:$4 sm:$0xff]  }
   0x6   :  { %v23_v13 = vld [vmem:[%s575_s0] sm:$0xff]  ;;  %v390_v17 = vld [vmem:[%s574_s1 + $0x70] ss:$8 sps:$4 sm:$0xff]   ;;  %v394_v20 = vld [vmem:[%s574_s1 + $0x94] ss:$8 sps:$4 sm:$0xff]   ;;  %v271_v36 = vshrl.u32 %v270_v35, 7 }
   0x7   :  { %226 = vmatpush1.bf16.msra.mxu0 %v372_v3  ;;  %v334_v14 = vcombine.high %v23_v13, %v23_v13  ;;  %v391_v18 = vld [vmem:[%s574_s1 + $0x84] ss:$8 sps:$4 sm:$0xff]   ;;  %v393_v19 = vld [vmem:[%s574_s1 + $0x80] ss:$8 sps:$4 sm:$0xff]   ;;  %v396_v21 = vld [vmem:[%s574_s1 + $0x90] ss:$8 sps:$4 sm:$0xff]   ;;  %v333_v34 = vcombine.low %v23_v13, %v23_v13 }
   0x8   :  { %227 = vmatprep.subr.bf16.mxu0 %v373_v4  ;;  %v397_v22 = vld [vmem:[%s574_s1 + $0xa4] ss:$8 sps:$4 sm:$0xff]   ;;  %v399_v23 = vld [vmem:[%s574_s1 + $0xa0] ss:$8 sps:$4 sm:$0xff]   ;;  %v400_v24 = vld [vmem:[%s574_s1 + $0xb4] ss:$8 sps:$4 sm:$0xff]  }
   0x9   :  { %255 = vmatprep.mubr.bf16.mxu0 %v334_v14  ;;  %v402_v25 = vld [vmem:[%s574_s1 + $0xb0] ss:$8 sps:$4 sm:$0xff]   ;;  %v403_v26 = vld [vmem:[%s574_s1 + $0xc4] ss:$8 sps:$4 sm:$0xff]   ;;  %v405_v27 = vld [vmem:[%s574_s1 + $0xc0] ss:$8 sps:$4 sm:$0xff]  }
   0xa   :  { %v406_v28 = vld [vmem:[%s574_s1 + $0xd4] ss:$8 sps:$4 sm:$0xff]   ;;  %v408_v29 = vld [vmem:[%s574_s1 + $0xd0] ss:$8 sps:$4 sm:$0xff]   ;;  %v409_v30 = vld [vmem:[%s574_s1 + $0xe4] ss:$8 sps:$4 sm:$0xff]  }
   0xb   :  { %228 = vmatpush1.bf16.msra.mxu0 %v375_v5  ;;  %v411_v31 = vld [vmem:[%s574_s1 + $0xe0] ss:$8 sps:$4 sm:$0xff]   ;;  %v412_v32 = vld [vmem:[%s574_s1 + $0xf4] ss:$8 sps:$4 sm:$0xff]   ;;  %v414_v33 = vld [vmem:[%s574_s1 + $0xf0] ss:$8 sps:$4 sm:$0xff]  }
   0xc   :  { %229 = vmatprep.subr.bf16.mxu0 %v376_v6  ;;  %v272_v37 = vsub.s32 0, %v271_v36  ;;  %v268_v38 = vld [vmem:[%s576_s2] sm:$0x3]  ;;  %v276_v39 = vsub.s32 1, %v271_v36  ;;  %v265_v41 = vld [vmem:[%s577_s3 + $0x8] sm:$0xff] }
   0xd   :  { %v264_v40 = vld [vmem:[%s577_s3] sm:$0xff] }
   0xe   :  { %v273_v42 = vrot.slane %v268_v38, %v272_v37  ;;  %v277_v44 = vrot.slane %v268_v38, %v276_v39  ;;  %v299_v63 = vld [vmem:[%s578_s4] sm:$0x3] }
   0xf   :  { %230 = vmatpush1.bf16.msra.mxu0 %v378_v7  ;;  %v313_v0 = vld [vmem:[%s579_s5] sm:$0x3]  ;;  %v304_v1 = vrot.slane %v299_v63, %v272_v37  ;;  %v308_v2 = vrot.slane %v299_v63, %v276_v39 }
  0x10   :  { %231 = vmatprep.subr.bf16.mxu0 %v379_v8  ;;  %v318_v4 = vrot.slane %v313_v0, %v272_v37  ;;  %v322_v5 = vrot.slane %v313_v0, %v276_v39 }
  0x13   :  { %232 = vmatpush1.bf16.msra.mxu0 %v381_v9 }
  0x14   :  { %233 = vmatprep.subr.bf16.mxu0 %v382_v10 }
  0x17   :  { %234 = vmatpush1.bf16.msra.mxu0 %v384_v11 }
  0x18   :  { %235 = vmatprep.subr.bf16.mxu0 %v385_v12 }
  0x1b   :  { %236 = vmatpush1.bf16.msra.mxu0 %v387_v15 }
  0x1c   :  { %237 = vmatprep.subr.bf16.mxu0 %v388_v16 }
  0x1f   :  { %238 = vmatpush1.bf16.msra.mxu0 %v390_v17 }
  0x20   :  { %239 = vmatprep.subr.bf16.mxu0 %v391_v18 }
  0x23   :  { %240 = vmatpush1.bf16.msra.mxu0 %v393_v19 }
  0x24   :  { %241 = vmatprep.subr.bf16.mxu0 %v394_v20 }
  0x27   :  { %242 = vmatpush1.bf16.msra.mxu0 %v396_v21 }
  0x28   :  { %243 = vmatprep.subr.bf16.mxu0 %v397_v22 }
  0x2b   :  { %244 = vmatpush1.bf16.msra.mxu0 %v399_v23 }
  0x2c   :  { %245 = vmatprep.subr.bf16.mxu0 %v400_v24 }
  0x2f   :  { %246 = vmatpush1.bf16.msra.mxu0 %v402_v25 }
  0x30   :  { %247 = vmatprep.subr.bf16.mxu0 %v403_v26 }
  0x33   :  { %248 = vmatpush1.bf16.msra.mxu0 %v405_v27 }
  0x34   :  { %249 = vmatprep.subr.bf16.mxu0 %v406_v28 }
  0x37   :  { %250 = vmatpush1.bf16.msra.mxu0 %v408_v29 }
  0x38   :  { %251 = vmatprep.subr.bf16.mxu0 %v409_v30 }
  0x3b   :  { %252 = vmatpush1.bf16.msra.mxu0 %v411_v31 }
  0x3c   :  { %253 = vmatprep.subr.bf16.mxu0 %v412_v32 }
  0x3f   :  { %254 = vmatpush1.bf16.msra.mxu0 %v414_v33 }
  0x42   :  { %256 = vmatmul.mubr.bf16.vlgmr.msra.gmra.mrb[0].mxu0 %v333_v34 }
 0x115   :  { %v257_v43 = vpop.f32.mrb[0].mxu0 }
 0x116   :  { %v266_v45 = vadd.f32 %v264_v40, %v257_v43  ;;  %v259_v46 = vpop.f32.mrb[1].mxu0 }
 0x117   :  { %v267_v47 = vadd.f32 %v265_v41, %v259_v46  ;;  %v261_v48 = vpop.f32.mrb[2].mxu0 }
 0x118   :  { %v262_v49 = vpop.f32.mrb[3].mxu0  ;;  %v280_v50 = vadd.f32 %v273_v42, %v266_v45 }
 0x119   :  { %v281_v51 = vadd.f32 %v277_v44, %v267_v47 }
 0x11b   :  { %v282_v52 = vadd.f32 %v281_v51, %v280_v50 }
 0x11d   :  { %283 = vadd.xlane.f32.xlu0 %v282_v52 }
 0x1aa   :  { %v284_v53 = vpop.xlane.xlu0 %283 }
 0x1ab   :  { %v286_v54 = vmul.f32 0.00390625, %v284_v53 }
 0x1ad   :  { %v287_v55 = vsub.f32 %v280_v50, %v286_v54  ;;  %v288_v56 = vsub.f32 %v281_v51, %v286_v54 }
 0x1af   :  { %v289_v57 = vmul.f32 %v287_v55, %v287_v55  ;;  %v290_v58 = vmul.f32 %v288_v56, %v288_v56 }
 0x1b1   :  { %v291_v59 = vadd.f32 %v290_v58, %v289_v57 }
 0x1b3   :  { %292 = vadd.xlane.f32.xlu0 %v291_v59 }
 0x240   :  { %v293_v60 = vpop.xlane.xlu0 %292 }
 0x241   :  { %v294_v61 = vmul.f32 0.00390625, %v293_v60 }
 0x243   :  { %v295_v62 = vadd.f32 1e-05, %v294_v61 }
 0x245   :  { %417 = vrsqrt.f32 %v295_v62 }
 0x24f   :  { %v418_v3 = vpop.eup %417 }
 0x250   :  { %v297_v6 = vmul.f32 %v418_v3, %v287_v55  ;;  %v298_v7 = vmul.f32 %v418_v3, %v288_v56 }
 0x252   :  { %v311_v8 = vmul.f32 %v304_v1, %v297_v6  ;;  %v312_v9 = vmul.f32 %v308_v2, %v298_v7 }
 0x254   :  { %v325_v10 = vadd.f32 %v318_v4, %v311_v8  ;;  %v326_v11 = vadd.f32 %v322_v5, %v312_v9 }
 0x256   :  { %327 = vst [vmem:[%s580_s6] sm:$0xff] %v325_v10  ;;  %328 = vst [vmem:[%s580_s6 + $0x8] sm:$0xff] %v326_v11 }

// kernel: forward.80
= control target key start
LH: loop header
LB: loop body
LE: loop exit
PB: predicated region body
PF: predicated region fallthrough
CT: control target
= control target key end

     0   :  { %v49_v35 = vlaneseq  ;;  %s487_s1 = inlined_call_operand.vmem [shape: bf16[256,256], index: 1, kind: input, shape index: {}]   ;;  %s488_s0 = inlined_call_operand.vmem [shape: bf16[8,256], index: 0, kind: input, shape index: {}]   ;;  %s489_s2 = inlined_call_operand.vmem [shape: f32[1,256], index: 2, kind: input, shape index: {}]   ;;  %s490_s3 = inlined_call_operand.vmem [shape: f32[8,256], index: 3, kind: output, shape index: {}]  }
   0x1   :  { %v309_v0 = vld [vmem:[%s487_s1 + $0x4] ss:$8 sps:$4 sm:$0xff]   ;;  %v311_v1 = vld [vmem:[%s487_s1] ss:$8 sps:$4 sm:$0xff]   ;;  %v312_v2 = vld [vmem:[%s487_s1 + $0x14] ss:$8 sps:$4 sm:$0xff]  }
   0x2   :  { %226 = vmatprep.subr.bf16.mxu0 %v309_v0  ;;  %v314_v3 = vld [vmem:[%s487_s1 + $0x10] ss:$8 sps:$4 sm:$0xff]   ;;  %v315_v4 = vld [vmem:[%s487_s1 + $0x24] ss:$8 sps:$4 sm:$0xff]   ;;  %v317_v5 = vld [vmem:[%s487_s1 + $0x20] ss:$8 sps:$4 sm:$0xff]  }
   0x3   :  { %227 = vmatpush1.bf16.msra.mxu0 %v311_v1  ;;  %v318_v6 = vld [vmem:[%s487_s1 + $0x34] ss:$8 sps:$4 sm:$0xff]   ;;  %v320_v7 = vld [vmem:[%s487_s1 + $0x30] ss:$8 sps:$4 sm:$0xff]   ;;  %v321_v8 = vld [vmem:[%s487_s1 + $0x44] ss:$8 sps:$4 sm:$0xff]  }
   0x4   :  { %228 = vmatprep.subr.bf16.mxu0 %v312_v2  ;;  %v323_v9 = vld [vmem:[%s487_s1 + $0x40] ss:$8 sps:$4 sm:$0xff]   ;;  %v324_v10 = vld [vmem:[%s487_s1 + $0x54] ss:$8 sps:$4 sm:$0xff]   ;;  %v326_v11 = vld [vmem:[%s487_s1 + $0x50] ss:$8 sps:$4 sm:$0xff]  }
   0x5   :  { %v327_v12 = vld [vmem:[%s487_s1 + $0x64] ss:$8 sps:$4 sm:$0xff]   ;;  %v329_v15 = vld [vmem:[%s487_s1 + $0x60] ss:$8 sps:$4 sm:$0xff]   ;;  %v330_v16 = vld [vmem:[%s487_s1 + $0x74] ss:$8 sps:$4 sm:$0xff]  }
   0x6   :  { %v14_v13 = vld [vmem:[%s488_s0] sm:$0xff]  ;;  %v332_v17 = vld [vmem:[%s487_s1 + $0x70] ss:$8 sps:$4 sm:$0xff]   ;;  %v336_v20 = vld [vmem:[%s487_s1 + $0x94] ss:$8 sps:$4 sm:$0xff]   ;;  %v50_v36 = vshrl.u32 %v49_v35, 7 }
   0x7   :  { %229 = vmatpush1.bf16.msra.mxu0 %v314_v3  ;;  %v276_v14 = vcombine.high %v14_v13, %v14_v13  ;;  %v333_v18 = vld [vmem:[%s487_s1 + $0x84] ss:$8 sps:$4 sm:$0xff]   ;;  %v335_v19 = vld [vmem:[%s487_s1 + $0x80] ss:$8 sps:$4 sm:$0xff]   ;;  %v338_v21 = vld [vmem:[%s487_s1 + $0x90] ss:$8 sps:$4 sm:$0xff]   ;;  %v275_v34 = vcombine.low %v14_v13, %v14_v13 }
   0x8   :  { %230 = vmatprep.subr.bf16.mxu0 %v315_v4  ;;  %v339_v22 = vld [vmem:[%s487_s1 + $0xa4] ss:$8 sps:$4 sm:$0xff]   ;;  %v341_v23 = vld [vmem:[%s487_s1 + $0xa0] ss:$8 sps:$4 sm:$0xff]   ;;  %v342_v24 = vld [vmem:[%s487_s1 + $0xb4] ss:$8 sps:$4 sm:$0xff]  }
   0x9   :  { %258 = vmatprep.mubr.bf16.mxu0 %v276_v14  ;;  %v344_v25 = vld [vmem:[%s487_s1 + $0xb0] ss:$8 sps:$4 sm:$0xff]   ;;  %v345_v26 = vld [vmem:[%s487_s1 + $0xc4] ss:$8 sps:$4 sm:$0xff]   ;;  %v347_v27 = vld [vmem:[%s487_s1 + $0xc0] ss:$8 sps:$4 sm:$0xff]  }
   0xa   :  { %v348_v28 = vld [vmem:[%s487_s1 + $0xd4] ss:$8 sps:$4 sm:$0xff]   ;;  %v350_v29 = vld [vmem:[%s487_s1 + $0xd0] ss:$8 sps:$4 sm:$0xff]   ;;  %v351_v30 = vld [vmem:[%s487_s1 + $0xe4] ss:$8 sps:$4 sm:$0xff]  }
   0xb   :  { %231 = vmatpush1.bf16.msra.mxu0 %v317_v5  ;;  %v353_v31 = vld [vmem:[%s487_s1 + $0xe0] ss:$8 sps:$4 sm:$0xff]   ;;  %v354_v32 = vld [vmem:[%s487_s1 + $0xf4] ss:$8 sps:$4 sm:$0xff]   ;;  %v356_v33 = vld [vmem:[%s487_s1 + $0xf0] ss:$8 sps:$4 sm:$0xff]  }
   0xc   :  { %232 = vmatprep.subr.bf16.mxu0 %v318_v6  ;;  %v51_v37 = vsub.s32 0, %v50_v36  ;;  %v47_v38 = vld [vmem:[%s489_s2] sm:$0x3]  ;;  %v55_v39 = vsub.s32 1, %v50_v36 }
   0xe   :  { %v52_v40 = vrot.slane %v47_v38, %v51_v37  ;;  %v56_v41 = vrot.slane %v47_v38, %v55_v39 }
   0xf   :  { %233 = vmatpush1.bf16.msra.mxu0 %v320_v7 }
  0x10   :  { %234 = vmatprep.subr.bf16.mxu0 %v321_v8 }
  0x13   :  { %235 = vmatpush1.bf16.msra.mxu0 %v323_v9 }
  0x14   :  { %236 = vmatprep.subr.bf16.mxu0 %v324_v10 }
  0x17   :  { %237 = vmatpush1.bf16.msra.mxu0 %v326_v11 }
  0x18   :  { %238 = vmatprep.subr.bf16.mxu0 %v327_v12 }
  0x1b   :  { %239 = vmatpush1.bf16.msra.mxu0 %v329_v15 }
  0x1c   :  { %240 = vmatprep.subr.bf16.mxu0 %v330_v16 }
  0x1f   :  { %241 = vmatpush1.bf16.msra.mxu0 %v332_v17 }
  0x20   :  { %242 = vmatprep.subr.bf16.mxu0 %v333_v18 }
  0x23   :  { %243 = vmatpush1.bf16.msra.mxu0 %v335_v19 }
  0x24   :  { %244 = vmatprep.subr.bf16.mxu0 %v336_v20 }
  0x27   :  { %245 = vmatpush1.bf16.msra.mxu0 %v338_v21 }
  0x28   :  { %246 = vmatprep.subr.bf16.mxu0 %v339_v22 }
  0x2b   :  { %247 = vmatpush1.bf16.msra.mxu0 %v341_v23 }
  0x2c   :  { %248 = vmatprep.subr.bf16.mxu0 %v342_v24 }
  0x2f   :  { %249 = vmatpush1.bf16.msra.mxu0 %v344_v25 }
  0x30   :  { %250 = vmatprep.subr.bf16.mxu0 %v345_v26 }
  0x33   :  { %251 = vmatpush1.bf16.msra.mxu0 %v347_v27 }
  0x34   :  { %252 = vmatprep.subr.bf16.mxu0 %v348_v28 }
  0x37   :  { %253 = vmatpush1.bf16.msra.mxu0 %v350_v29 }
  0x38   :  { %254 = vmatprep.subr.bf16.mxu0 %v351_v30 }
  0x3b   :  { %255 = vmatpush1.bf16.msra.mxu0 %v353_v31 }
  0x3c   :  { %256 = vmatprep.subr.bf16.mxu0 %v354_v32 }
  0x3f   :  { %257 = vmatpush1.bf16.msra.mxu0 %v356_v33 }
  0x42   :  { %259 = vmatmul.mubr.bf16.vlgmr.msra.gmra.mrb[0].mxu0 %v275_v34 }
 0x115   :  { %v260_v42 = vpop.f32.mrb[0].mxu0 }
 0x116   :  { %v261_v43 = vadd.f32 %v260_v42, %v52_v40  ;;  %v262_v44 = vpop.f32.mrb[1].mxu0 }
 0x117   :  { %v263_v45 = vadd.f32 %v262_v44, %v56_v41  ;;  %v264_v46 = vpop.f32.mrb[2].mxu0 }
 0x118   :  { %v267_v47 = vmax.f32 %v261_v43, 0.0  ;;  %v265_v48 = vpop.f32.mrb[3].mxu0 }
 0x119   :  { %v268_v49 = vmax.f32 %v263_v45, 0.0 }
 0x11a   :  { %269 = vst [vmem:[%s490_s3] sm:$0xff] %v267_v47 }
 0x11b   :  { %270 = vst [vmem:[%s490_s3 + $0x8] sm:$0xff] %v268_v49 }

// kernel: forward.137
= control target key start
LH: loop header
LB: loop body
LE: loop exit
PB: predicated region body
PF: predicated region fallthrough
CT: control target
= control target key end

     0   :  { %vm173_vm0 = vcmask 1041408   ;;  %v785_v56 = vmov 0.0|0.0   ;;  %vm786_vm1 = vmmov 0   ;;  %vm300_vm3 = vcmask 517120   ;;  %s1103_s1 = inlined_call_operand.vmem [shape: f32[256,128], index: 1, kind: input, shape index: {}]   ;;  %s1104_s0 = inlined_call_operand.vmem [shape: f32[2,256], index: 0, kind: input, shape index: {}]   ;;  %s1105_s2 = inlined_call_operand.vmem [shape: f32[1,128], index: 2, kind: input, shape index: {}]   ;;  %s1106_s5 = inlined_call_operand.vmem [shape: f32[128,64], index: 5, kind: input, shape index: {}]   ;;  %s1107_s3 = inlined_call_operand.vmem [shape: f32[1,128], index: 3, kind: input, shape index: {}]   ;;  %s1108_s4 = inlined_call_operand.vmem [shape: f32[1,128], index: 4, kind: input, shape index: {}]   ;;  %s1109_s6 = inlined_call_operand.vmem [shape: f32[1,64], index: 6, kind: input, shape index: {}]   ;;  %s1110_s9 = inlined_call_operand.vmem [shape: f32[64,32], index: 9, kind: input, shape index: {}]   ;;  %s1111_s7 = inlined_call_operand.vmem [shape: f32[1,64], index: 7, kind: input, shape index: {}]   ;;  %s1112_s8 = inlined_call_operand.vmem [shape: f32[1,64], index: 8, kind: input, shape index: {}]   ;;  %s1113_s10 = inlined_call_operand.vmem [shape: f32[1,32], index: 10, kind: input, shape index: {}]   ;;  %s1114_s13 = inlined_call_operand.vmem [shape: f32[32,1], index: 13, kind: input, shape index: {}]   ;;  %s1115_s14 = inlined_call_operand.<no memory space> [shape: f32[1,1], index: 14, kind: input, shape index: {}]   ;;  %s1116_s11 = inlined_call_operand.vmem [shape: f32[1,32], index: 11, kind: input, shape index: {}]   ;;  %s1117_s12 = inlined_call_operand.vmem [shape: f32[1,32], index: 12, kind: input, shape index: {}]   ;;  %s1118_s15 = inlined_call_operand.vmem [shape: f32[2,1], index: 15, kind: output, shape index: {}]  }
   0x1   :  { %v69_v0 = vld [vmem:[%s1103_s1 + $0x80] sm:$0xff]  ;;  %v70_v1 = vld [vmem:[%s1103_s1 + $0x88] sm:$0xff]  ;;  %v71_v5 = vld [vmem:[%s1103_s1 + $0x90] sm:$0xff]  ;;  %730 = vmatprep.subr.bf16.mxu1 %v785_v56  ;;  %vm349_vm5 = vcmask 523264   ;;  %vm423_vm6 = vcmask 254976   ;;  %vm468_vm8 = vcmask 261120  }
   0x2   :  { %v53_v2 = vld [vmem:[%s1103_s1] sm:$0xff]  ;;  %v698_v3 = vpack.c.bf16 %v70_v1, %v69_v0  ;;  %v54_v4 = vld [vmem:[%s1103_s1 + $0x8] sm:$0xff]  ;;  %v72_v6 = vld [vmem:[%s1103_s1 + $0x98] sm:$0xff]  ;;  %vm548_vm9 = vcmask 1024  }
   0x3   :  { %v700_v7 = vpack.c.bf16 %v54_v4, %v53_v2  ;;  %v702_v8 = vpack.c.bf16 %v72_v6, %v71_v5  ;;  %v55_v9 = vld [vmem:[%s1103_s1 + $0x10] sm:$0xff]  ;;  %v56_v10 = vld [vmem:[%s1103_s1 + $0x18] sm:$0xff]  ;;  %v73_v11 = vld [vmem:[%s1103_s1 + $0xa0] sm:$0xff] }
   0x4   :  { %699 = vmatprep.subr.bf16.mxu0 %v698_v3  ;;  %v74_v12 = vld [vmem:[%s1103_s1 + $0xa8] sm:$0xff]  ;;  %v704_v13 = vpack.c.bf16 %v56_v10, %v55_v9  ;;  %v57_v15 = vld [vmem:[%s1103_s1 + $0x20] sm:$0xff]  ;;  %v75_v17 = vld [vmem:[%s1103_s1 + $0xb0] sm:$0xff] }
   0x5   :  { %701 = vmatpush3.bf16.msra.mxu0 %v700_v7  ;;  %v706_v14 = vpack.c.bf16 %v74_v12, %v73_v11  ;;  %v58_v16 = vld [vmem:[%s1103_s1 + $0x28] sm:$0xff]  ;;  %v76_v18 = vld [vmem:[%s1103_s1 + $0xb8] sm:$0xff]  ;;  %v59_v21 = vld [vmem:[%s1103_s1 + $0x30] sm:$0xff] }
   0x6   :  { %703 = vmatprep.subr.bf16.mxu0 %v702_v8  ;;  %v708_v19 = vpack.c.bf16 %v58_v16, %v57_v15  ;;  %v710_v20 = vpack.c.bf16 %v76_v18, %v75_v17  ;;  %v60_v22 = vld [vmem:[%s1103_s1 + $0x38] sm:$0xff]  ;;  %v77_v23 = vld [vmem:[%s1103_s1 + $0xc0] sm:$0xff]  ;;  %v78_v24 = vld [vmem:[%s1103_s1 + $0xc8] sm:$0xff] }
   0x7   :  { %v555_v25 = vld.sshfl [vmem:[%s1104_s0] sm:$0x33 pattern:$0x76325410]  ;;  %v712_v27 = vpack.c.bf16 %v60_v22, %v59_v21  ;;  %v714_v28 = vpack.c.bf16 %v78_v24, %v77_v23  ;;  %v62_v30 = vld [vmem:[%s1103_s1 + $0x48] sm:$0xff]  ;;  %v79_v31 = vld [vmem:[%s1103_s1 + $0xd0] sm:$0xff] }
   0x8   :  { %v100_v26 = vcombine.high %v555_v25, %v555_v25  ;;  %v61_v29 = vld [vmem:[%s1103_s1 + $0x40] sm:$0xff]  ;;  %v80_v32 = vld [vmem:[%s1103_s1 + $0xd8] sm:$0xff]  ;;  %v63_v35 = vld [vmem:[%s1103_s1 + $0x50] sm:$0xff] }
   0x9   :  { %705 = vmatpush3.bf16.msra.mxu0 %v704_v13  ;;  %v716_v33 = vpack.c.bf16 %v62_v30, %v61_v29  ;;  %v718_v34 = vpack.c.bf16 %v80_v32, %v79_v31  ;;  %v64_v36 = vld [vmem:[%s1103_s1 + $0x58] sm:$0xff]  ;;  %v81_v37 = vld [vmem:[%s1103_s1 + $0xe0] sm:$0xff]  ;;  %v82_v38 = vld [vmem:[%s1103_s1 + $0xe8] sm:$0xff]  ;;  %v787_v13 = vmov 0.0  }
   0xa   :  { %707 = vmatprep.subr.bf16.mxu0 %v706_v14  ;;  %167 = vmatprep.mubr.f32.mxu0 %v100_v26  ;;  %v720_v39 = vpack.c.bf16 %v64_v36, %v63_v35  ;;  %v722_v40 = vpack.c.bf16 %v82_v38, %v81_v37  ;;  %v65_v41 = vld [vmem:[%s1103_s1 + $0x60] sm:$0xff]  ;;  %v66_v42 = vld [vmem:[%s1103_s1 + $0x68] sm:$0xff]  ;;  %v83_v43 = vld [vmem:[%s1103_s1 + $0xf0] sm:$0xff] }
   0xb   :  { %v84_v44 = vld [vmem:[%s1103_s1 + $0xf8] sm:$0xff]  ;;  %v724_v45 = vpack.c.bf16 %v66_v42, %v65_v41  ;;  %v67_v47 = vld [vmem:[%s1103_s1 + $0x70] sm:$0xff]  ;;  %v554_v52 = vld [vmem:[%s1105_s2] ss:$0 sm:$0xff]  ;;  %665 = vmatprep.mubr.msk.f32.mxu1 %vm786_vm1, %v787_v13 }
   0xc   :  { %v726_v46 = vpack.c.bf16 %v84_v44, %v83_v43  ;;  %v68_v48 = vld [vmem:[%s1103_s1 + $0x78] sm:$0xff]  ;;  %v207_v57 = vld [vmem:[%s1106_s5] sm:$0xff]  ;;  %v208_v58 = vld [vmem:[%s1106_s5 + $0x8] sm:$0xff] }
   0xd   :  { %709 = vmatpush3.bf16.msra.mxu0 %v708_v19  ;;  %v728_v49 = vpack.c.bf16 %v68_v48, %v67_v47  ;;  %v209_v59 = vld [vmem:[%s1106_s5 + $0x10] sm:$0xff]  ;;  %v731_v60 = vpack.c.bf16 %v208_v58, %v207_v57  ;;  %v210_v61 = vld [vmem:[%s1106_s5 + $0x18] sm:$0xff]  ;;  %v211_v4 = vld [vmem:[%s1106_s5 + $0x20] sm:$0xff] }
   0xe   :  { %711 = vmatprep.subr.bf16.mxu0 %v710_v20  ;;  %v734_v62 = vpack.c.bf16 %v210_v61, %v209_v59  ;;  %v212_v5 = vld [vmem:[%s1106_s5 + $0x28] sm:$0xff]  ;;  %v213_v7 = vld [vmem:[%s1106_s5 + $0x30] sm:$0xff]  ;;  %v214_v8 = vld [vmem:[%s1106_s5 + $0x38] sm:$0xff] }
   0xf   :  { %732 = vmatpush3.bf16.msra.mxu1 %v731_v60  ;;  %v737_v6 = vpack.c.bf16 %v212_v5, %v211_v4  ;;  %v740_v9 = vpack.c.bf16 %v214_v8, %v213_v7  ;;  %v215_v10 = vld [vmem:[%s1106_s5 + $0x40] sm:$0xff]  ;;  %v216_v11 = vld [vmem:[%s1106_s5 + $0x48] sm:$0xff]  ;;  %v217_v14 = vld [vmem:[%s1106_s5 + $0x50] sm:$0xff] }
  0x10   :  { %733 = vmatprep.subr.bf16.mxu1 %v785_v56  ;;  %v743_v12 = vpack.c.bf16 %v216_v11, %v215_v10  ;;  %v218_v15 = vld [vmem:[%s1106_s5 + $0x58] sm:$0xff]  ;;  %v219_v17 = vld [vmem:[%s1106_s5 + $0x60] sm:$0xff]  ;;  %v220_v18 = vld [vmem:[%s1106_s5 + $0x68] sm:$0xff] }
  0x11   :  { %713 = vmatpush3.bf16.msra.mxu0 %v712_v27  ;;  %v746_v16 = vpack.c.bf16 %v218_v15, %v217_v14  ;;  %v749_v19 = vpack.c.bf16 %v220_v18, %v219_v17  ;;  %v221_v20 = vld [vmem:[%s1106_s5 + $0x70] sm:$0xff]  ;;  %v222_v21 = vld [vmem:[%s1106_s5 + $0x78] sm:$0xff]  ;;  %v556_v27 = vld [vmem:[%s1107_s3] ss:$0 sm:$0xff] }
  0x12   :  { %715 = vmatprep.subr.bf16.mxu0 %v714_v28  ;;  %v752_v22 = vpack.c.bf16 %v222_v21, %v221_v20  ;;  %v557_v29 = vld [vmem:[%s1108_s4] ss:$0 sm:$0xff]  ;;  %v336_v47 = vld [vmem:[%s1110_s9 + $0x10] sm:$0xff]  ;;  %v337_v48 = vld [vmem:[%s1110_s9 + $0x18] sm:$0xff]  ;;  %v20_v20 = vstv %s1115_s14 }
  0x13   :  { %735 = vmatpush3.bf16.msra.mxu1 %v734_v62  ;;  %v334_v44 = vld [vmem:[%s1110_s9] sm:$0xff]  ;;  %v458_v15 = vld [vmem:[%s1114_s13 + $0x8] sm:$0xff]  ;;  %v459_v17 = vld [vmem:[%s1114_s13 + $0x10] sm:$0xff]  ;;  %21 = vst [vmem:[#allocation2] sm:$0x1] %v20_v20 }
  0x14   :  { %736 = vmatprep.subr.bf16.mxu1 %v785_v56  ;;  %v559_v61 = vld [vmem:[%s1111_s7] ss:$0 sm:$0xff]  ;;  %v460_v18 = vld [vmem:[%s1114_s13 + $0x18] sm:$0xff] }
  0x15   :  { %717 = vmatpush3.bf16.msra.mxu0 %v716_v33  ;;  %v561_v4 = vld [vmem:[%s1113_s10] ss:$0 sm:$0xff] }
  0x16   :  { %719 = vmatprep.subr.bf16.mxu0 %v718_v34  ;;  %v558_v34 = vld [vmem:[%s1109_s6] ss:$0 sm:$0xff] }
  0x17   :  { %738 = vmatpush3.bf16.msra.mxu1 %v737_v6  ;;  %v457_v14 = vld [vmem:[%s1114_s13] sm:$0xff] }
  0x18   :  { %739 = vmatprep.subr.bf16.mxu1 %v785_v56 }
  0x19   :  { %721 = vmatpush3.bf16.msra.mxu0 %v720_v39 }
  0x1a   :  { %723 = vmatprep.subr.bf16.mxu0 %v722_v40 }
  0x1b   :  { %741 = vmatpush3.bf16.msra.mxu1 %v740_v9 }
  0x1c   :  { %742 = vmatprep.subr.bf16.mxu1 %v785_v56 }
  0x1d   :  { %725 = vmatpush3.bf16.msra.mxu0 %v724_v45  ;;  %v335_v45 = vld [vmem:[%s1110_s9 + $0x8] sm:$0xff] }
  0x1e   :  { %727 = vmatprep.subr.bf16.mxu0 %v726_v46  ;;  %v755_v46 = vpack.c.bf16 %v335_v45, %v334_v44 }
  0x1f   :  { %744 = vmatpush3.bf16.msra.mxu1 %v743_v12 }
  0x20   :  { %745 = vmatprep.subr.bf16.mxu1 %v785_v56 }
  0x21   :  { %729 = vmatpush3.bf16.msra.mxu0 %v728_v49  ;;  %v758_v49 = vpack.c.bf16 %v337_v48, %v336_v47 }
  0x22   :  { %754 = vmatprep.subr.bf16.mxu0 %v785_v56 }
  0x23   :  { %747 = vmatpush3.bf16.msra.mxu1 %v746_v16  ;;  %v767_v16 = vpack.c.bf16 %v458_v15, %v457_v14 }
  0x24   :  { %168 = vmatmul.mubr.f32.vlgmr.msra.gmra.mrb[0].mxu0 %v555_v25  ;;  %748 = vmatprep.subr.bf16.mxu1 %v785_v56 }
  0x25   :  { %684 = vmatprep.mubr.msk.f32.mxu0 %vm786_vm1, %v787_v13  ;;  %756 = vmatpush3.bf16.msra.mxu0 %v755_v46 }
  0x26   :  { %757 = vmatprep.subr.bf16.mxu0 %v785_v56 }
  0x27   :  { %750 = vmatpush3.bf16.msra.mxu1 %v749_v19  ;;  %v770_v19 = vpack.c.bf16 %v460_v18, %v459_v17 }
  0x28   :  { %751 = vmatprep.subr.bf16.mxu1 %v785_v56 }
  0x29   :  { %759 = vmatpush3.bf16.msra.mxu0 %v758_v49 }
  0x2a   :  { %760 = vmatprep.subr.bf16.mxu0 %v785_v56 }
  0x2b   :  { %753 = vmatpush3.bf16.msra.mxu1 %v752_v22 }
  0x2c   :  { %766 = vmatprep.subr.bf16.mxu1 %v785_v56 }
  0xf7   :  { %v599_v50 = vpop.f32.mrb[0].mxu0 }
  0xf8   :  { %v600_v51 = vpop.f32.mrb[1].mxu0 }
  0xf9   :  { %v601_v53 = vadd.f32 %v600_v51, %v599_v50  ;;  %v338_v50 = vld [vmem:[%s1110_s9 + $0x20] sm:$0xff]  ;;  %v339_v51 = vld [vmem:[%s1110_s9 + $0x28] sm:$0xff] }
  0xfb   :  { %v170_v54 = vadd.f32 %v601_v53, %v554_v52  ;;  %v761_v52 = vpack.c.bf16 %v339_v51, %v338_v50  ;;  %v340_v53 = vld [vmem:[%s1110_s9 + $0x30] sm:$0xff] }
  0xfd   :  { %v174_v55 = vsel %vm173_vm0, %v170_v54, 0.0  ;;  %762 = vmatpush3.bf16.msra.mxu0 %v761_v52 }
  0xfe   :  { %175 = vadd.xlane.f32.xlu0 %v174_v55  ;;  %763 = vmatprep.subr.bf16.mxu0 %v785_v56 }
 0x18b   :  { %v176_v63 = vpop.xlane.xlu0 %175 }
 0x18c   :  { %v178_v0 = vmul.f32 0.0078125, %v176_v63  ;;  %v560_v63 = vld [vmem:[%s1112_s8] ss:$0 sm:$0xff] }
 0x18e   :  { %v179_v1 = vsub.f32 %v170_v54, %v178_v0  ;;  %v341_v54 = vld [vmem:[%s1110_s9 + $0x38] sm:$0xff] }
 0x18f   :  { %v764_v55 = vpack.c.bf16 %v341_v54, %v340_v53 }
 0x190   :  { %v180_v2 = vmul.f32 %v179_v1, %v179_v1 }
 0x191   :  { %765 = vmatpush3.bf16.msra.mxu0 %v764_v55 }
 0x192   :  { %v181_v3 = vsel %vm173_vm0, %v180_v2, 0.0 }
 0x193   :  { %182 = vadd.xlane.f32.xlu0 %v181_v3 }
 0x220   :  { %v183_v23 = vpop.xlane.xlu0 %182 }
 0x221   :  { %v184_v24 = vmul.f32 0.0078125, %v183_v23 }
 0x223   :  { %v185_v25 = vadd.f32 1e-05, %v184_v24 }
 0x225   :  { %775 = vrsqrt.f32 %v185_v25  ;;  %v563_v25 = vld [vmem:[%s1116_s11] ss:$0 sm:$0xff] }
 0x22f   :  { %v776_v26 = vpop.eup %775 }
 0x230   :  { %v187_v28 = vmul.f32 %v776_v26, %v179_v1 }
 0x232   :  { %v195_v30 = vmul.f32 %v556_v27, %v187_v28 }
 0x234   :  { %v203_v31 = vadd.f32 %v557_v29, %v195_v30 }
 0x236   :  { %vm204_vm2 = vcmp.gt.f32.partialorder %v203_v31, 0.0  ;;  %v205_v32 = vmul.f32 0.01, %v203_v31 }
 0x238   :  { %v206_v33 = vsel %vm204_vm2, %v203_v31, %v205_v32  ;;  %v565_v31 = vld [vmem:[#allocation2] ss:$0 sm:$0xff] }
 0x239   :  { %666 = vmatmul.mubr.f32.vlgmr.msra.gmra.mrb[0].mxu1 %v206_v33 }
 0x23a   :  { %695 = vmatprep.mubr.msk.f32.mxu1 %vm786_vm1, %v787_v13  ;;  %768 = vmatpush3.bf16.msra.mxu1 %v767_v16 }
 0x23b   :  { %769 = vmatprep.subr.bf16.mxu1 %v785_v56  ;;  %v564_v56 = vld [vmem:[%s1117_s12] ss:$0 sm:$0xff] }
 0x23e   :  { %771 = vmatpush3.bf16.msra.mxu1 %v770_v19 }
 0x30c   :  { %v296_v35 = vpop.f32.mrb[0].mxu1 }
 0x30d   :  { %v297_v36 = vadd.f32 %v558_v34, %v296_v35  ;;  %v667_v37 = vpop.f32.mrb[1].mxu1 }
 0x30f   :  { %v301_v38 = vsel %vm300_vm3, %v297_v36, 0.0 }
 0x310   :  { %302 = vadd.xlane.f32.xlu1 %v301_v38 }
 0x39d   :  { %v303_v39 = vpop.xlane.xlu1 %302 }
 0x39e   :  { %v305_v40 = vmul.f32 0.015625, %v303_v39 }
 0x3a0   :  { %v306_v41 = vsub.f32 %v297_v36, %v305_v40 }
 0x3a2   :  { %v307_v42 = vmul.f32 %v306_v41, %v306_v41 }
 0x3a4   :  { %v308_v43 = vsel %vm300_vm3, %v307_v42, 0.0 }
 0x3a5   :  { %309 = vadd.xlane.f32.xlu1 %v308_v43 }
 0x432   :  { %v310_v57 = vpop.xlane.xlu1 %309 }
 0x433   :  { %v311_v58 = vmul.f32 0.015625, %v310_v57 }
 0x435   :  { %v312_v59 = vadd.f32 1e-05, %v311_v58 }
 0x437   :  { %777 = vrsqrt.f32 %v312_v59 }
 0x441   :  { %v778_v60 = vpop.eup %777 }
 0x442   :  { %v314_v62 = vmul.f32 %v778_v60, %v306_v41 }
 0x444   :  { %v322_v0 = vmul.f32 %v559_v61, %v314_v62 }
 0x446   :  { %v330_v1 = vadd.f32 %v560_v63, %v322_v0 }
 0x448   :  { %vm331_vm4 = vcmp.gt.f32.partialorder %v330_v1, 0.0  ;;  %v332_v2 = vmul.f32 0.01, %v330_v1 }
 0x44a   :  { %v333_v3 = vsel %vm331_vm4, %v330_v1, %v332_v2 }
 0x44b   :  { %685 = vmatmul.mubr.msk.f32.vlgmr.msra.gmra.mrb[2].mxu0 %vm349_vm5, %v333_v3 }
 0x51e   :  { %v419_v5 = vpop.f32.mrb[2].mxu0 }
 0x51f   :  { %v420_v6 = vadd.f32 %v561_v4, %v419_v5  ;;  %v686_v7 = vpop.f32.mrb[3].mxu0 }
 0x521   :  { %v424_v8 = vsel %vm423_vm6, %v420_v6, 0.0 }
 0x522   :  { %425 = vadd.xlane.f32.xlu0 %v424_v8 }
 0x5af   :  { %v426_v9 = vpop.xlane.xlu0 %425 }
 0x5b0   :  { %v428_v10 = vmul.f32 0.03125, %v426_v9 }
 0x5b2   :  { %v429_v11 = vsub.f32 %v420_v6, %v428_v10 }
 0x5b4   :  { %v430_v12 = vmul.f32 %v429_v11, %v429_v11 }
 0x5b6   :  { %v431_v13 = vsel %vm423_vm6, %v430_v12, 0.0 }
 0x5b7   :  { %432 = vadd.xlane.f32.xlu1 %v431_v13 }
 0x644   :  { %v433_v21 = vpop.xlane.xlu1 %432 }
 0x645   :  { %v434_v22 = vmul.f32 0.03125, %v433_v21 }
 0x647   :  { %v435_v23 = vadd.f32 1e-05, %v434_v22 }
 0x649   :  { %779 = vrsqrt.f32 %v435_v23 }
 0x653   :  { %v780_v24 = vpop.eup %779 }
 0x654   :  { %v437_v26 = vmul.f32 %v780_v24, %v429_v11 }
 0x656   :  { %v445_v27 = vmul.f32 %v563_v25, %v437_v26 }
 0x658   :  { %v453_v28 = vadd.f32 %v564_v56, %v445_v27 }
 0x65a   :  { %vm454_vm7 = vcmp.gt.f32.partialorder %v453_v28, 0.0  ;;  %v455_v29 = vmul.f32 0.01, %v453_v28 }
 0x65c   :  { %v456_v30 = vsel %vm454_vm7, %v453_v28, %v455_v29 }
 0x65d   :  { %696 = vmatmul.mubr.msk.f32.vlgmr.msra.gmra.mrb[2].mxu1 %vm468_vm8, %v456_v30 }
 0x730   :  { %v538_v32 = vpop.f32.mrb[2].mxu1 }
 0x731   :  { %v539_v33 = vadd.f32 %v565_v31, %v538_v32  ;;  %v697_v34 = vpop.f32.mrb[3].mxu1 }
 0x733   :  { %v542_v35 = vsub.f32 0.0, %v539_v33 }
 0x735   :  { %v543_v36 = vmul.f32 1.442695, %v542_v35 }
 0x737   :  { %781 = vpow2.f32 %v543_v36 }
 0x741   :  { %v782_v37 = vpop.eup %781 }
 0x742   :  { %v545_v38 = vadd.f32 1.0, %v782_v37 }
 0x744   :  { %783 = vrcp.f32 %v545_v38 }
 0x74e   :  { %v784_v39 = vpop.eup %783 }
 0x74f   :  { %549 = vst.msk [vmem:[%s1118_s15] sm:$0x3] %vm548_vm9, %v784_v39 }

</bundles_post_ra>
